<compile_context>
chip_gen: v7x
topology: tpu7x:2x2x1
jax: 0.10.0
libtpu: 0.0.40
codegen_flags: <defaults>
</compile_context>

<pallas_src>
import jax
import jax.numpy as jnp
from jax import lax
from jax.experimental import pallas as pl
from jax.experimental.pallas import tpu as pltpu

INPUT = 28        # LSTM input size (one image row)
HIDDEN = 64       # LSTM hidden size
CLASSES = 10      # fc output size
SEQ = 28          # sequence length (image height)
NG = 4            # gates i, f, g, o (PyTorch order)
GP = 128          # per-gate padded (lane-aligned) width
GATES = NG * GP   # 512
CP = 128          # padded class dim (lane-dense output store)

# Set to jnp.bfloat16 on v6e/v7x for MXU-native matmul operands (state and
# elementwise gate math stay f32).  f32 default keeps exact parity with the
# f32 PyTorch reference and matches v5e (no bf16 VPU/EUP there).
MXU_DTYPE = jnp.float32


def lstm_kernel(gx_ref, whh_ref, fcw_ref, fcb_ref, out_ref, h_sc, c_sc):
    """gx_ref : (SEQ, BT, GATES)  precomputed x @ W_ih^T + b, gate-lane-aligned
       whh_ref: (HIDDEN, GATES)   W_hh^T, gate-lane-aligned
       fcw_ref: (HIDDEN, CP)      fc.weight^T, zero-padded cols >= CLASSES
       fcb_ref: (1, CP)           fc.bias, -1e30 in padded cols
       out_ref: (BT, CP)          softmax probabilities (padded cols ~ 0)
       h_sc/c_sc: (BT, HIDDEN) f32 hidden / cell state scratch
    """
    h_sc[...] = jnp.zeros_like(h_sc)
    c_sc[...] = jnp.zeros_like(c_sc)

    def sigmoid(z):                       # one EUP tanh instead of exp + divide
        return 0.5 * jnp.tanh(0.5 * z) + 0.5

    def step(t, carry):
        h = h_sc[...]
        gates = gx_ref[t] + jnp.dot(h.astype(whh_ref.dtype), whh_ref[...],
                                    preferred_element_type=jnp.float32)
        i = sigmoid(gates[:, 0 * GP:0 * GP + HIDDEN])
        f = sigmoid(gates[:, 1 * GP:1 * GP + HIDDEN])
        g = jnp.tanh(gates[:, 2 * GP:2 * GP + HIDDEN])
        o = sigmoid(gates[:, 3 * GP:3 * GP + HIDDEN])
        c_new = f * c_sc[...] + i * g
        c_sc[...] = c_new
        h_sc[...] = o * jnp.tanh(c_new)
        return carry

    # SEQ is static -> fully unroll so the LLO scheduler sees across steps.
    lax.fori_loop(0, SEQ, step, 0, unroll=True)

    logits = (jnp.dot(h_sc[...].astype(fcw_ref.dtype), fcw_ref[...],
                      preferred_element_type=jnp.float32) + fcb_ref[...])
    m = jnp.max(logits, axis=1, keepdims=True)
    e = jnp.exp(logits - m)               # padded cols: exp(-1e30 - m) == 0
    out_ref[...] = e / jnp.sum(e, axis=1, keepdims=True)


def _pad_gates_T(w):
    """(4H, K) PyTorch-layout gate weights -> (K, NG*GP) transposed; gate g in
    columns [g*GP, g*GP + HIDDEN), rest zero (lane-aligned gate blocks)."""
    K = w.shape[1]
    wg = w.reshape(NG, HIDDEN, K).transpose(2, 0, 1)           # (K, NG, HIDDEN)
    wg = jnp.pad(wg, ((0, 0), (0, 0), (0, GP - HIDDEN)))       # (K, NG, GP)
    return wg.reshape(K, NG * GP)


def lstm_net_forward(x, params):
    """Equivalent of LSTM_NET.forward.  x: (B, 784) or (B, 28, 28) -> (B, 10)."""
    x = x.reshape(-1, SEQ, INPUT).astype(jnp.float32)
    B = x.shape[0]

    # ---- weight prep (lane-aligned gate layout) ----
    wih_p = _pad_gates_T(params["w_ih"])                        # (INPUT, 512)
    whh_p = _pad_gates_T(params["w_hh"]).astype(MXU_DTYPE)      # (HIDDEN, 512)
    bias = (params["b_ih"] + params["b_hh"]).reshape(NG, HIDDEN)
    bias_p = jnp.pad(bias, ((0, 0), (0, GP - HIDDEN))).reshape(1, GATES)

    fcw_p = jnp.pad(params["fc_w"].T,
                    ((0, 0), (0, CP - CLASSES))).astype(MXU_DTYPE)   # (HIDDEN, CP)
    fcb_p = jnp.full((1, CP), -1e30, jnp.float32)
    fcb_p = fcb_p.at[0, :CLASSES].set(params["fc_b"])

    # ---- hoisted input projection: one (SEQ*B, INPUT) @ (INPUT, 512) matmul ----
    x_tm = jnp.transpose(x, (1, 0, 2))                          # (SEQ, B, INPUT)
    gates_x = jnp.einsum("tbd,dg->tbg", x_tm, wih_p) + bias_p   # (SEQ, B, 512)

    # ---- batch tiling: "parallel" grid over batch tiles ----
    BT = B if B <= 128 else 128
    B_pad = -(-B // BT) * BT
    if B_pad != B:
        gates_x = jnp.pad(gates_x, ((0, 0), (0, B_pad - B), (0, 0)))

    out = pl.pallas_call(
        lstm_kernel,
        out_shape=jax.ShapeDtypeStruct((B_pad, CP), jnp.float32),
        grid=(B_pad // BT,),
        in_specs=[
            pl.BlockSpec((SEQ, BT, GATES), lambda bi: (0, bi, 0)),
            pl.BlockSpec((HIDDEN, GATES), lambda bi: (0, 0)),
            pl.BlockSpec((HIDDEN, CP), lambda bi: (0, 0)),
            pl.BlockSpec((1, CP), lambda bi: (0, 0)),
        ],
        out_specs=pl.BlockSpec((BT, CP), lambda bi: (bi, 0)),
        scratch_shapes=[
            pltpu.VMEM((BT, HIDDEN), jnp.float32),   # h
            pltpu.VMEM((BT, HIDDEN), jnp.float32),   # c
        ],
        compiler_params=pltpu.CompilerParams(
            dimension_semantics=("parallel",)),
    )(gates_x, whh_p, fcw_p, fcb_p)

    return out[:B, :CLASSES]


def lstm_net_reference(x, params):
    """Pure-JAX reference identical to the PyTorch module (f32)."""
    x = x.reshape(-1, SEQ, INPUT).astype(jnp.float32)
    B = x.shape[0]
    wih, whh = params["w_ih"], params["w_hh"]
    b = params["b_ih"] + params["b_hh"]

    def step(carry, x_t):
        h, c = carry
        gates = x_t @ wih.T + h @ whh.T + b
        i = jax.nn.sigmoid(gates[:, 0 * HIDDEN:1 * HIDDEN])
        f = jax.nn.sigmoid(gates[:, 1 * HIDDEN:2 * HIDDEN])
        g = jnp.tanh(gates[:, 2 * HIDDEN:3 * HIDDEN])
        o = jax.nn.sigmoid(gates[:, 3 * HIDDEN:4 * HIDDEN])
        c = f * c + i * g
        h = o * jnp.tanh(c)
        return (h, c), None

    init = (jnp.zeros((B, HIDDEN), jnp.float32),
            jnp.zeros((B, HIDDEN), jnp.float32))
    (h, _), _ = lax.scan(step, init, jnp.transpose(x, (1, 0, 2)))
    logits = h @ params["fc_w"].T + params["fc_b"]
    return jax.nn.softmax(logits, axis=1)


def init_params(key):
    """Deterministic init mimicking PyTorch's uniform(-1/sqrt(H), 1/sqrt(H))."""
    k = 1.0 / jnp.sqrt(jnp.float32(HIDDEN))
    ks = jax.random.split(key, 6)
    u = lambda kk, shape: jax.random.uniform(kk, shape, jnp.float32, -k, k)
    return {
        "w_ih": u(ks[0], (4 * HIDDEN, INPUT)),
        "w_hh": u(ks[1], (4 * HIDDEN, HIDDEN)),
        "b_ih": u(ks[2], (4 * HIDDEN,)),
        "b_hh": u(ks[3], (4 * HIDDEN,)),
        "fc_w": u(ks[4], (CLASSES, HIDDEN)),
        "fc_b": u(ks[5], (CLASSES,)),
    }


if __name__ == "__main__":
    key = jax.random.PRNGKey(0)
    pkey, xkey = jax.random.split(key)
    params = init_params(pkey)

    batch = 2
    x = jax.random.normal(xkey, (batch, SEQ * INPUT), jnp.float32)   # (2, 784)

    out = jax.block_until_ready(lstm_net_forward(x, params))
    ref = jax.block_until_ready(lstm_net_reference(x, params))

    assert out.shape == (batch, CLASSES), out.shape
    assert bool(jnp.all(jnp.isfinite(out)))
    assert bool(jnp.allclose(jnp.sum(out, axis=1), 1.0, atol=1e-5))
    assert bool(jnp.allclose(out, ref, atol=1e-4, rtol=1e-4)), \
        float(jnp.max(jnp.abs(out - ref)))
    print("KERNEL_OK")
</pallas_src>

<mosaic_0001>
module attributes {stable_mosaic.version = 11 : i64} {
  func.func @lstm_kernel(%arg0: i32, %arg1: memref<28x2x512xf32, #tpu.memory_space<vmem>>, %arg2: memref<64x512xf32, #tpu.memory_space<vmem>>, %arg3: memref<64x128xf32, #tpu.memory_space<vmem>>, %arg4: memref<1x128xf32, #tpu.memory_space<vmem>>, %arg5: memref<2x128xf32, #tpu.memory_space<vmem>>, %arg6: memref<2x64xf32, #tpu.memory_space<vmem>>, %arg7: memref<2x64xf32, #tpu.memory_space<vmem>>) attributes {dimension_semantics = [#tpu.dimension_semantics<parallel>], iteration_bounds = array<i64: 1>, scalar_prefetch = 0 : i64, scratch_operands = 2 : i64, tpu.core_type = #tpu.core_type<tc>, window_params = [{transform_indices = @transform_0, window_bounds = array<i64: 28, 2, 512>}, {pipeline_mode = #tpu.pipeline_mode<synchronous>, transform_indices = @transform_1, window_bounds = array<i64: 64, 512>}, {pipeline_mode = #tpu.pipeline_mode<synchronous>, transform_indices = @transform_2, window_bounds = array<i64: 64, 128>}, {pipeline_mode = #tpu.pipeline_mode<synchronous>, transform_indices = @transform_3, window_bounds = array<i64: 1, 128>}, {transform_indices = @transform_4, window_bounds = array<i64: 2, 128>}]} {
    %cst = arith.constant 0.000000e+00 : f32
    %0 = vector.broadcast %cst : f32 to vector<2x64xf32>
    %c0 = arith.constant 0 : index
    %c0_0 = arith.constant 0 : index
    %1 = vector.load %arg6[%c0, %c0_0] : memref<2x64xf32, #tpu.memory_space<vmem>>, vector<2x64xf32>
    tpu.vector_store %arg6[%c0, %c0_0], %0 {strides = array<i32>} : memref<2x64xf32, #tpu.memory_space<vmem>>, vector<2x64xf32>,
    %cst_1 = arith.constant 0.000000e+00 : f32
    %2 = vector.broadcast %cst_1 : f32 to vector<2x64xf32>
    %c0_2 = arith.constant 0 : index
    %c0_3 = arith.constant 0 : index
    %3 = vector.load %arg7[%c0_2, %c0_3] : memref<2x64xf32, #tpu.memory_space<vmem>>, vector<2x64xf32>
    tpu.vector_store %arg7[%c0_2, %c0_3], %2 {strides = array<i32>} : memref<2x64xf32, #tpu.memory_space<vmem>>, vector<2x64xf32>,
    %c0_i32 = arith.constant 0 : i32
    %c0_4 = arith.constant 0 : index
    %c0_5 = arith.constant 0 : index
    %4 = vector.load %arg6[%c0_4, %c0_5] : memref<2x64xf32, #tpu.memory_space<vmem>>, vector<2x64xf32>
    %5 = arith.index_cast %c0_i32 : i32 to index
    %c0_6 = arith.constant 0 : index
    %c0_7 = arith.constant 0 : index
    %6 = vector.load %arg1[%5, %c0_6, %c0_7] : memref<28x2x512xf32, #tpu.memory_space<vmem>>, vector<1x2x512xf32>
    %7 = vector.shape_cast %6 : vector<1x2x512xf32> to vector<2x512xf32>
    %c0_8 = arith.constant 0 : index
    %c0_9 = arith.constant 0 : index
    %8 = vector.load %arg2[%c0_8, %c0_9] : memref<64x512xf32, #tpu.memory_space<vmem>>, vector<64x512xf32>
    %cst_10 = arith.constant dense<0.000000e+00> : vector<2x512xf32>
    %9 = tpu.matmul %4, %8, %cst_10 {dimension_numbers = #tpu.dot_dimension_numbers<[1], [0], [0], [1], [0, 0, 1, 1], [], []>} : vector<2x64xf32>, vector<64x512xf32>, vector<2x512xf32> -> vector<2x512xf32>
    %10 = arith.addf %7, %9 : vector<2x512xf32>
    %11 = vector.extract_strided_slice %10 {offsets = [0, 0], sizes = [2, 64], strides = [1, 1]} : vector<2x512xf32> to vector<2x64xf32>
    %cst_11 = arith.constant 5.000000e-01 : f32
    %12 = vector.broadcast %cst_11 : f32 to vector<2x64xf32>
    %13 = arith.mulf %12, %11 : vector<2x64xf32>
    %14 = math.tanh %13 : vector<2x64xf32>
    %cst_12 = arith.constant 5.000000e-01 : f32
    %15 = vector.broadcast %cst_12 : f32 to vector<2x64xf32>
    %16 = arith.mulf %15, %14 : vector<2x64xf32>
    %cst_13 = arith.constant 5.000000e-01 : f32
    %17 = vector.broadcast %cst_13 : f32 to vector<2x64xf32>
    %18 = arith.addf %16, %17 : vector<2x64xf32>
    %19 = vector.extract_strided_slice %10 {offsets = [0, 128], sizes = [2, 64], strides = [1, 1]} : vector<2x512xf32> to vector<2x64xf32>
    %cst_14 = arith.constant 5.000000e-01 : f32
    %20 = vector.broadcast %cst_14 : f32 to vector<2x64xf32>
    %21 = arith.mulf %20, %19 : vector<2x64xf32>
    %22 = math.tanh %21 : vector<2x64xf32>
    %cst_15 = arith.constant 5.000000e-01 : f32
    %23 = vector.broadcast %cst_15 : f32 to vector<2x64xf32>
    %24 = arith.mulf %23, %22 : vector<2x64xf32>
    %cst_16 = arith.constant 5.000000e-01 : f32
    %25 = vector.broadcast %cst_16 : f32 to vector<2x64xf32>
    %26 = arith.addf %24, %25 : vector<2x64xf32>
    %27 = vector.extract_strided_slice %10 {offsets = [0, 256], sizes = [2, 64], strides = [1, 1]} : vector<2x512xf32> to vector<2x64xf32>
    %28 = math.tanh %27 : vector<2x64xf32>
    %29 = vector.extract_strided_slice %10 {offsets = [0, 384], sizes = [2, 64], strides = [1, 1]} : vector<2x512xf32> to vector<2x64xf32>
    %cst_17 = arith.constant 5.000000e-01 : f32
    %30 = vector.broadcast %cst_17 : f32 to vector<2x64xf32>
    %31 = arith.mulf %30, %29 : vector<2x64xf32>
    %32 = math.tanh %31 : vector<2x64xf32>
    %cst_18 = arith.constant 5.000000e-01 : f32
    %33 = vector.broadcast %cst_18 : f32 to vector<2x64xf32>
    %34 = arith.mulf %33, %32 : vector<2x64xf32>
    %cst_19 = arith.constant 5.000000e-01 : f32
    %35 = vector.broadcast %cst_19 : f32 to vector<2x64xf32>
    %36 = arith.addf %34, %35 : vector<2x64xf32>
    %c0_20 = arith.constant 0 : index
    %c0_21 = arith.constant 0 : index
    %37 = vector.load %arg7[%c0_20, %c0_21] : memref<2x64xf32, #tpu.memory_space<vmem>>, vector<2x64xf32>
    %38 = arith.mulf %26, %37 : vector<2x64xf32>
    %39 = arith.mulf %18, %28 : vector<2x64xf32>
    %40 = arith.addf %38, %39 : vector<2x64xf32>
    %c0_22 = arith.constant 0 : index
    %c0_23 = arith.constant 0 : index
    %41 = vector.load %arg7[%c0_22, %c0_23] : memref<2x64xf32, #tpu.memory_space<vmem>>, vector<2x64xf32>
    tpu.vector_store %arg7[%c0_22, %c0_23], %40 {strides = array<i32>} : memref<2x64xf32, #tpu.memory_space<vmem>>, vector<2x64xf32>,
    %42 = math.tanh %40 : vector<2x64xf32>
    %43 = arith.mulf %36, %42 : vector<2x64xf32>
    %c0_24 = arith.constant 0 : index
    %c0_25 = arith.constant 0 : index
    %44 = vector.load %arg6[%c0_24, %c0_25] : memref<2x64xf32, #tpu.memory_space<vmem>>, vector<2x64xf32>
    tpu.vector_store %arg6[%c0_24, %c0_25], %43 {strides = array<i32>} : memref<2x64xf32, #tpu.memory_space<vmem>>, vector<2x64xf32>,
    %c1_i32 = arith.constant 1 : i32
    %c0_26 = arith.constant 0 : index
    %c0_27 = arith.constant 0 : index
    %45 = vector.load %arg6[%c0_26, %c0_27] : memref<2x64xf32, #tpu.memory_space<vmem>>, vector<2x64xf32>
    %46 = arith.index_cast %c1_i32 : i32 to index
    %c0_28 = arith.constant 0 : index
    %c0_29 = arith.constant 0 : index
    %47 = vector.load %arg1[%46, %c0_28, %c0_29] : memref<28x2x512xf32, #tpu.memory_space<vmem>>, vector<1x2x512xf32>
    %48 = vector.shape_cast %47 : vector<1x2x512xf32> to vector<2x512xf32>
    %c0_30 = arith.constant 0 : index
    %c0_31 = arith.constant 0 : index
    %49 = vector.load %arg2[%c0_30, %c0_31] : memref<64x512xf32, #tpu.memory_space<vmem>>, vector<64x512xf32>
    %cst_32 = arith.constant dense<0.000000e+00> : vector<2x512xf32>
    %50 = tpu.matmul %45, %49, %cst_32 {dimension_numbers = #tpu.dot_dimension_numbers<[1], [0], [0], [1], [0, 0, 1, 1], [], []>} : vector<2x64xf32>, vector<64x512xf32>, vector<2x512xf32> -> vector<2x512xf32>
    %51 = arith.addf %48, %50 : vector<2x512xf32>
    %52 = vector.extract_strided_slice %51 {offsets = [0, 0], sizes = [2, 64], strides = [1, 1]} : vector<2x512xf32> to vector<2x64xf32>
    %cst_33 = arith.constant 5.000000e-01 : f32
    %53 = vector.broadcast %cst_33 : f32 to vector<2x64xf32>
    %54 = arith.mulf %53, %52 : vector<2x64xf32>
    %55 = math.tanh %54 : vector<2x64xf32>
    %cst_34 = arith.constant 5.000000e-01 : f32
    %56 = vector.broadcast %cst_34 : f32 to vector<2x64xf32>
    %57 = arith.mulf %56, %55 : vector<2x64xf32>
    %cst_35 = arith.constant 5.000000e-01 : f32
    %58 = vector.broadcast %cst_35 : f32 to vector<2x64xf32>
    %59 = arith.addf %57, %58 : vector<2x64xf32>
    %60 = vector.extract_strided_slice %51 {offsets = [0, 128], sizes = [2, 64], strides = [1, 1]} : vector<2x512xf32> to vector<2x64xf32>
    %cst_36 = arith.constant 5.000000e-01 : f32
    %61 = vector.broadcast %cst_36 : f32 to vector<2x64xf32>
    %62 = arith.mulf %61, %60 : vector<2x64xf32>
    %63 = math.tanh %62 : vector<2x64xf32>
    %cst_37 = arith.constant 5.000000e-01 : f32
    %64 = vector.broadcast %cst_37 : f32 to vector<2x64xf32>
    %65 = arith.mulf %64, %63 : vector<2x64xf32>
    %cst_38 = arith.constant 5.000000e-01 : f32
    %66 = vector.broadcast %cst_38 : f32 to vector<2x64xf32>
    %67 = arith.addf %65, %66 : vector<2x64xf32>
    %68 = vector.extract_strided_slice %51 {offsets = [0, 256], sizes = [2, 64], strides = [1, 1]} : vector<2x512xf32> to vector<2x64xf32>
    %69 = math.tanh %68 : vector<2x64xf32>
    %70 = vector.extract_strided_slice %51 {offsets = [0, 384], sizes = [2, 64], strides = [1, 1]} : vector<2x512xf32> to vector<2x64xf32>
    %cst_39 = arith.constant 5.000000e-01 : f32
    %71 = vector.broadcast %cst_39 : f32 to vector<2x64xf32>
    %72 = arith.mulf %71, %70 : vector<2x64xf32>
    %73 = math.tanh %72 : vector<2x64xf32>
    %cst_40 = arith.constant 5.000000e-01 : f32
    %74 = vector.broadcast %cst_40 : f32 to vector<2x64xf32>
    %75 = arith.mulf %74, %73 : vector<2x64xf32>
    %cst_41 = arith.constant 5.000000e-01 : f32
    %76 = vector.broadcast %cst_41 : f32 to vector<2x64xf32>
    %77 = arith.addf %75, %76 : vector<2x64xf32>
    %c0_42 = arith.constant 0 : index
    %c0_43 = arith.constant 0 : index
    %78 = vector.load %arg7[%c0_42, %c0_43] : memref<2x64xf32, #tpu.memory_space<vmem>>, vector<2x64xf32>
    %79 = arith.mulf %67, %78 : vector<2x64xf32>
    %80 = arith.mulf %59, %69 : vector<2x64xf32>
    %81 = arith.addf %79, %80 : vector<2x64xf32>
    %c0_44 = arith.constant 0 : index
    %c0_45 = arith.constant 0 : index
    %82 = vector.load %arg7[%c0_44, %c0_45] : memref<2x64xf32, #tpu.memory_space<vmem>>, vector<2x64xf32>
    tpu.vector_store %arg7[%c0_44, %c0_45], %81 {strides = array<i32>} : memref<2x64xf32, #tpu.memory_space<vmem>>, vector<2x64xf32>,
    %83 = math.tanh %81 : vector<2x64xf32>
    %84 = arith.mulf %77, %83 : vector<2x64xf32>
    %c0_46 = arith.constant 0 : index
    %c0_47 = arith.constant 0 : index
    %85 = vector.load %arg6[%c0_46, %c0_47] : memref<2x64xf32, #tpu.memory_space<vmem>>, vector<2x64xf32>
    tpu.vector_store %arg6[%c0_46, %c0_47], %84 {strides = array<i32>} : memref<2x64xf32, #tpu.memory_space<vmem>>, vector<2x64xf32>,
    %c2_i32 = arith.constant 2 : i32
    %c0_48 = arith.constant 0 : index
    %c0_49 = arith.constant 0 : index
    %86 = vector.load %arg6[%c0_48, %c0_49] : memref<2x64xf32, #tpu.memory_space<vmem>>, vector<2x64xf32>
    %87 = arith.index_cast %c2_i32 : i32 to index
    %c0_50 = arith.constant 0 : index
    %c0_51 = arith.constant 0 : index
    %88 = vector.load %arg1[%87, %c0_50, %c0_51] : memref<28x2x512xf32, #tpu.memory_space<vmem>>, vector<1x2x512xf32>
    %89 = vector.shape_cast %88 : vector<1x2x512xf32> to vector<2x512xf32>
    %c0_52 = arith.constant 0 : index
    %c0_53 = arith.constant 0 : index
    %90 = vector.load %arg2[%c0_52, %c0_53] : memref<64x512xf32, #tpu.memory_space<vmem>>, vector<64x512xf32>
    %cst_54 = arith.constant dense<0.000000e+00> : vector<2x512xf32>
    %91 = tpu.matmul %86, %90, %cst_54 {dimension_numbers = #tpu.dot_dimension_numbers<[1], [0], [0], [1], [0, 0, 1, 1], [], []>} : vector<2x64xf32>, vector<64x512xf32>, vector<2x512xf32> -> vector<2x512xf32>
    %92 = arith.addf %89, %91 : vector<2x512xf32>
    %93 = vector.extract_strided_slice %92 {offsets = [0, 0], sizes = [2, 64], strides = [1, 1]} : vector<2x512xf32> to vector<2x64xf32>
    %cst_55 = arith.constant 5.000000e-01 : f32
    %94 = vector.broadcast %cst_55 : f32 to vector<2x64xf32>
    %95 = arith.mulf %94, %93 : vector<2x64xf32>
    %96 = math.tanh %95 : vector<2x64xf32>
    %cst_56 = arith.constant 5.000000e-01 : f32
    %97 = vector.broadcast %cst_56 : f32 to vector<2x64xf32>
    %98 = arith.mulf %97, %96 : vector<2x64xf32>
    %cst_57 = arith.constant 5.000000e-01 : f32
    %99 = vector.broadcast %cst_57 : f32 to vector<2x64xf32>
    %100 = arith.addf %98, %99 : vector<2x64xf32>
    %101 = vector.extract_strided_slice %92 {offsets = [0, 128], sizes = [2, 64], strides = [1, 1]} : vector<2x512xf32> to vector<2x64xf32>
    %cst_58 = arith.constant 5.000000e-01 : f32
    %102 = vector.broadcast %cst_58 : f32 to vector<2x64xf32>
    %103 = arith.mulf %102, %101 : vector<2x64xf32>
    %104 = math.tanh %103 : vector<2x64xf32>
    %cst_59 = arith.constant 5.000000e-01 : f32
    %105 = vector.broadcast %cst_59 : f32 to vector<2x64xf32>
    %106 = arith.mulf %105, %104 : vector<2x64xf32>
    %cst_60 = arith.constant 5.000000e-01 : f32
    %107 = vector.broadcast %cst_60 : f32 to vector<2x64xf32>
    %108 = arith.addf %106, %107 : vector<2x64xf32>
    %109 = vector.extract_strided_slice %92 {offsets = [0, 256], sizes = [2, 64], strides = [1, 1]} : vector<2x512xf32> to vector<2x64xf32>
    %110 = math.tanh %109 : vector<2x64xf32>
    %111 = vector.extract_strided_slice %92 {offsets = [0, 384], sizes = [2, 64], strides = [1, 1]} : vector<2x512xf32> to vector<2x64xf32>
    %cst_61 = arith.constant 5.000000e-01 : f32
    %112 = vector.broadcast %cst_61 : f32 to vector<2x64xf32>
    %113 = arith.mulf %112, %111 : vector<2x64xf32>
    %114 = math.tanh %113 : vector<2x64xf32>
    %cst_62 = arith.constant 5.000000e-01 : f32
    %115 = vector.broadcast %cst_62 : f32 to vector<2x64xf32>
    %116 = arith.mulf %115, %114 : vector<2x64xf32>
    %cst_63 = arith.constant 5.000000e-01 : f32
    %117 = vector.broadcast %cst_63 : f32 to vector<2x64xf32>
    %118 = arith.addf %116, %117 : vector<2x64xf32>
    %c0_64 = arith.constant 0 : index
    %c0_65 = arith.constant 0 : index
    %119 = vector.load %arg7[%c0_64, %c0_65] : memref<2x64xf32, #tpu.memory_space<vmem>>, vector<2x64xf32>
    %120 = arith.mulf %108, %119 : vector<2x64xf32>
    %121 = arith.mulf %100, %110 : vector<2x64xf32>
    %122 = arith.addf %120, %121 : vector<2x64xf32>
    %c0_66 = arith.constant 0 : index
    %c0_67 = arith.constant 0 : index
    %123 = vector.load %arg7[%c0_66, %c0_67] : memref<2x64xf32, #tpu.memory_space<vmem>>, vector<2x64xf32>
    tpu.vector_store %arg7[%c0_66, %c0_67], %122 {strides = array<i32>} : memref<2x64xf32, #tpu.memory_space<vmem>>, vector<2x64xf32>,
    %124 = math.tanh %122 : vector<2x64xf32>
    %125 = arith.mulf %118, %124 : vector<2x64xf32>
    %c0_68 = arith.constant 0 : index
    %c0_69 = arith.constant 0 : index
    %126 = vector.load %arg6[%c0_68, %c0_69] : memref<2x64xf32, #tpu.memory_space<vmem>>, vector<2x64xf32>
    tpu.vector_store %arg6[%c0_68, %c0_69], %125 {strides = array<i32>} : memref<2x64xf32, #tpu.memory_space<vmem>>, vector<2x64xf32>,
    %c3_i32 = arith.constant 3 : i32
    %c0_70 = arith.constant 0 : index
    %c0_71 = arith.constant 0 : index
    %127 = vector.load %arg6[%c0_70, %c0_71] : memref<2x64xf32, #tpu.memory_space<vmem>>, vector<2x64xf32>
    %128 = arith.index_cast %c3_i32 : i32 to index
    %c0_72 = arith.constant 0 : index
    %c0_73 = arith.constant 0 : index
    %129 = vector.load %arg1[%128, %c0_72, %c0_73] : memref<28x2x512xf32, #tpu.memory_space<vmem>>, vector<1x2x512xf32>
    %130 = vector.shape_cast %129 : vector<1x2x512xf32> to vector<2x512xf32>
    %c0_74 = arith.constant 0 : index
    %c0_75 = arith.constant 0 : index
    %131 = vector.load %arg2[%c0_74, %c0_75] : memref<64x512xf32, #tpu.memory_space<vmem>>, vector<64x512xf32>
    %cst_76 = arith.constant dense<0.000000e+00> : vector<2x512xf32>
    %132 = tpu.matmul %127, %131, %cst_76 {dimension_numbers = #tpu.dot_dimension_numbers<[1], [0], [0], [1], [0, 0, 1, 1], [], []>} : vector<2x64xf32>, vector<64x512xf32>, vector<2x512xf32> -> vector<2x512xf32>
    %133 = arith.addf %130, %132 : vector<2x512xf32>
    %134 = vector.extract_strided_slice %133 {offsets = [0, 0], sizes = [2, 64], strides = [1, 1]} : vector<2x512xf32> to vector<2x64xf32>
    %cst_77 = arith.constant 5.000000e-01 : f32
    %135 = vector.broadcast %cst_77 : f32 to vector<2x64xf32>
    %136 = arith.mulf %135, %134 : vector<2x64xf32>
    %137 = math.tanh %136 : vector<2x64xf32>
    %cst_78 = arith.constant 5.000000e-01 : f32
    %138 = vector.broadcast %cst_78 : f32 to vector<2x64xf32>
    %139 = arith.mulf %138, %137 : vector<2x64xf32>
    %cst_79 = arith.constant 5.000000e-01 : f32
    %140 = vector.broadcast %cst_79 : f32 to vector<2x64xf32>
    %141 = arith.addf %139, %140 : vector<2x64xf32>
    %142 = vector.extract_strided_slice %133 {offsets = [0, 128], sizes = [2, 64], strides = [1, 1]} : vector<2x512xf32> to vector<2x64xf32>
    %cst_80 = arith.constant 5.000000e-01 : f32
    %143 = vector.broadcast %cst_80 : f32 to vector<2x64xf32>
    %144 = arith.mulf %143, %142 : vector<2x64xf32>
    %145 = math.tanh %144 : vector<2x64xf32>
    %cst_81 = arith.constant 5.000000e-01 : f32
    %146 = vector.broadcast %cst_81 : f32 to vector<2x64xf32>
    %147 = arith.mulf %146, %145 : vector<2x64xf32>
    %cst_82 = arith.constant 5.000000e-01 : f32
    %148 = vector.broadcast %cst_82 : f32 to vector<2x64xf32>
    %149 = arith.addf %147, %148 : vector<2x64xf32>
    %150 = vector.extract_strided_slice %133 {offsets = [0, 256], sizes = [2, 64], strides = [1, 1]} : vector<2x512xf32> to vector<2x64xf32>
    %151 = math.tanh %150 : vector<2x64xf32>
    %152 = vector.extract_strided_slice %133 {offsets = [0, 384], sizes = [2, 64], strides = [1, 1]} : vector<2x512xf32> to vector<2x64xf32>
    %cst_83 = arith.constant 5.000000e-01 : f32
    %153 = vector.broadcast %cst_83 : f32 to vector<2x64xf32>
    %154 = arith.mulf %153, %152 : vector<2x64xf32>
    %155 = math.tanh %154 : vector<2x64xf32>
    %cst_84 = arith.constant 5.000000e-01 : f32
    %156 = vector.broadcast %cst_84 : f32 to vector<2x64xf32>
    %157 = arith.mulf %156, %155 : vector<2x64xf32>
    %cst_85 = arith.constant 5.000000e-01 : f32
    %158 = vector.broadcast %cst_85 : f32 to vector<2x64xf32>
    %159 = arith.addf %157, %158 : vector<2x64xf32>
    %c0_86 = arith.constant 0 : index
    %c0_87 = arith.constant 0 : index
    %160 = vector.load %arg7[%c0_86, %c0_87] : memref<2x64xf32, #tpu.memory_space<vmem>>, vector<2x64xf32>
    %161 = arith.mulf %149, %160 : vector<2x64xf32>
    %162 = arith.mulf %141, %151 : vector<2x64xf32>
    %163 = arith.addf %161, %162 : vector<2x64xf32>
    %c0_88 = arith.constant 0 : index
    %c0_89 = arith.constant 0 : index
    %164 = vector.load %arg7[%c0_88, %c0_89] : memref<2x64xf32, #tpu.memory_space<vmem>>, vector<2x64xf32>
    tpu.vector_store %arg7[%c0_88, %c0_89], %163 {strides = array<i32>} : memref<2x64xf32, #tpu.memory_space<vmem>>, vector<2x64xf32>,
    %165 = math.tanh %163 : vector<2x64xf32>
    %166 = arith.mulf %159, %165 : vector<2x64xf32>
    %c0_90 = arith.constant 0 : index
    %c0_91 = arith.constant 0 : index
    %167 = vector.load %arg6[%c0_90, %c0_91] : memref<2x64xf32, #tpu.memory_space<vmem>>, vector<2x64xf32>
    tpu.vector_store %arg6[%c0_90, %c0_91], %166 {strides = array<i32>} : memref<2x64xf32, #tpu.memory_space<vmem>>, vector<2x64xf32>,
    %c4_i32 = arith.constant 4 : i32
    %c0_92 = arith.constant 0 : index
    %c0_93 = arith.constant 0 : index
    %168 = vector.load %arg6[%c0_92, %c0_93] : memref<2x64xf32, #tpu.memory_space<vmem>>, vector<2x64xf32>
    %169 = arith.index_cast %c4_i32 : i32 to index
    %c0_94 = arith.constant 0 : index
    %c0_95 = arith.constant 0 : index
    %170 = vector.load %arg1[%169, %c0_94, %c0_95] : memref<28x2x512xf32, #tpu.memory_space<vmem>>, vector<1x2x512xf32>
    %171 = vector.shape_cast %170 : vector<1x2x512xf32> to vector<2x512xf32>
    %c0_96 = arith.constant 0 : index
    %c0_97 = arith.constant 0 : index
    %172 = vector.load %arg2[%c0_96, %c0_97] : memref<64x512xf32, #tpu.memory_space<vmem>>, vector<64x512xf32>
    %cst_98 = arith.constant dense<0.000000e+00> : vector<2x512xf32>
    %173 = tpu.matmul %168, %172, %cst_98 {dimension_numbers = #tpu.dot_dimension_numbers<[1], [0], [0], [1], [0, 0, 1, 1], [], []>} : vector<2x64xf32>, vector<64x512xf32>, vector<2x512xf32> -> vector<2x512xf32>
    %174 = arith.addf %171, %173 : vector<2x512xf32>
    %175 = vector.extract_strided_slice %174 {offsets = [0, 0], sizes = [2, 64], strides = [1, 1]} : vector<2x512xf32> to vector<2x64xf32>
    %cst_99 = arith.constant 5.000000e-01 : f32
    %176 = vector.broadcast %cst_99 : f32 to vector<2x64xf32>
    %177 = arith.mulf %176, %175 : vector<2x64xf32>
    %178 = math.tanh %177 : vector<2x64xf32>
    %cst_100 = arith.constant 5.000000e-01 : f32
    %179 = vector.broadcast %cst_100 : f32 to vector<2x64xf32>
    %180 = arith.mulf %179, %178 : vector<2x64xf32>
    %cst_101 = arith.constant 5.000000e-01 : f32
    %181 = vector.broadcast %cst_101 : f32 to vector<2x64xf32>
    %182 = arith.addf %180, %181 : vector<2x64xf32>
    %183 = vector.extract_strided_slice %174 {offsets = [0, 128], sizes = [2, 64], strides = [1, 1]} : vector<2x512xf32> to vector<2x64xf32>
    %cst_102 = arith.constant 5.000000e-01 : f32
    %184 = vector.broadcast %cst_102 : f32 to vector<2x64xf32>
    %185 = arith.mulf %184, %183 : vector<2x64xf32>
    %186 = math.tanh %185 : vector<2x64xf32>
    %cst_103 = arith.constant 5.000000e-01 : f32
    %187 = vector.broadcast %cst_103 : f32 to vector<2x64xf32>
    %188 = arith.mulf %187, %186 : vector<2x64xf32>
    %cst_104 = arith.constant 5.000000e-01 : f32
    %189 = vector.broadcast %cst_104 : f32 to vector<2x64xf32>
    %190 = arith.addf %188, %189 : vector<2x64xf32>
    %191 = vector.extract_strided_slice %174 {offsets = [0, 256], sizes = [2, 64], strides = [1, 1]} : vector<2x512xf32> to vector<2x64xf32>
    %192 = math.tanh %191 : vector<2x64xf32>
    %193 = vector.extract_strided_slice %174 {offsets = [0, 384], sizes = [2, 64], strides = [1, 1]} : vector<2x512xf32> to vector<2x64xf32>
    %cst_105 = arith.constant 5.000000e-01 : f32
    %194 = vector.broadcast %cst_105 : f32 to vector<2x64xf32>
    %195 = arith.mulf %194, %193 : vector<2x64xf32>
    %196 = math.tanh %195 : vector<2x64xf32>
    %cst_106 = arith.constant 5.000000e-01 : f32
    %197 = vector.broadcast %cst_106 : f32 to vector<2x64xf32>
    %198 = arith.mulf %197, %196 : vector<2x64xf32>
    %cst_107 = arith.constant 5.000000e-01 : f32
    %199 = vector.broadcast %cst_107 : f32 to vector<2x64xf32>
    %200 = arith.addf %198, %199 : vector<2x64xf32>
    %c0_108 = arith.constant 0 : index
    %c0_109 = arith.constant 0 : index
    %201 = vector.load %arg7[%c0_108, %c0_109] : memref<2x64xf32, #tpu.memory_space<vmem>>, vector<2x64xf32>
    %202 = arith.mulf %190, %201 : vector<2x64xf32>
    %203 = arith.mulf %182, %192 : vector<2x64xf32>
    %204 = arith.addf %202, %203 : vector<2x64xf32>
    %c0_110 = arith.constant 0 : index
    %c0_111 = arith.constant 0 : index
    %205 = vector.load %arg7[%c0_110, %c0_111] : memref<2x64xf32, #tpu.memory_space<vmem>>, vector<2x64xf32>
    tpu.vector_store %arg7[%c0_110, %c0_111], %204 {strides = array<i32>} : memref<2x64xf32, #tpu.memory_space<vmem>>, vector<2x64xf32>,
    %206 = math.tanh %204 : vector<2x64xf32>
    %207 = arith.mulf %200, %206 : vector<2x64xf32>
    %c0_112 = arith.constant 0 : index
    %c0_113 = arith.constant 0 : index
    %208 = vector.load %arg6[%c0_112, %c0_113] : memref<2x64xf32, #tpu.memory_space<vmem>>, vector<2x64xf32>
    tpu.vector_store %arg6[%c0_112, %c0_113], %207 {strides = array<i32>} : memref<2x64xf32, #tpu.memory_space<vmem>>, vector<2x64xf32>,
    %c5_i32 = arith.constant 5 : i32
    %c0_114 = arith.constant 0 : index
    %c0_115 = arith.constant 0 : index
    %209 = vector.load %arg6[%c0_114, %c0_115] : memref<2x64xf32, #tpu.memory_space<vmem>>, vector<2x64xf32>
    %210 = arith.index_cast %c5_i32 : i32 to index
    %c0_116 = arith.constant 0 : index
    %c0_117 = arith.constant 0 : index
    %211 = vector.load %arg1[%210, %c0_116, %c0_117] : memref<28x2x512xf32, #tpu.memory_space<vmem>>, vector<1x2x512xf32>
    %212 = vector.shape_cast %211 : vector<1x2x512xf32> to vector<2x512xf32>
    %c0_118 = arith.constant 0 : index
    %c0_119 = arith.constant 0 : index
    %213 = vector.load %arg2[%c0_118, %c0_119] : memref<64x512xf32, #tpu.memory_space<vmem>>, vector<64x512xf32>
    %cst_120 = arith.constant dense<0.000000e+00> : vector<2x512xf32>
    %214 = tpu.matmul %209, %213, %cst_120 {dimension_numbers = #tpu.dot_dimension_numbers<[1], [0], [0], [1], [0, 0, 1, 1], [], []>} : vector<2x64xf32>, vector<64x512xf32>, vector<2x512xf32> -> vector<2x512xf32>
    %215 = arith.addf %212, %214 : vector<2x512xf32>
    %216 = vector.extract_strided_slice %215 {offsets = [0, 0], sizes = [2, 64], strides = [1, 1]} : vector<2x512xf32> to vector<2x64xf32>
    %cst_121 = arith.constant 5.000000e-01 : f32
    %217 = vector.broadcast %cst_121 : f32 to vector<2x64xf32>
    %218 = arith.mulf %217, %216 : vector<2x64xf32>
    %219 = math.tanh %218 : vector<2x64xf32>
    %cst_122 = arith.constant 5.000000e-01 : f32
    %220 = vector.broadcast %cst_122 : f32 to vector<2x64xf32>
    %221 = arith.mulf %220, %219 : vector<2x64xf32>
    %cst_123 = arith.constant 5.000000e-01 : f32
    %222 = vector.broadcast %cst_123 : f32 to vector<2x64xf32>
    %223 = arith.addf %221, %222 : vector<2x64xf32>
    %224 = vector.extract_strided_slice %215 {offsets = [0, 128], sizes = [2, 64], strides = [1, 1]} : vector<2x512xf32> to vector<2x64xf32>
    %cst_124 = arith.constant 5.000000e-01 : f32
    %225 = vector.broadcast %cst_124 : f32 to vector<2x64xf32>
    %226 = arith.mulf %225, %224 : vector<2x64xf32>
    %227 = math.tanh %226 : vector<2x64xf32>
    %cst_125 = arith.constant 5.000000e-01 : f32
    %228 = vector.broadcast %cst_125 : f32 to vector<2x64xf32>
    %229 = arith.mulf %228, %227 : vector<2x64xf32>
    %cst_126 = arith.constant 5.000000e-01 : f32
    %230 = vector.broadcast %cst_126 : f32 to vector<2x64xf32>
    %231 = arith.addf %229, %230 : vector<2x64xf32>
    %232 = vector.extract_strided_slice %215 {offsets = [0, 256], sizes = [2, 64], strides = [1, 1]} : vector<2x512xf32> to vector<2x64xf32>
    %233 = math.tanh %232 : vector<2x64xf32>
    %234 = vector.extract_strided_slice %215 {offsets = [0, 384], sizes = [2, 64], strides = [1, 1]} : vector<2x512xf32> to vector<2x64xf32>
    %cst_127 = arith.constant 5.000000e-01 : f32
    %235 = vector.broadcast %cst_127 : f32 to vector<2x64xf32>
    %236 = arith.mulf %235, %234 : vector<2x64xf32>
    %237 = math.tanh %236 : vector<2x64xf32>
    %cst_128 = arith.constant 5.000000e-01 : f32
    %238 = vector.broadcast %cst_128 : f32 to vector<2x64xf32>
    %239 = arith.mulf %238, %237 : vector<2x64xf32>
    %cst_129 = arith.constant 5.000000e-01 : f32
    %240 = vector.broadcast %cst_129 : f32 to vector<2x64xf32>
    %241 = arith.addf %239, %240 : vector<2x64xf32>
    %c0_130 = arith.constant 0 : index
    %c0_131 = arith.constant 0 : index
    %242 = vector.load %arg7[%c0_130, %c0_131] : memref<2x64xf32, #tpu.memory_space<vmem>>, vector<2x64xf32>
    %243 = arith.mulf %231, %242 : vector<2x64xf32>
    %244 = arith.mulf %223, %233 : vector<2x64xf32>
    %245 = arith.addf %243, %244 : vector<2x64xf32>
    %c0_132 = arith.constant 0 : index
    %c0_133 = arith.constant 0 : index
    %246 = vector.load %arg7[%c0_132, %c0_133] : memref<2x64xf32, #tpu.memory_space<vmem>>, vector<2x64xf32>
    tpu.vector_store %arg7[%c0_132, %c0_133], %245 {strides = array<i32>} : memref<2x64xf32, #tpu.memory_space<vmem>>, vector<2x64xf32>,
    %247 = math.tanh %245 : vector<2x64xf32>
    %248 = arith.mulf %241, %247 : vector<2x64xf32>
    %c0_134 = arith.constant 0 : index
    %c0_135 = arith.constant 0 : index
    %249 = vector.load %arg6[%c0_134, %c0_135] : memref<2x64xf32, #tpu.memory_space<vmem>>, vector<2x64xf32>
    tpu.vector_store %arg6[%c0_134, %c0_135], %248 {strides = array<i32>} : memref<2x64xf32, #tpu.memory_space<vmem>>, vector<2x64xf32>,
    %c6_i32 = arith.constant 6 : i32
    %c0_136 = arith.constant 0 : index
    %c0_137 = arith.constant 0 : index
    %250 = vector.load %arg6[%c0_136, %c0_137] : memref<2x64xf32, #tpu.memory_space<vmem>>, vector<2x64xf32>
    %251 = arith.index_cast %c6_i32 : i32 to index
    %c0_138 = arith.constant 0 : index
    %c0_139 = arith.constant 0 : index
    %252 = vector.load %arg1[%251, %c0_138, %c0_139] : memref<28x2x512xf32, #tpu.memory_space<vmem>>, vector<1x2x512xf32>
    %253 = vector.shape_cast %252 : vector<1x2x512xf32> to vector<2x512xf32>
    %c0_140 = arith.constant 0 : index
    %c0_141 = arith.constant 0 : index
    %254 = vector.load %arg2[%c0_140, %c0_141] : memref<64x512xf32, #tpu.memory_space<vmem>>, vector<64x512xf32>
    %cst_142 = arith.constant dense<0.000000e+00> : vector<2x512xf32>
    %255 = tpu.matmul %250, %254, %cst_142 {dimension_numbers = #tpu.dot_dimension_numbers<[1], [0], [0], [1], [0, 0, 1, 1], [], []>} : vector<2x64xf32>, vector<64x512xf32>, vector<2x512xf32> -> vector<2x512xf32>
    %256 = arith.addf %253, %255 : vector<2x512xf32>
    %257 = vector.extract_strided_slice %256 {offsets = [0, 0], sizes = [2, 64], strides = [1, 1]} : vector<2x512xf32> to vector<2x64xf32>
    %cst_143 = arith.constant 5.000000e-01 : f32
    %258 = vector.broadcast %cst_143 : f32 to vector<2x64xf32>
    %259 = arith.mulf %258, %257 : vector<2x64xf32>
    %260 = math.tanh %259 : vector<2x64xf32>
    %cst_144 = arith.constant 5.000000e-01 : f32
    %261 = vector.broadcast %cst_144 : f32 to vector<2x64xf32>
    %262 = arith.mulf %261, %260 : vector<2x64xf32>
    %cst_145 = arith.constant 5.000000e-01 : f32
    %263 = vector.broadcast %cst_145 : f32 to vector<2x64xf32>
    %264 = arith.addf %262, %263 : vector<2x64xf32>
    %265 = vector.extract_strided_slice %256 {offsets = [0, 128], sizes = [2, 64], strides = [1, 1]} : vector<2x512xf32> to vector<2x64xf32>
    %cst_146 = arith.constant 5.000000e-01 : f32
    %266 = vector.broadcast %cst_146 : f32 to vector<2x64xf32>
    %267 = arith.mulf %266, %265 : vector<2x64xf32>
    %268 = math.tanh %267 : vector<2x64xf32>
    %cst_147 = arith.constant 5.000000e-01 : f32
    %269 = vector.broadcast %cst_147 : f32 to vector<2x64xf32>
    %270 = arith.mulf %269, %268 : vector<2x64xf32>
    %cst_148 = arith.constant 5.000000e-01 : f32
    %271 = vector.broadcast %cst_148 : f32 to vector<2x64xf32>
    %272 = arith.addf %270, %271 : vector<2x64xf32>
    %273 = vector.extract_strided_slice %256 {offsets = [0, 256], sizes = [2, 64], strides = [1, 1]} : vector<2x512xf32> to vector<2x64xf32>
    %274 = math.tanh %273 : vector<2x64xf32>
    %275 = vector.extract_strided_slice %256 {offsets = [0, 384], sizes = [2, 64], strides = [1, 1]} : vector<2x512xf32> to vector<2x64xf32>
    %cst_149 = arith.constant 5.000000e-01 : f32
    %276 = vector.broadcast %cst_149 : f32 to vector<2x64xf32>
    %277 = arith.mulf %276, %275 : vector<2x64xf32>
    %278 = math.tanh %277 : vector<2x64xf32>
    %cst_150 = arith.constant 5.000000e-01 : f32
    %279 = vector.broadcast %cst_150 : f32 to vector<2x64xf32>
    %280 = arith.mulf %279, %278 : vector<2x64xf32>
    %cst_151 = arith.constant 5.000000e-01 : f32
    %281 = vector.broadcast %cst_151 : f32 to vector<2x64xf32>
    %282 = arith.addf %280, %281 : vector<2x64xf32>
    %c0_152 = arith.constant 0 : index
    %c0_153 = arith.constant 0 : index
    %283 = vector.load %arg7[%c0_152, %c0_153] : memref<2x64xf32, #tpu.memory_space<vmem>>, vector<2x64xf32>
    %284 = arith.mulf %272, %283 : vector<2x64xf32>
    %285 = arith.mulf %264, %274 : vector<2x64xf32>
    %286 = arith.addf %284, %285 : vector<2x64xf32>
    %c0_154 = arith.constant 0 : index
    %c0_155 = arith.constant 0 : index
    %287 = vector.load %arg7[%c0_154, %c0_155] : memref<2x64xf32, #tpu.memory_space<vmem>>, vector<2x64xf32>
    tpu.vector_store %arg7[%c0_154, %c0_155], %286 {strides = array<i32>} : memref<2x64xf32, #tpu.memory_space<vmem>>, vector<2x64xf32>,
    %288 = math.tanh %286 : vector<2x64xf32>
    %289 = arith.mulf %282, %288 : vector<2x64xf32>
    %c0_156 = arith.constant 0 : index
    %c0_157 = arith.constant 0 : index
    %290 = vector.load %arg6[%c0_156, %c0_157] : memref<2x64xf32, #tpu.memory_space<vmem>>, vector<2x64xf32>
    tpu.vector_store %arg6[%c0_156, %c0_157], %289 {strides = array<i32>} : memref<2x64xf32, #tpu.memory_space<vmem>>, vector<2x64xf32>,
    %c7_i32 = arith.constant 7 : i32
    %c0_158 = arith.constant 0 : index
    %c0_159 = arith.constant 0 : index
    %291 = vector.load %arg6[%c0_158, %c0_159] : memref<2x64xf32, #tpu.memory_space<vmem>>, vector<2x64xf32>
    %292 = arith.index_cast %c7_i32 : i32 to index
    %c0_160 = arith.constant 0 : index
    %c0_161 = arith.constant 0 : index
    %293 = vector.load %arg1[%292, %c0_160, %c0_161] : memref<28x2x512xf32, #tpu.memory_space<vmem>>, vector<1x2x512xf32>
    %294 = vector.shape_cast %293 : vector<1x2x512xf32> to vector<2x512xf32>
    %c0_162 = arith.constant 0 : index
    %c0_163 = arith.constant 0 : index
    %295 = vector.load %arg2[%c0_162, %c0_163] : memref<64x512xf32, #tpu.memory_space<vmem>>, vector<64x512xf32>
    %cst_164 = arith.constant dense<0.000000e+00> : vector<2x512xf32>
    %296 = tpu.matmul %291, %295, %cst_164 {dimension_numbers = #tpu.dot_dimension_numbers<[1], [0], [0], [1], [0, 0, 1, 1], [], []>} : vector<2x64xf32>, vector<64x512xf32>, vector<2x512xf32> -> vector<2x512xf32>
    %297 = arith.addf %294, %296 : vector<2x512xf32>
    %298 = vector.extract_strided_slice %297 {offsets = [0, 0], sizes = [2, 64], strides = [1, 1]} : vector<2x512xf32> to vector<2x64xf32>
    %cst_165 = arith.constant 5.000000e-01 : f32
    %299 = vector.broadcast %cst_165 : f32 to vector<2x64xf32>
    %300 = arith.mulf %299, %298 : vector<2x64xf32>
    %301 = math.tanh %300 : vector<2x64xf32>
    %cst_166 = arith.constant 5.000000e-01 : f32
    %302 = vector.broadcast %cst_166 : f32 to vector<2x64xf32>
    %303 = arith.mulf %302, %301 : vector<2x64xf32>
    %cst_167 = arith.constant 5.000000e-01 : f32
    %304 = vector.broadcast %cst_167 : f32 to vector<2x64xf32>
    %305 = arith.addf %303, %304 : vector<2x64xf32>
    %306 = vector.extract_strided_slice %297 {offsets = [0, 128], sizes = [2, 64], strides = [1, 1]} : vector<2x512xf32> to vector<2x64xf32>
    %cst_168 = arith.constant 5.000000e-01 : f32
    %307 = vector.broadcast %cst_168 : f32 to vector<2x64xf32>
    %308 = arith.mulf %307, %306 : vector<2x64xf32>
    %309 = math.tanh %308 : vector<2x64xf32>
    %cst_169 = arith.constant 5.000000e-01 : f32
    %310 = vector.broadcast %cst_169 : f32 to vector<2x64xf32>
    %311 = arith.mulf %310, %309 : vector<2x64xf32>
    %cst_170 = arith.constant 5.000000e-01 : f32
    %312 = vector.broadcast %cst_170 : f32 to vector<2x64xf32>
    %313 = arith.addf %311, %312 : vector<2x64xf32>
    %314 = vector.extract_strided_slice %297 {offsets = [0, 256], sizes = [2, 64], strides = [1, 1]} : vector<2x512xf32> to vector<2x64xf32>
    %315 = math.tanh %314 : vector<2x64xf32>
    %316 = vector.extract_strided_slice %297 {offsets = [0, 384], sizes = [2, 64], strides = [1, 1]} : vector<2x512xf32> to vector<2x64xf32>
    %cst_171 = arith.constant 5.000000e-01 : f32
    %317 = vector.broadcast %cst_171 : f32 to vector<2x64xf32>
    %318 = arith.mulf %317, %316 : vector<2x64xf32>
    %319 = math.tanh %318 : vector<2x64xf32>
    %cst_172 = arith.constant 5.000000e-01 : f32
    %320 = vector.broadcast %cst_172 : f32 to vector<2x64xf32>
    %321 = arith.mulf %320, %319 : vector<2x64xf32>
    %cst_173 = arith.constant 5.000000e-01 : f32
    %322 = vector.broadcast %cst_173 : f32 to vector<2x64xf32>
    %323 = arith.addf %321, %322 : vector<2x64xf32>
    %c0_174 = arith.constant 0 : index
    %c0_175 = arith.constant 0 : index
    %324 = vector.load %arg7[%c0_174, %c0_175] : memref<2x64xf32, #tpu.memory_space<vmem>>, vector<2x64xf32>
    %325 = arith.mulf %313, %324 : vector<2x64xf32>
    %326 = arith.mulf %305, %315 : vector<2x64xf32>
    %327 = arith.addf %325, %326 : vector<2x64xf32>
    %c0_176 = arith.constant 0 : index
    %c0_177 = arith.constant 0 : index
    %328 = vector.load %arg7[%c0_176, %c0_177] : memref<2x64xf32, #tpu.memory_space<vmem>>, vector<2x64xf32>
    tpu.vector_store %arg7[%c0_176, %c0_177], %327 {strides = array<i32>} : memref<2x64xf32, #tpu.memory_space<vmem>>, vector<2x64xf32>,
    %329 = math.tanh %327 : vector<2x64xf32>
    %330 = arith.mulf %323, %329 : vector<2x64xf32>
    %c0_178 = arith.constant 0 : index
    %c0_179 = arith.constant 0 : index
    %331 = vector.load %arg6[%c0_178, %c0_179] : memref<2x64xf32, #tpu.memory_space<vmem>>, vector<2x64xf32>
    tpu.vector_store %arg6[%c0_178, %c0_179], %330 {strides = array<i32>} : memref<2x64xf32, #tpu.memory_space<vmem>>, vector<2x64xf32>,
    %c8_i32 = arith.constant 8 : i32
    %c0_180 = arith.constant 0 : index
    %c0_181 = arith.constant 0 : index
    %332 = vector.load %arg6[%c0_180, %c0_181] : memref<2x64xf32, #tpu.memory_space<vmem>>, vector<2x64xf32>
    %333 = arith.index_cast %c8_i32 : i32 to index
    %c0_182 = arith.constant 0 : index
    %c0_183 = arith.constant 0 : index
    %334 = vector.load %arg1[%333, %c0_182, %c0_183] : memref<28x2x512xf32, #tpu.memory_space<vmem>>, vector<1x2x512xf32>
    %335 = vector.shape_cast %334 : vector<1x2x512xf32> to vector<2x512xf32>
    %c0_184 = arith.constant 0 : index
    %c0_185 = arith.constant 0 : index
    %336 = vector.load %arg2[%c0_184, %c0_185] : memref<64x512xf32, #tpu.memory_space<vmem>>, vector<64x512xf32>
    %cst_186 = arith.constant dense<0.000000e+00> : vector<2x512xf32>
    %337 = tpu.matmul %332, %336, %cst_186 {dimension_numbers = #tpu.dot_dimension_numbers<[1], [0], [0], [1], [0, 0, 1, 1], [], []>} : vector<2x64xf32>, vector<64x512xf32>, vector<2x512xf32> -> vector<2x512xf32>
    %338 = arith.addf %335, %337 : vector<2x512xf32>
    %339 = vector.extract_strided_slice %338 {offsets = [0, 0], sizes = [2, 64], strides = [1, 1]} : vector<2x512xf32> to vector<2x64xf32>
    %cst_187 = arith.constant 5.000000e-01 : f32
    %340 = vector.broadcast %cst_187 : f32 to vector<2x64xf32>
    %341 = arith.mulf %340, %339 : vector<2x64xf32>
    %342 = math.tanh %341 : vector<2x64xf32>
    %cst_188 = arith.constant 5.000000e-01 : f32
    %343 = vector.broadcast %cst_188 : f32 to vector<2x64xf32>
    %344 = arith.mulf %343, %342 : vector<2x64xf32>
    %cst_189 = arith.constant 5.000000e-01 : f32
    %345 = vector.broadcast %cst_189 : f32 to vector<2x64xf32>
    %346 = arith.addf %344, %345 : vector<2x64xf32>
    %347 = vector.extract_strided_slice %338 {offsets = [0, 128], sizes = [2, 64], strides = [1, 1]} : vector<2x512xf32> to vector<2x64xf32>
    %cst_190 = arith.constant 5.000000e-01 : f32
    %348 = vector.broadcast %cst_190 : f32 to vector<2x64xf32>
    %349 = arith.mulf %348, %347 : vector<2x64xf32>
    %350 = math.tanh %349 : vector<2x64xf32>
    %cst_191 = arith.constant 5.000000e-01 : f32
    %351 = vector.broadcast %cst_191 : f32 to vector<2x64xf32>
    %352 = arith.mulf %351, %350 : vector<2x64xf32>
    %cst_192 = arith.constant 5.000000e-01 : f32
    %353 = vector.broadcast %cst_192 : f32 to vector<2x64xf32>
    %354 = arith.addf %352, %353 : vector<2x64xf32>
    %355 = vector.extract_strided_slice %338 {offsets = [0, 256], sizes = [2, 64], strides = [1, 1]} : vector<2x512xf32> to vector<2x64xf32>
    %356 = math.tanh %355 : vector<2x64xf32>
    %357 = vector.extract_strided_slice %338 {offsets = [0, 384], sizes = [2, 64], strides = [1, 1]} : vector<2x512xf32> to vector<2x64xf32>
    %cst_193 = arith.constant 5.000000e-01 : f32
    %358 = vector.broadcast %cst_193 : f32 to vector<2x64xf32>
    %359 = arith.mulf %358, %357 : vector<2x64xf32>
    %360 = math.tanh %359 : vector<2x64xf32>
    %cst_194 = arith.constant 5.000000e-01 : f32
    %361 = vector.broadcast %cst_194 : f32 to vector<2x64xf32>
    %362 = arith.mulf %361, %360 : vector<2x64xf32>
    %cst_195 = arith.constant 5.000000e-01 : f32
    %363 = vector.broadcast %cst_195 : f32 to vector<2x64xf32>
    %364 = arith.addf %362, %363 : vector<2x64xf32>
    %c0_196 = arith.constant 0 : index
    %c0_197 = arith.constant 0 : index
    %365 = vector.load %arg7[%c0_196, %c0_197] : memref<2x64xf32, #tpu.memory_space<vmem>>, vector<2x64xf32>
    %366 = arith.mulf %354, %365 : vector<2x64xf32>
    %367 = arith.mulf %346, %356 : vector<2x64xf32>
    %368 = arith.addf %366, %367 : vector<2x64xf32>
    %c0_198 = arith.constant 0 : index
    %c0_199 = arith.constant 0 : index
    %369 = vector.load %arg7[%c0_198, %c0_199] : memref<2x64xf32, #tpu.memory_space<vmem>>, vector<2x64xf32>
    tpu.vector_store %arg7[%c0_198, %c0_199], %368 {strides = array<i32>} : memref<2x64xf32, #tpu.memory_space<vmem>>, vector<2x64xf32>,
    %370 = math.tanh %368 : vector<2x64xf32>
    %371 = arith.mulf %364, %370 : vector<2x64xf32>
    %c0_200 = arith.constant 0 : index
    %c0_201 = arith.constant 0 : index
    %372 = vector.load %arg6[%c0_200, %c0_201] : memref<2x64xf32, #tpu.memory_space<vmem>>, vector<2x64xf32>
    tpu.vector_store %arg6[%c0_200, %c0_201], %371 {strides = array<i32>} : memref<2x64xf32, #tpu.memory_space<vmem>>, vector<2x64xf32>,
    %c9_i32 = arith.constant 9 : i32
    %c0_202 = arith.constant 0 : index
    %c0_203 = arith.constant 0 : index
    %373 = vector.load %arg6[%c0_202, %c0_203] : memref<2x64xf32, #tpu.memory_space<vmem>>, vector<2x64xf32>
    %374 = arith.index_cast %c9_i32 : i32 to index
    %c0_204 = arith.constant 0 : index
    %c0_205 = arith.constant 0 : index
    %375 = vector.load %arg1[%374, %c0_204, %c0_205] : memref<28x2x512xf32, #tpu.memory_space<vmem>>, vector<1x2x512xf32>
    %376 = vector.shape_cast %375 : vector<1x2x512xf32> to vector<2x512xf32>
    %c0_206 = arith.constant 0 : index
    %c0_207 = arith.constant 0 : index
    %377 = vector.load %arg2[%c0_206, %c0_207] : memref<64x512xf32, #tpu.memory_space<vmem>>, vector<64x512xf32>
    %cst_208 = arith.constant dense<0.000000e+00> : vector<2x512xf32>
    %378 = tpu.matmul %373, %377, %cst_208 {dimension_numbers = #tpu.dot_dimension_numbers<[1], [0], [0], [1], [0, 0, 1, 1], [], []>} : vector<2x64xf32>, vector<64x512xf32>, vector<2x512xf32> -> vector<2x512xf32>
    %379 = arith.addf %376, %378 : vector<2x512xf32>
    %380 = vector.extract_strided_slice %379 {offsets = [0, 0], sizes = [2, 64], strides = [1, 1]} : vector<2x512xf32> to vector<2x64xf32>
    %cst_209 = arith.constant 5.000000e-01 : f32
    %381 = vector.broadcast %cst_209 : f32 to vector<2x64xf32>
    %382 = arith.mulf %381, %380 : vector<2x64xf32>
    %383 = math.tanh %382 : vector<2x64xf32>
    %cst_210 = arith.constant 5.000000e-01 : f32
    %384 = vector.broadcast %cst_210 : f32 to vector<2x64xf32>
    %385 = arith.mulf %384, %383 : vector<2x64xf32>
    %cst_211 = arith.constant 5.000000e-01 : f32
    %386 = vector.broadcast %cst_211 : f32 to vector<2x64xf32>
    %387 = arith.addf %385, %386 : vector<2x64xf32>
    %388 = vector.extract_strided_slice %379 {offsets = [0, 128], sizes = [2, 64], strides = [1, 1]} : vector<2x512xf32> to vector<2x64xf32>
    %cst_212 = arith.constant 5.000000e-01 : f32
    %389 = vector.broadcast %cst_212 : f32 to vector<2x64xf32>
    %390 = arith.mulf %389, %388 : vector<2x64xf32>
    %391 = math.tanh %390 : vector<2x64xf32>
    %cst_213 = arith.constant 5.000000e-01 : f32
    %392 = vector.broadcast %cst_213 : f32 to vector<2x64xf32>
    %393 = arith.mulf %392, %391 : vector<2x64xf32>
    %cst_214 = arith.constant 5.000000e-01 : f32
    %394 = vector.broadcast %cst_214 : f32 to vector<2x64xf32>
    %395 = arith.addf %393, %394 : vector<2x64xf32>
    %396 = vector.extract_strided_slice %379 {offsets = [0, 256], sizes = [2, 64], strides = [1, 1]} : vector<2x512xf32> to vector<2x64xf32>
    %397 = math.tanh %396 : vector<2x64xf32>
    %398 = vector.extract_strided_slice %379 {offsets = [0, 384], sizes = [2, 64], strides = [1, 1]} : vector<2x512xf32> to vector<2x64xf32>
    %cst_215 = arith.constant 5.000000e-01 : f32
    %399 = vector.broadcast %cst_215 : f32 to vector<2x64xf32>
    %400 = arith.mulf %399, %398 : vector<2x64xf32>
    %401 = math.tanh %400 : vector<2x64xf32>
    %cst_216 = arith.constant 5.000000e-01 : f32
    %402 = vector.broadcast %cst_216 : f32 to vector<2x64xf32>
    %403 = arith.mulf %402, %401 : vector<2x64xf32>
    %cst_217 = arith.constant 5.000000e-01 : f32
    %404 = vector.broadcast %cst_217 : f32 to vector<2x64xf32>
    %405 = arith.addf %403, %404 : vector<2x64xf32>
    %c0_218 = arith.constant 0 : index
    %c0_219 = arith.constant 0 : index
    %406 = vector.load %arg7[%c0_218, %c0_219] : memref<2x64xf32, #tpu.memory_space<vmem>>, vector<2x64xf32>
    %407 = arith.mulf %395, %406 : vector<2x64xf32>
    %408 = arith.mulf %387, %397 : vector<2x64xf32>
    %409 = arith.addf %407, %408 : vector<2x64xf32>
    %c0_220 = arith.constant 0 : index
    %c0_221 = arith.constant 0 : index
    %410 = vector.load %arg7[%c0_220, %c0_221] : memref<2x64xf32, #tpu.memory_space<vmem>>, vector<2x64xf32>
    tpu.vector_store %arg7[%c0_220, %c0_221], %409 {strides = array<i32>} : memref<2x64xf32, #tpu.memory_space<vmem>>, vector<2x64xf32>,
    %411 = math.tanh %409 : vector<2x64xf32>
    %412 = arith.mulf %405, %411 : vector<2x64xf32>
    %c0_222 = arith.constant 0 : index
    %c0_223 = arith.constant 0 : index
    %413 = vector.load %arg6[%c0_222, %c0_223] : memref<2x64xf32, #tpu.memory_space<vmem>>, vector<2x64xf32>
    tpu.vector_store %arg6[%c0_222, %c0_223], %412 {strides = array<i32>} : memref<2x64xf32, #tpu.memory_space<vmem>>, vector<2x64xf32>,
    %c10_i32 = arith.constant 10 : i32
    %c0_224 = arith.constant 0 : index
    %c0_225 = arith.constant 0 : index
    %414 = vector.load %arg6[%c0_224, %c0_225] : memref<2x64xf32, #tpu.memory_space<vmem>>, vector<2x64xf32>
    %415 = arith.index_cast %c10_i32 : i32 to index
    %c0_226 = arith.constant 0 : index
    %c0_227 = arith.constant 0 : index
    %416 = vector.load %arg1[%415, %c0_226, %c0_227] : memref<28x2x512xf32, #tpu.memory_space<vmem>>, vector<1x2x512xf32>
    %417 = vector.shape_cast %416 : vector<1x2x512xf32> to vector<2x512xf32>
    %c0_228 = arith.constant 0 : index
    %c0_229 = arith.constant 0 : index
    %418 = vector.load %arg2[%c0_228, %c0_229] : memref<64x512xf32, #tpu.memory_space<vmem>>, vector<64x512xf32>
    %cst_230 = arith.constant dense<0.000000e+00> : vector<2x512xf32>
    %419 = tpu.matmul %414, %418, %cst_230 {dimension_numbers = #tpu.dot_dimension_numbers<[1], [0], [0], [1], [0, 0, 1, 1], [], []>} : vector<2x64xf32>, vector<64x512xf32>, vector<2x512xf32> -> vector<2x512xf32>
    %420 = arith.addf %417, %419 : vector<2x512xf32>
    %421 = vector.extract_strided_slice %420 {offsets = [0, 0], sizes = [2, 64], strides = [1, 1]} : vector<2x512xf32> to vector<2x64xf32>
    %cst_231 = arith.constant 5.000000e-01 : f32
    %422 = vector.broadcast %cst_231 : f32 to vector<2x64xf32>
    %423 = arith.mulf %422, %421 : vector<2x64xf32>
    %424 = math.tanh %423 : vector<2x64xf32>
    %cst_232 = arith.constant 5.000000e-01 : f32
    %425 = vector.broadcast %cst_232 : f32 to vector<2x64xf32>
    %426 = arith.mulf %425, %424 : vector<2x64xf32>
    %cst_233 = arith.constant 5.000000e-01 : f32
    %427 = vector.broadcast %cst_233 : f32 to vector<2x64xf32>
    %428 = arith.addf %426, %427 : vector<2x64xf32>
    %429 = vector.extract_strided_slice %420 {offsets = [0, 128], sizes = [2, 64], strides = [1, 1]} : vector<2x512xf32> to vector<2x64xf32>
    %cst_234 = arith.constant 5.000000e-01 : f32
    %430 = vector.broadcast %cst_234 : f32 to vector<2x64xf32>
    %431 = arith.mulf %430, %429 : vector<2x64xf32>
    %432 = math.tanh %431 : vector<2x64xf32>
    %cst_235 = arith.constant 5.000000e-01 : f32
    %433 = vector.broadcast %cst_235 : f32 to vector<2x64xf32>
    %434 = arith.mulf %433, %432 : vector<2x64xf32>
    %cst_236 = arith.constant 5.000000e-01 : f32
    %435 = vector.broadcast %cst_236 : f32 to vector<2x64xf32>
    %436 = arith.addf %434, %435 : vector<2x64xf32>
    %437 = vector.extract_strided_slice %420 {offsets = [0, 256], sizes = [2, 64], strides = [1, 1]} : vector<2x512xf32> to vector<2x64xf32>
    %438 = math.tanh %437 : vector<2x64xf32>
    %439 = vector.extract_strided_slice %420 {offsets = [0, 384], sizes = [2, 64], strides = [1, 1]} : vector<2x512xf32> to vector<2x64xf32>
    %cst_237 = arith.constant 5.000000e-01 : f32
    %440 = vector.broadcast %cst_237 : f32 to vector<2x64xf32>
    %441 = arith.mulf %440, %439 : vector<2x64xf32>
    %442 = math.tanh %441 : vector<2x64xf32>
    %cst_238 = arith.constant 5.000000e-01 : f32
    %443 = vector.broadcast %cst_238 : f32 to vector<2x64xf32>
    %444 = arith.mulf %443, %442 : vector<2x64xf32>
    %cst_239 = arith.constant 5.000000e-01 : f32
    %445 = vector.broadcast %cst_239 : f32 to vector<2x64xf32>
    %446 = arith.addf %444, %445 : vector<2x64xf32>
    %c0_240 = arith.constant 0 : index
    %c0_241 = arith.constant 0 : index
    %447 = vector.load %arg7[%c0_240, %c0_241] : memref<2x64xf32, #tpu.memory_space<vmem>>, vector<2x64xf32>
    %448 = arith.mulf %436, %447 : vector<2x64xf32>
    %449 = arith.mulf %428, %438 : vector<2x64xf32>
    %450 = arith.addf %448, %449 : vector<2x64xf32>
    %c0_242 = arith.constant 0 : index
    %c0_243 = arith.constant 0 : index
    %451 = vector.load %arg7[%c0_242, %c0_243] : memref<2x64xf32, #tpu.memory_space<vmem>>, vector<2x64xf32>
    tpu.vector_store %arg7[%c0_242, %c0_243], %450 {strides = array<i32>} : memref<2x64xf32, #tpu.memory_space<vmem>>, vector<2x64xf32>,
    %452 = math.tanh %450 : vector<2x64xf32>
    %453 = arith.mulf %446, %452 : vector<2x64xf32>
    %c0_244 = arith.constant 0 : index
    %c0_245 = arith.constant 0 : index
    %454 = vector.load %arg6[%c0_244, %c0_245] : memref<2x64xf32, #tpu.memory_space<vmem>>, vector<2x64xf32>
    tpu.vector_store %arg6[%c0_244, %c0_245], %453 {strides = array<i32>} : memref<2x64xf32, #tpu.memory_space<vmem>>, vector<2x64xf32>,
    %c11_i32 = arith.constant 11 : i32
    %c0_246 = arith.constant 0 : index
    %c0_247 = arith.constant 0 : index
    %455 = vector.load %arg6[%c0_246, %c0_247] : memref<2x64xf32, #tpu.memory_space<vmem>>, vector<2x64xf32>
    %456 = arith.index_cast %c11_i32 : i32 to index
    %c0_248 = arith.constant 0 : index
    %c0_249 = arith.constant 0 : index
    %457 = vector.load %arg1[%456, %c0_248, %c0_249] : memref<28x2x512xf32, #tpu.memory_space<vmem>>, vector<1x2x512xf32>
    %458 = vector.shape_cast %457 : vector<1x2x512xf32> to vector<2x512xf32>
    %c0_250 = arith.constant 0 : index
    %c0_251 = arith.constant 0 : index
    %459 = vector.load %arg2[%c0_250, %c0_251] : memref<64x512xf32, #tpu.memory_space<vmem>>, vector<64x512xf32>
    %cst_252 = arith.constant dense<0.000000e+00> : vector<2x512xf32>
    %460 = tpu.matmul %455, %459, %cst_252 {dimension_numbers = #tpu.dot_dimension_numbers<[1], [0], [0], [1], [0, 0, 1, 1], [], []>} : vector<2x64xf32>, vector<64x512xf32>, vector<2x512xf32> -> vector<2x512xf32>
    %461 = arith.addf %458, %460 : vector<2x512xf32>
    %462 = vector.extract_strided_slice %461 {offsets = [0, 0], sizes = [2, 64], strides = [1, 1]} : vector<2x512xf32> to vector<2x64xf32>
    %cst_253 = arith.constant 5.000000e-01 : f32
    %463 = vector.broadcast %cst_253 : f32 to vector<2x64xf32>
    %464 = arith.mulf %463, %462 : vector<2x64xf32>
    %465 = math.tanh %464 : vector<2x64xf32>
    %cst_254 = arith.constant 5.000000e-01 : f32
    %466 = vector.broadcast %cst_254 : f32 to vector<2x64xf32>
    %467 = arith.mulf %466, %465 : vector<2x64xf32>
    %cst_255 = arith.constant 5.000000e-01 : f32
    %468 = vector.broadcast %cst_255 : f32 to vector<2x64xf32>
    %469 = arith.addf %467, %468 : vector<2x64xf32>
    %470 = vector.extract_strided_slice %461 {offsets = [0, 128], sizes = [2, 64], strides = [1, 1]} : vector<2x512xf32> to vector<2x64xf32>
    %cst_256 = arith.constant 5.000000e-01 : f32
    %471 = vector.broadcast %cst_256 : f32 to vector<2x64xf32>
    %472 = arith.mulf %471, %470 : vector<2x64xf32>
    %473 = math.tanh %472 : vector<2x64xf32>
    %cst_257 = arith.constant 5.000000e-01 : f32
    %474 = vector.broadcast %cst_257 : f32 to vector<2x64xf32>
    %475 = arith.mulf %474, %473 : vector<2x64xf32>
    %cst_258 = arith.constant 5.000000e-01 : f32
    %476 = vector.broadcast %cst_258 : f32 to vector<2x64xf32>
    %477 = arith.addf %475, %476 : vector<2x64xf32>
    %478 = vector.extract_strided_slice %461 {offsets = [0, 256], sizes = [2, 64], strides = [1, 1]} : vector<2x512xf32> to vector<2x64xf32>
    %479 = math.tanh %478 : vector<2x64xf32>
    %480 = vector.extract_strided_slice %461 {offsets = [0, 384], sizes = [2, 64], strides = [1, 1]} : vector<2x512xf32> to vector<2x64xf32>
    %cst_259 = arith.constant 5.000000e-01 : f32
    %481 = vector.broadcast %cst_259 : f32 to vector<2x64xf32>
    %482 = arith.mulf %481, %480 : vector<2x64xf32>
    %483 = math.tanh %482 : vector<2x64xf32>
    %cst_260 = arith.constant 5.000000e-01 : f32
    %484 = vector.broadcast %cst_260 : f32 to vector<2x64xf32>
    %485 = arith.mulf %484, %483 : vector<2x64xf32>
    %cst_261 = arith.constant 5.000000e-01 : f32
    %486 = vector.broadcast %cst_261 : f32 to vector<2x64xf32>
    %487 = arith.addf %485, %486 : vector<2x64xf32>
    %c0_262 = arith.constant 0 : index
    %c0_263 = arith.constant 0 : index
    %488 = vector.load %arg7[%c0_262, %c0_263] : memref<2x64xf32, #tpu.memory_space<vmem>>, vector<2x64xf32>
    %489 = arith.mulf %477, %488 : vector<2x64xf32>
    %490 = arith.mulf %469, %479 : vector<2x64xf32>
    %491 = arith.addf %489, %490 : vector<2x64xf32>
    %c0_264 = arith.constant 0 : index
    %c0_265 = arith.constant 0 : index
    %492 = vector.load %arg7[%c0_264, %c0_265] : memref<2x64xf32, #tpu.memory_space<vmem>>, vector<2x64xf32>
    tpu.vector_store %arg7[%c0_264, %c0_265], %491 {strides = array<i32>} : memref<2x64xf32, #tpu.memory_space<vmem>>, vector<2x64xf32>,
    %493 = math.tanh %491 : vector<2x64xf32>
    %494 = arith.mulf %487, %493 : vector<2x64xf32>
    %c0_266 = arith.constant 0 : index
    %c0_267 = arith.constant 0 : index
    %495 = vector.load %arg6[%c0_266, %c0_267] : memref<2x64xf32, #tpu.memory_space<vmem>>, vector<2x64xf32>
    tpu.vector_store %arg6[%c0_266, %c0_267], %494 {strides = array<i32>} : memref<2x64xf32, #tpu.memory_space<vmem>>, vector<2x64xf32>,
    %c12_i32 = arith.constant 12 : i32
    %c0_268 = arith.constant 0 : index
    %c0_269 = arith.constant 0 : index
    %496 = vector.load %arg6[%c0_268, %c0_269] : memref<2x64xf32, #tpu.memory_space<vmem>>, vector<2x64xf32>
    %497 = arith.index_cast %c12_i32 : i32 to index
    %c0_270 = arith.constant 0 : index
    %c0_271 = arith.constant 0 : index
    %498 = vector.load %arg1[%497, %c0_270, %c0_271] : memref<28x2x512xf32, #tpu.memory_space<vmem>>, vector<1x2x512xf32>
    %499 = vector.shape_cast %498 : vector<1x2x512xf32> to vector<2x512xf32>
    %c0_272 = arith.constant 0 : index
    %c0_273 = arith.constant 0 : index
    %500 = vector.load %arg2[%c0_272, %c0_273] : memref<64x512xf32, #tpu.memory_space<vmem>>, vector<64x512xf32>
    %cst_274 = arith.constant dense<0.000000e+00> : vector<2x512xf32>
    %501 = tpu.matmul %496, %500, %cst_274 {dimension_numbers = #tpu.dot_dimension_numbers<[1], [0], [0], [1], [0, 0, 1, 1], [], []>} : vector<2x64xf32>, vector<64x512xf32>, vector<2x512xf32> -> vector<2x512xf32>
    %502 = arith.addf %499, %501 : vector<2x512xf32>
    %503 = vector.extract_strided_slice %502 {offsets = [0, 0], sizes = [2, 64], strides = [1, 1]} : vector<2x512xf32> to vector<2x64xf32>
    %cst_275 = arith.constant 5.000000e-01 : f32
    %504 = vector.broadcast %cst_275 : f32 to vector<2x64xf32>
    %505 = arith.mulf %504, %503 : vector<2x64xf32>
    %506 = math.tanh %505 : vector<2x64xf32>
    %cst_276 = arith.constant 5.000000e-01 : f32
    %507 = vector.broadcast %cst_276 : f32 to vector<2x64xf32>
    %508 = arith.mulf %507, %506 : vector<2x64xf32>
    %cst_277 = arith.constant 5.000000e-01 : f32
    %509 = vector.broadcast %cst_277 : f32 to vector<2x64xf32>
    %510 = arith.addf %508, %509 : vector<2x64xf32>
    %511 = vector.extract_strided_slice %502 {offsets = [0, 128], sizes = [2, 64], strides = [1, 1]} : vector<2x512xf32> to vector<2x64xf32>
    %cst_278 = arith.constant 5.000000e-01 : f32
    %512 = vector.broadcast %cst_278 : f32 to vector<2x64xf32>
    %513 = arith.mulf %512, %511 : vector<2x64xf32>
    %514 = math.tanh %513 : vector<2x64xf32>
    %cst_279 = arith.constant 5.000000e-01 : f32
    %515 = vector.broadcast %cst_279 : f32 to vector<2x64xf32>
    %516 = arith.mulf %515, %514 : vector<2x64xf32>
    %cst_280 = arith.constant 5.000000e-01 : f32
    %517 = vector.broadcast %cst_280 : f32 to vector<2x64xf32>
    %518 = arith.addf %516, %517 : vector<2x64xf32>
    %519 = vector.extract_strided_slice %502 {offsets = [0, 256], sizes = [2, 64], strides = [1, 1]} : vector<2x512xf32> to vector<2x64xf32>
    %520 = math.tanh %519 : vector<2x64xf32>
    %521 = vector.extract_strided_slice %502 {offsets = [0, 384], sizes = [2, 64], strides = [1, 1]} : vector<2x512xf32> to vector<2x64xf32>
    %cst_281 = arith.constant 5.000000e-01 : f32
    %522 = vector.broadcast %cst_281 : f32 to vector<2x64xf32>
    %523 = arith.mulf %522, %521 : vector<2x64xf32>
    %524 = math.tanh %523 : vector<2x64xf32>
    %cst_282 = arith.constant 5.000000e-01 : f32
    %525 = vector.broadcast %cst_282 : f32 to vector<2x64xf32>
    %526 = arith.mulf %525, %524 : vector<2x64xf32>
    %cst_283 = arith.constant 5.000000e-01 : f32
    %527 = vector.broadcast %cst_283 : f32 to vector<2x64xf32>
    %528 = arith.addf %526, %527 : vector<2x64xf32>
    %c0_284 = arith.constant 0 : index
    %c0_285 = arith.constant 0 : index
    %529 = vector.load %arg7[%c0_284, %c0_285] : memref<2x64xf32, #tpu.memory_space<vmem>>, vector<2x64xf32>
    %530 = arith.mulf %518, %529 : vector<2x64xf32>
    %531 = arith.mulf %510, %520 : vector<2x64xf32>
    %532 = arith.addf %530, %531 : vector<2x64xf32>
    %c0_286 = arith.constant 0 : index
    %c0_287 = arith.constant 0 : index
    %533 = vector.load %arg7[%c0_286, %c0_287] : memref<2x64xf32, #tpu.memory_space<vmem>>, vector<2x64xf32>
    tpu.vector_store %arg7[%c0_286, %c0_287], %532 {strides = array<i32>} : memref<2x64xf32, #tpu.memory_space<vmem>>, vector<2x64xf32>,
    %534 = math.tanh %532 : vector<2x64xf32>
    %535 = arith.mulf %528, %534 : vector<2x64xf32>
    %c0_288 = arith.constant 0 : index
    %c0_289 = arith.constant 0 : index
    %536 = vector.load %arg6[%c0_288, %c0_289] : memref<2x64xf32, #tpu.memory_space<vmem>>, vector<2x64xf32>
    tpu.vector_store %arg6[%c0_288, %c0_289], %535 {strides = array<i32>} : memref<2x64xf32, #tpu.memory_space<vmem>>, vector<2x64xf32>,
    %c13_i32 = arith.constant 13 : i32
    %c0_290 = arith.constant 0 : index
    %c0_291 = arith.constant 0 : index
    %537 = vector.load %arg6[%c0_290, %c0_291] : memref<2x64xf32, #tpu.memory_space<vmem>>, vector<2x64xf32>
    %538 = arith.index_cast %c13_i32 : i32 to index
    %c0_292 = arith.constant 0 : index
    %c0_293 = arith.constant 0 : index
    %539 = vector.load %arg1[%538, %c0_292, %c0_293] : memref<28x2x512xf32, #tpu.memory_space<vmem>>, vector<1x2x512xf32>
    %540 = vector.shape_cast %539 : vector<1x2x512xf32> to vector<2x512xf32>
    %c0_294 = arith.constant 0 : index
    %c0_295 = arith.constant 0 : index
    %541 = vector.load %arg2[%c0_294, %c0_295] : memref<64x512xf32, #tpu.memory_space<vmem>>, vector<64x512xf32>
    %cst_296 = arith.constant dense<0.000000e+00> : vector<2x512xf32>
    %542 = tpu.matmul %537, %541, %cst_296 {dimension_numbers = #tpu.dot_dimension_numbers<[1], [0], [0], [1], [0, 0, 1, 1], [], []>} : vector<2x64xf32>, vector<64x512xf32>, vector<2x512xf32> -> vector<2x512xf32>
    %543 = arith.addf %540, %542 : vector<2x512xf32>
    %544 = vector.extract_strided_slice %543 {offsets = [0, 0], sizes = [2, 64], strides = [1, 1]} : vector<2x512xf32> to vector<2x64xf32>
    %cst_297 = arith.constant 5.000000e-01 : f32
    %545 = vector.broadcast %cst_297 : f32 to vector<2x64xf32>
    %546 = arith.mulf %545, %544 : vector<2x64xf32>
    %547 = math.tanh %546 : vector<2x64xf32>
    %cst_298 = arith.constant 5.000000e-01 : f32
    %548 = vector.broadcast %cst_298 : f32 to vector<2x64xf32>
    %549 = arith.mulf %548, %547 : vector<2x64xf32>
    %cst_299 = arith.constant 5.000000e-01 : f32
    %550 = vector.broadcast %cst_299 : f32 to vector<2x64xf32>
    %551 = arith.addf %549, %550 : vector<2x64xf32>
    %552 = vector.extract_strided_slice %543 {offsets = [0, 128], sizes = [2, 64], strides = [1, 1]} : vector<2x512xf32> to vector<2x64xf32>
    %cst_300 = arith.constant 5.000000e-01 : f32
    %553 = vector.broadcast %cst_300 : f32 to vector<2x64xf32>
    %554 = arith.mulf %553, %552 : vector<2x64xf32>
    %555 = math.tanh %554 : vector<2x64xf32>
    %cst_301 = arith.constant 5.000000e-01 : f32
    %556 = vector.broadcast %cst_301 : f32 to vector<2x64xf32>
    %557 = arith.mulf %556, %555 : vector<2x64xf32>
    %cst_302 = arith.constant 5.000000e-01 : f32
    %558 = vector.broadcast %cst_302 : f32 to vector<2x64xf32>
    %559 = arith.addf %557, %558 : vector<2x64xf32>
    %560 = vector.extract_strided_slice %543 {offsets = [0, 256], sizes = [2, 64], strides = [1, 1]} : vector<2x512xf32> to vector<2x64xf32>
    %561 = math.tanh %560 : vector<2x64xf32>
    %562 = vector.extract_strided_slice %543 {offsets = [0, 384], sizes = [2, 64], strides = [1, 1]} : vector<2x512xf32> to vector<2x64xf32>
    %cst_303 = arith.constant 5.000000e-01 : f32
    %563 = vector.broadcast %cst_303 : f32 to vector<2x64xf32>
    %564 = arith.mulf %563, %562 : vector<2x64xf32>
    %565 = math.tanh %564 : vector<2x64xf32>
    %cst_304 = arith.constant 5.000000e-01 : f32
    %566 = vector.broadcast %cst_304 : f32 to vector<2x64xf32>
    %567 = arith.mulf %566, %565 : vector<2x64xf32>
    %cst_305 = arith.constant 5.000000e-01 : f32
    %568 = vector.broadcast %cst_305 : f32 to vector<2x64xf32>
    %569 = arith.addf %567, %568 : vector<2x64xf32>
    %c0_306 = arith.constant 0 : index
    %c0_307 = arith.constant 0 : index
    %570 = vector.load %arg7[%c0_306, %c0_307] : memref<2x64xf32, #tpu.memory_space<vmem>>, vector<2x64xf32>
    %571 = arith.mulf %559, %570 : vector<2x64xf32>
    %572 = arith.mulf %551, %561 : vector<2x64xf32>
    %573 = arith.addf %571, %572 : vector<2x64xf32>
    %c0_308 = arith.constant 0 : index
    %c0_309 = arith.constant 0 : index
    %574 = vector.load %arg7[%c0_308, %c0_309] : memref<2x64xf32, #tpu.memory_space<vmem>>, vector<2x64xf32>
    tpu.vector_store %arg7[%c0_308, %c0_309], %573 {strides = array<i32>} : memref<2x64xf32, #tpu.memory_space<vmem>>, vector<2x64xf32>,
    %575 = math.tanh %573 : vector<2x64xf32>
    %576 = arith.mulf %569, %575 : vector<2x64xf32>
    %c0_310 = arith.constant 0 : index
    %c0_311 = arith.constant 0 : index
    %577 = vector.load %arg6[%c0_310, %c0_311] : memref<2x64xf32, #tpu.memory_space<vmem>>, vector<2x64xf32>
    tpu.vector_store %arg6[%c0_310, %c0_311], %576 {strides = array<i32>} : memref<2x64xf32, #tpu.memory_space<vmem>>, vector<2x64xf32>,
    %c14_i32 = arith.constant 14 : i32
    %c0_312 = arith.constant 0 : index
    %c0_313 = arith.constant 0 : index
    %578 = vector.load %arg6[%c0_312, %c0_313] : memref<2x64xf32, #tpu.memory_space<vmem>>, vector<2x64xf32>
    %579 = arith.index_cast %c14_i32 : i32 to index
    %c0_314 = arith.constant 0 : index
    %c0_315 = arith.constant 0 : index
    %580 = vector.load %arg1[%579, %c0_314, %c0_315] : memref<28x2x512xf32, #tpu.memory_space<vmem>>, vector<1x2x512xf32>
    %581 = vector.shape_cast %580 : vector<1x2x512xf32> to vector<2x512xf32>
    %c0_316 = arith.constant 0 : index
    %c0_317 = arith.constant 0 : index
    %582 = vector.load %arg2[%c0_316, %c0_317] : memref<64x512xf32, #tpu.memory_space<vmem>>, vector<64x512xf32>
    %cst_318 = arith.constant dense<0.000000e+00> : vector<2x512xf32>
    %583 = tpu.matmul %578, %582, %cst_318 {dimension_numbers = #tpu.dot_dimension_numbers<[1], [0], [0], [1], [0, 0, 1, 1], [], []>} : vector<2x64xf32>, vector<64x512xf32>, vector<2x512xf32> -> vector<2x512xf32>
    %584 = arith.addf %581, %583 : vector<2x512xf32>
    %585 = vector.extract_strided_slice %584 {offsets = [0, 0], sizes = [2, 64], strides = [1, 1]} : vector<2x512xf32> to vector<2x64xf32>
    %cst_319 = arith.constant 5.000000e-01 : f32
    %586 = vector.broadcast %cst_319 : f32 to vector<2x64xf32>
    %587 = arith.mulf %586, %585 : vector<2x64xf32>
    %588 = math.tanh %587 : vector<2x64xf32>
    %cst_320 = arith.constant 5.000000e-01 : f32
    %589 = vector.broadcast %cst_320 : f32 to vector<2x64xf32>
    %590 = arith.mulf %589, %588 : vector<2x64xf32>
    %cst_321 = arith.constant 5.000000e-01 : f32
    %591 = vector.broadcast %cst_321 : f32 to vector<2x64xf32>
    %592 = arith.addf %590, %591 : vector<2x64xf32>
    %593 = vector.extract_strided_slice %584 {offsets = [0, 128], sizes = [2, 64], strides = [1, 1]} : vector<2x512xf32> to vector<2x64xf32>
    %cst_322 = arith.constant 5.000000e-01 : f32
    %594 = vector.broadcast %cst_322 : f32 to vector<2x64xf32>
    %595 = arith.mulf %594, %593 : vector<2x64xf32>
    %596 = math.tanh %595 : vector<2x64xf32>
    %cst_323 = arith.constant 5.000000e-01 : f32
    %597 = vector.broadcast %cst_323 : f32 to vector<2x64xf32>
    %598 = arith.mulf %597, %596 : vector<2x64xf32>
    %cst_324 = arith.constant 5.000000e-01 : f32
    %599 = vector.broadcast %cst_324 : f32 to vector<2x64xf32>
    %600 = arith.addf %598, %599 : vector<2x64xf32>
    %601 = vector.extract_strided_slice %584 {offsets = [0, 256], sizes = [2, 64], strides = [1, 1]} : vector<2x512xf32> to vector<2x64xf32>
    %602 = math.tanh %601 : vector<2x64xf32>
    %603 = vector.extract_strided_slice %584 {offsets = [0, 384], sizes = [2, 64], strides = [1, 1]} : vector<2x512xf32> to vector<2x64xf32>
    %cst_325 = arith.constant 5.000000e-01 : f32
    %604 = vector.broadcast %cst_325 : f32 to vector<2x64xf32>
    %605 = arith.mulf %604, %603 : vector<2x64xf32>
    %606 = math.tanh %605 : vector<2x64xf32>
    %cst_326 = arith.constant 5.000000e-01 : f32
    %607 = vector.broadcast %cst_326 : f32 to vector<2x64xf32>
    %608 = arith.mulf %607, %606 : vector<2x64xf32>
    %cst_327 = arith.constant 5.000000e-01 : f32
    %609 = vector.broadcast %cst_327 : f32 to vector<2x64xf32>
    %610 = arith.addf %608, %609 : vector<2x64xf32>
    %c0_328 = arith.constant 0 : index
    %c0_329 = arith.constant 0 : index
    %611 = vector.load %arg7[%c0_328, %c0_329] : memref<2x64xf32, #tpu.memory_space<vmem>>, vector<2x64xf32>
    %612 = arith.mulf %600, %611 : vector<2x64xf32>
    %613 = arith.mulf %592, %602 : vector<2x64xf32>
    %614 = arith.addf %612, %613 : vector<2x64xf32>
    %c0_330 = arith.constant 0 : index
    %c0_331 = arith.constant 0 : index
    %615 = vector.load %arg7[%c0_330, %c0_331] : memref<2x64xf32, #tpu.memory_space<vmem>>, vector<2x64xf32>
    tpu.vector_store %arg7[%c0_330, %c0_331], %614 {strides = array<i32>} : memref<2x64xf32, #tpu.memory_space<vmem>>, vector<2x64xf32>,
    %616 = math.tanh %614 : vector<2x64xf32>
    %617 = arith.mulf %610, %616 : vector<2x64xf32>
    %c0_332 = arith.constant 0 : index
    %c0_333 = arith.constant 0 : index
    %618 = vector.load %arg6[%c0_332, %c0_333] : memref<2x64xf32, #tpu.memory_space<vmem>>, vector<2x64xf32>
    tpu.vector_store %arg6[%c0_332, %c0_333], %617 {strides = array<i32>} : memref<2x64xf32, #tpu.memory_space<vmem>>, vector<2x64xf32>,
    %c15_i32 = arith.constant 15 : i32
    %c0_334 = arith.constant 0 : index
    %c0_335 = arith.constant 0 : index
    %619 = vector.load %arg6[%c0_334, %c0_335] : memref<2x64xf32, #tpu.memory_space<vmem>>, vector<2x64xf32>
    %620 = arith.index_cast %c15_i32 : i32 to index
    %c0_336 = arith.constant 0 : index
    %c0_337 = arith.constant 0 : index
    %621 = vector.load %arg1[%620, %c0_336, %c0_337] : memref<28x2x512xf32, #tpu.memory_space<vmem>>, vector<1x2x512xf32>
    %622 = vector.shape_cast %621 : vector<1x2x512xf32> to vector<2x512xf32>
    %c0_338 = arith.constant 0 : index
    %c0_339 = arith.constant 0 : index
    %623 = vector.load %arg2[%c0_338, %c0_339] : memref<64x512xf32, #tpu.memory_space<vmem>>, vector<64x512xf32>
    %cst_340 = arith.constant dense<0.000000e+00> : vector<2x512xf32>
    %624 = tpu.matmul %619, %623, %cst_340 {dimension_numbers = #tpu.dot_dimension_numbers<[1], [0], [0], [1], [0, 0, 1, 1], [], []>} : vector<2x64xf32>, vector<64x512xf32>, vector<2x512xf32> -> vector<2x512xf32>
    %625 = arith.addf %622, %624 : vector<2x512xf32>
    %626 = vector.extract_strided_slice %625 {offsets = [0, 0], sizes = [2, 64], strides = [1, 1]} : vector<2x512xf32> to vector<2x64xf32>
    %cst_341 = arith.constant 5.000000e-01 : f32
    %627 = vector.broadcast %cst_341 : f32 to vector<2x64xf32>
    %628 = arith.mulf %627, %626 : vector<2x64xf32>
    %629 = math.tanh %628 : vector<2x64xf32>
    %cst_342 = arith.constant 5.000000e-01 : f32
    %630 = vector.broadcast %cst_342 : f32 to vector<2x64xf32>
    %631 = arith.mulf %630, %629 : vector<2x64xf32>
    %cst_343 = arith.constant 5.000000e-01 : f32
    %632 = vector.broadcast %cst_343 : f32 to vector<2x64xf32>
    %633 = arith.addf %631, %632 : vector<2x64xf32>
    %634 = vector.extract_strided_slice %625 {offsets = [0, 128], sizes = [2, 64], strides = [1, 1]} : vector<2x512xf32> to vector<2x64xf32>
    %cst_344 = arith.constant 5.000000e-01 : f32
    %635 = vector.broadcast %cst_344 : f32 to vector<2x64xf32>
    %636 = arith.mulf %635, %634 : vector<2x64xf32>
    %637 = math.tanh %636 : vector<2x64xf32>
    %cst_345 = arith.constant 5.000000e-01 : f32
    %638 = vector.broadcast %cst_345 : f32 to vector<2x64xf32>
    %639 = arith.mulf %638, %637 : vector<2x64xf32>
    %cst_346 = arith.constant 5.000000e-01 : f32
    %640 = vector.broadcast %cst_346 : f32 to vector<2x64xf32>
    %641 = arith.addf %639, %640 : vector<2x64xf32>
    %642 = vector.extract_strided_slice %625 {offsets = [0, 256], sizes = [2, 64], strides = [1, 1]} : vector<2x512xf32> to vector<2x64xf32>
    %643 = math.tanh %642 : vector<2x64xf32>
    %644 = vector.extract_strided_slice %625 {offsets = [0, 384], sizes = [2, 64], strides = [1, 1]} : vector<2x512xf32> to vector<2x64xf32>
    %cst_347 = arith.constant 5.000000e-01 : f32
    %645 = vector.broadcast %cst_347 : f32 to vector<2x64xf32>
    %646 = arith.mulf %645, %644 : vector<2x64xf32>
    %647 = math.tanh %646 : vector<2x64xf32>
    %cst_348 = arith.constant 5.000000e-01 : f32
    %648 = vector.broadcast %cst_348 : f32 to vector<2x64xf32>
    %649 = arith.mulf %648, %647 : vector<2x64xf32>
    %cst_349 = arith.constant 5.000000e-01 : f32
    %650 = vector.broadcast %cst_349 : f32 to vector<2x64xf32>
    %651 = arith.addf %649, %650 : vector<2x64xf32>
    %c0_350 = arith.constant 0 : index
    %c0_351 = arith.constant 0 : index
    %652 = vector.load %arg7[%c0_350, %c0_351] : memref<2x64xf32, #tpu.memory_space<vmem>>, vector<2x64xf32>
    %653 = arith.mulf %641, %652 : vector<2x64xf32>
    %654 = arith.mulf %633, %643 : vector<2x64xf32>
    %655 = arith.addf %653, %654 : vector<2x64xf32>
    %c0_352 = arith.constant 0 : index
    %c0_353 = arith.constant 0 : index
    %656 = vector.load %arg7[%c0_352, %c0_353] : memref<2x64xf32, #tpu.memory_space<vmem>>, vector<2x64xf32>
    tpu.vector_store %arg7[%c0_352, %c0_353], %655 {strides = array<i32>} : memref<2x64xf32, #tpu.memory_space<vmem>>, vector<2x64xf32>,
    %657 = math.tanh %655 : vector<2x64xf32>
    %658 = arith.mulf %651, %657 : vector<2x64xf32>
    %c0_354 = arith.constant 0 : index
    %c0_355 = arith.constant 0 : index
    %659 = vector.load %arg6[%c0_354, %c0_355] : memref<2x64xf32, #tpu.memory_space<vmem>>, vector<2x64xf32>
    tpu.vector_store %arg6[%c0_354, %c0_355], %658 {strides = array<i32>} : memref<2x64xf32, #tpu.memory_space<vmem>>, vector<2x64xf32>,
    %c16_i32 = arith.constant 16 : i32
    %c0_356 = arith.constant 0 : index
    %c0_357 = arith.constant 0 : index
    %660 = vector.load %arg6[%c0_356, %c0_357] : memref<2x64xf32, #tpu.memory_space<vmem>>, vector<2x64xf32>
    %661 = arith.index_cast %c16_i32 : i32 to index
    %c0_358 = arith.constant 0 : index
    %c0_359 = arith.constant 0 : index
    %662 = vector.load %arg1[%661, %c0_358, %c0_359] : memref<28x2x512xf32, #tpu.memory_space<vmem>>, vector<1x2x512xf32>
    %663 = vector.shape_cast %662 : vector<1x2x512xf32> to vector<2x512xf32>
    %c0_360 = arith.constant 0 : index
    %c0_361 = arith.constant 0 : index
    %664 = vector.load %arg2[%c0_360, %c0_361] : memref<64x512xf32, #tpu.memory_space<vmem>>, vector<64x512xf32>
    %cst_362 = arith.constant dense<0.000000e+00> : vector<2x512xf32>
    %665 = tpu.matmul %660, %664, %cst_362 {dimension_numbers = #tpu.dot_dimension_numbers<[1], [0], [0], [1], [0, 0, 1, 1], [], []>} : vector<2x64xf32>, vector<64x512xf32>, vector<2x512xf32> -> vector<2x512xf32>
    %666 = arith.addf %663, %665 : vector<2x512xf32>
    %667 = vector.extract_strided_slice %666 {offsets = [0, 0], sizes = [2, 64], strides = [1, 1]} : vector<2x512xf32> to vector<2x64xf32>
    %cst_363 = arith.constant 5.000000e-01 : f32
    %668 = vector.broadcast %cst_363 : f32 to vector<2x64xf32>
    %669 = arith.mulf %668, %667 : vector<2x64xf32>
    %670 = math.tanh %669 : vector<2x64xf32>
    %cst_364 = arith.constant 5.000000e-01 : f32
    %671 = vector.broadcast %cst_364 : f32 to vector<2x64xf32>
    %672 = arith.mulf %671, %670 : vector<2x64xf32>
    %cst_365 = arith.constant 5.000000e-01 : f32
    %673 = vector.broadcast %cst_365 : f32 to vector<2x64xf32>
    %674 = arith.addf %672, %673 : vector<2x64xf32>
    %675 = vector.extract_strided_slice %666 {offsets = [0, 128], sizes = [2, 64], strides = [1, 1]} : vector<2x512xf32> to vector<2x64xf32>
    %cst_366 = arith.constant 5.000000e-01 : f32
    %676 = vector.broadcast %cst_366 : f32 to vector<2x64xf32>
    %677 = arith.mulf %676, %675 : vector<2x64xf32>
    %678 = math.tanh %677 : vector<2x64xf32>
    %cst_367 = arith.constant 5.000000e-01 : f32
    %679 = vector.broadcast %cst_367 : f32 to vector<2x64xf32>
    %680 = arith.mulf %679, %678 : vector<2x64xf32>
    %cst_368 = arith.constant 5.000000e-01 : f32
    %681 = vector.broadcast %cst_368 : f32 to vector<2x64xf32>
    %682 = arith.addf %680, %681 : vector<2x64xf32>
    %683 = vector.extract_strided_slice %666 {offsets = [0, 256], sizes = [2, 64], strides = [1, 1]} : vector<2x512xf32> to vector<2x64xf32>
    %684 = math.tanh %683 : vector<2x64xf32>
    %685 = vector.extract_strided_slice %666 {offsets = [0, 384], sizes = [2, 64], strides = [1, 1]} : vector<2x512xf32> to vector<2x64xf32>
    %cst_369 = arith.constant 5.000000e-01 : f32
    %686 = vector.broadcast %cst_369 : f32 to vector<2x64xf32>
    %687 = arith.mulf %686, %685 : vector<2x64xf32>
    %688 = math.tanh %687 : vector<2x64xf32>
    %cst_370 = arith.constant 5.000000e-01 : f32
    %689 = vector.broadcast %cst_370 : f32 to vector<2x64xf32>
    %690 = arith.mulf %689, %688 : vector<2x64xf32>
    %cst_371 = arith.constant 5.000000e-01 : f32
    %691 = vector.broadcast %cst_371 : f32 to vector<2x64xf32>
    %692 = arith.addf %690, %691 : vector<2x64xf32>
    %c0_372 = arith.constant 0 : index
    %c0_373 = arith.constant 0 : index
    %693 = vector.load %arg7[%c0_372, %c0_373] : memref<2x64xf32, #tpu.memory_space<vmem>>, vector<2x64xf32>
    %694 = arith.mulf %682, %693 : vector<2x64xf32>
    %695 = arith.mulf %674, %684 : vector<2x64xf32>
    %696 = arith.addf %694, %695 : vector<2x64xf32>
    %c0_374 = arith.constant 0 : index
    %c0_375 = arith.constant 0 : index
    %697 = vector.load %arg7[%c0_374, %c0_375] : memref<2x64xf32, #tpu.memory_space<vmem>>, vector<2x64xf32>
    tpu.vector_store %arg7[%c0_374, %c0_375], %696 {strides = array<i32>} : memref<2x64xf32, #tpu.memory_space<vmem>>, vector<2x64xf32>,
    %698 = math.tanh %696 : vector<2x64xf32>
    %699 = arith.mulf %692, %698 : vector<2x64xf32>
    %c0_376 = arith.constant 0 : index
    %c0_377 = arith.constant 0 : index
    %700 = vector.load %arg6[%c0_376, %c0_377] : memref<2x64xf32, #tpu.memory_space<vmem>>, vector<2x64xf32>
    tpu.vector_store %arg6[%c0_376, %c0_377], %699 {strides = array<i32>} : memref<2x64xf32, #tpu.memory_space<vmem>>, vector<2x64xf32>,
    %c17_i32 = arith.constant 17 : i32
    %c0_378 = arith.constant 0 : index
    %c0_379 = arith.constant 0 : index
    %701 = vector.load %arg6[%c0_378, %c0_379] : memref<2x64xf32, #tpu.memory_space<vmem>>, vector<2x64xf32>
    %702 = arith.index_cast %c17_i32 : i32 to index
    %c0_380 = arith.constant 0 : index
    %c0_381 = arith.constant 0 : index
    %703 = vector.load %arg1[%702, %c0_380, %c0_381] : memref<28x2x512xf32, #tpu.memory_space<vmem>>, vector<1x2x512xf32>
    %704 = vector.shape_cast %703 : vector<1x2x512xf32> to vector<2x512xf32>
    %c0_382 = arith.constant 0 : index
    %c0_383 = arith.constant 0 : index
    %705 = vector.load %arg2[%c0_382, %c0_383] : memref<64x512xf32, #tpu.memory_space<vmem>>, vector<64x512xf32>
    %cst_384 = arith.constant dense<0.000000e+00> : vector<2x512xf32>
    %706 = tpu.matmul %701, %705, %cst_384 {dimension_numbers = #tpu.dot_dimension_numbers<[1], [0], [0], [1], [0, 0, 1, 1], [], []>} : vector<2x64xf32>, vector<64x512xf32>, vector<2x512xf32> -> vector<2x512xf32>
    %707 = arith.addf %704, %706 : vector<2x512xf32>
    %708 = vector.extract_strided_slice %707 {offsets = [0, 0], sizes = [2, 64], strides = [1, 1]} : vector<2x512xf32> to vector<2x64xf32>
    %cst_385 = arith.constant 5.000000e-01 : f32
    %709 = vector.broadcast %cst_385 : f32 to vector<2x64xf32>
    %710 = arith.mulf %709, %708 : vector<2x64xf32>
    %711 = math.tanh %710 : vector<2x64xf32>
    %cst_386 = arith.constant 5.000000e-01 : f32
    %712 = vector.broadcast %cst_386 : f32 to vector<2x64xf32>
    %713 = arith.mulf %712, %711 : vector<2x64xf32>
    %cst_387 = arith.constant 5.000000e-01 : f32
    %714 = vector.broadcast %cst_387 : f32 to vector<2x64xf32>
    %715 = arith.addf %713, %714 : vector<2x64xf32>
    %716 = vector.extract_strided_slice %707 {offsets = [0, 128], sizes = [2, 64], strides = [1, 1]} : vector<2x512xf32> to vector<2x64xf32>
    %cst_388 = arith.constant 5.000000e-01 : f32
    %717 = vector.broadcast %cst_388 : f32 to vector<2x64xf32>
    %718 = arith.mulf %717, %716 : vector<2x64xf32>
    %719 = math.tanh %718 : vector<2x64xf32>
    %cst_389 = arith.constant 5.000000e-01 : f32
    %720 = vector.broadcast %cst_389 : f32 to vector<2x64xf32>
    %721 = arith.mulf %720, %719 : vector<2x64xf32>
    %cst_390 = arith.constant 5.000000e-01 : f32
    %722 = vector.broadcast %cst_390 : f32 to vector<2x64xf32>
    %723 = arith.addf %721, %722 : vector<2x64xf32>
    %724 = vector.extract_strided_slice %707 {offsets = [0, 256], sizes = [2, 64], strides = [1, 1]} : vector<2x512xf32> to vector<2x64xf32>
    %725 = math.tanh %724 : vector<2x64xf32>
    %726 = vector.extract_strided_slice %707 {offsets = [0, 384], sizes = [2, 64], strides = [1, 1]} : vector<2x512xf32> to vector<2x64xf32>
    %cst_391 = arith.constant 5.000000e-01 : f32
    %727 = vector.broadcast %cst_391 : f32 to vector<2x64xf32>
    %728 = arith.mulf %727, %726 : vector<2x64xf32>
    %729 = math.tanh %728 : vector<2x64xf32>
    %cst_392 = arith.constant 5.000000e-01 : f32
    %730 = vector.broadcast %cst_392 : f32 to vector<2x64xf32>
    %731 = arith.mulf %730, %729 : vector<2x64xf32>
    %cst_393 = arith.constant 5.000000e-01 : f32
    %732 = vector.broadcast %cst_393 : f32 to vector<2x64xf32>
    %733 = arith.addf %731, %732 : vector<2x64xf32>
    %c0_394 = arith.constant 0 : index
    %c0_395 = arith.constant 0 : index
    %734 = vector.load %arg7[%c0_394, %c0_395] : memref<2x64xf32, #tpu.memory_space<vmem>>, vector<2x64xf32>
    %735 = arith.mulf %723, %734 : vector<2x64xf32>
    %736 = arith.mulf %715, %725 : vector<2x64xf32>
    %737 = arith.addf %735, %736 : vector<2x64xf32>
    %c0_396 = arith.constant 0 : index
    %c0_397 = arith.constant 0 : index
    %738 = vector.load %arg7[%c0_396, %c0_397] : memref<2x64xf32, #tpu.memory_space<vmem>>, vector<2x64xf32>
    tpu.vector_store %arg7[%c0_396, %c0_397], %737 {strides = array<i32>} : memref<2x64xf32, #tpu.memory_space<vmem>>, vector<2x64xf32>,
    %739 = math.tanh %737 : vector<2x64xf32>
    %740 = arith.mulf %733, %739 : vector<2x64xf32>
    %c0_398 = arith.constant 0 : index
    %c0_399 = arith.constant 0 : index
    %741 = vector.load %arg6[%c0_398, %c0_399] : memref<2x64xf32, #tpu.memory_space<vmem>>, vector<2x64xf32>
    tpu.vector_store %arg6[%c0_398, %c0_399], %740 {strides = array<i32>} : memref<2x64xf32, #tpu.memory_space<vmem>>, vector<2x64xf32>,
    %c18_i32 = arith.constant 18 : i32
    %c0_400 = arith.constant 0 : index
    %c0_401 = arith.constant 0 : index
    %742 = vector.load %arg6[%c0_400, %c0_401] : memref<2x64xf32, #tpu.memory_space<vmem>>, vector<2x64xf32>
    %743 = arith.index_cast %c18_i32 : i32 to index
    %c0_402 = arith.constant 0 : index
    %c0_403 = arith.constant 0 : index
    %744 = vector.load %arg1[%743, %c0_402, %c0_403] : memref<28x2x512xf32, #tpu.memory_space<vmem>>, vector<1x2x512xf32>
    %745 = vector.shape_cast %744 : vector<1x2x512xf32> to vector<2x512xf32>
    %c0_404 = arith.constant 0 : index
    %c0_405 = arith.constant 0 : index
    %746 = vector.load %arg2[%c0_404, %c0_405] : memref<64x512xf32, #tpu.memory_space<vmem>>, vector<64x512xf32>
    %cst_406 = arith.constant dense<0.000000e+00> : vector<2x512xf32>
    %747 = tpu.matmul %742, %746, %cst_406 {dimension_numbers = #tpu.dot_dimension_numbers<[1], [0], [0], [1], [0, 0, 1, 1], [], []>} : vector<2x64xf32>, vector<64x512xf32>, vector<2x512xf32> -> vector<2x512xf32>
    %748 = arith.addf %745, %747 : vector<2x512xf32>
    %749 = vector.extract_strided_slice %748 {offsets = [0, 0], sizes = [2, 64], strides = [1, 1]} : vector<2x512xf32> to vector<2x64xf32>
    %cst_407 = arith.constant 5.000000e-01 : f32
    %750 = vector.broadcast %cst_407 : f32 to vector<2x64xf32>
    %751 = arith.mulf %750, %749 : vector<2x64xf32>
    %752 = math.tanh %751 : vector<2x64xf32>
    %cst_408 = arith.constant 5.000000e-01 : f32
    %753 = vector.broadcast %cst_408 : f32 to vector<2x64xf32>
    %754 = arith.mulf %753, %752 : vector<2x64xf32>
    %cst_409 = arith.constant 5.000000e-01 : f32
    %755 = vector.broadcast %cst_409 : f32 to vector<2x64xf32>
    %756 = arith.addf %754, %755 : vector<2x64xf32>
    %757 = vector.extract_strided_slice %748 {offsets = [0, 128], sizes = [2, 64], strides = [1, 1]} : vector<2x512xf32> to vector<2x64xf32>
    %cst_410 = arith.constant 5.000000e-01 : f32
    %758 = vector.broadcast %cst_410 : f32 to vector<2x64xf32>
    %759 = arith.mulf %758, %757 : vector<2x64xf32>
    %760 = math.tanh %759 : vector<2x64xf32>
    %cst_411 = arith.constant 5.000000e-01 : f32
    %761 = vector.broadcast %cst_411 : f32 to vector<2x64xf32>
    %762 = arith.mulf %761, %760 : vector<2x64xf32>
    %cst_412 = arith.constant 5.000000e-01 : f32
    %763 = vector.broadcast %cst_412 : f32 to vector<2x64xf32>
    %764 = arith.addf %762, %763 : vector<2x64xf32>
    %765 = vector.extract_strided_slice %748 {offsets = [0, 256], sizes = [2, 64], strides = [1, 1]} : vector<2x512xf32> to vector<2x64xf32>
    %766 = math.tanh %765 : vector<2x64xf32>
    %767 = vector.extract_strided_slice %748 {offsets = [0, 384], sizes = [2, 64], strides = [1, 1]} : vector<2x512xf32> to vector<2x64xf32>
    %cst_413 = arith.constant 5.000000e-01 : f32
    %768 = vector.broadcast %cst_413 : f32 to vector<2x64xf32>
    %769 = arith.mulf %768, %767 : vector<2x64xf32>
    %770 = math.tanh %769 : vector<2x64xf32>
    %cst_414 = arith.constant 5.000000e-01 : f32
    %771 = vector.broadcast %cst_414 : f32 to vector<2x64xf32>
    %772 = arith.mulf %771, %770 : vector<2x64xf32>
    %cst_415 = arith.constant 5.000000e-01 : f32
    %773 = vector.broadcast %cst_415 : f32 to vector<2x64xf32>
    %774 = arith.addf %772, %773 : vector<2x64xf32>
    %c0_416 = arith.constant 0 : index
    %c0_417 = arith.constant 0 : index
    %775 = vector.load %arg7[%c0_416, %c0_417] : memref<2x64xf32, #tpu.memory_space<vmem>>, vector<2x64xf32>
    %776 = arith.mulf %764, %775 : vector<2x64xf32>
    %777 = arith.mulf %756, %766 : vector<2x64xf32>
    %778 = arith.addf %776, %777 : vector<2x64xf32>
    %c0_418 = arith.constant 0 : index
    %c0_419 = arith.constant 0 : index
    %779 = vector.load %arg7[%c0_418, %c0_419] : memref<2x64xf32, #tpu.memory_space<vmem>>, vector<2x64xf32>
    tpu.vector_store %arg7[%c0_418, %c0_419], %778 {strides = array<i32>} : memref<2x64xf32, #tpu.memory_space<vmem>>, vector<2x64xf32>,
    %780 = math.tanh %778 : vector<2x64xf32>
    %781 = arith.mulf %774, %780 : vector<2x64xf32>
    %c0_420 = arith.constant 0 : index
    %c0_421 = arith.constant 0 : index
    %782 = vector.load %arg6[%c0_420, %c0_421] : memref<2x64xf32, #tpu.memory_space<vmem>>, vector<2x64xf32>
    tpu.vector_store %arg6[%c0_420, %c0_421], %781 {strides = array<i32>} : memref<2x64xf32, #tpu.memory_space<vmem>>, vector<2x64xf32>,
    %c19_i32 = arith.constant 19 : i32
    %c0_422 = arith.constant 0 : index
    %c0_423 = arith.constant 0 : index
    %783 = vector.load %arg6[%c0_422, %c0_423] : memref<2x64xf32, #tpu.memory_space<vmem>>, vector<2x64xf32>
    %784 = arith.index_cast %c19_i32 : i32 to index
    %c0_424 = arith.constant 0 : index
    %c0_425 = arith.constant 0 : index
    %785 = vector.load %arg1[%784, %c0_424, %c0_425] : memref<28x2x512xf32, #tpu.memory_space<vmem>>, vector<1x2x512xf32>
    %786 = vector.shape_cast %785 : vector<1x2x512xf32> to vector<2x512xf32>
    %c0_426 = arith.constant 0 : index
    %c0_427 = arith.constant 0 : index
    %787 = vector.load %arg2[%c0_426, %c0_427] : memref<64x512xf32, #tpu.memory_space<vmem>>, vector<64x512xf32>
    %cst_428 = arith.constant dense<0.000000e+00> : vector<2x512xf32>
    %788 = tpu.matmul %783, %787, %cst_428 {dimension_numbers = #tpu.dot_dimension_numbers<[1], [0], [0], [1], [0, 0, 1, 1], [], []>} : vector<2x64xf32>, vector<64x512xf32>, vector<2x512xf32> -> vector<2x512xf32>
    %789 = arith.addf %786, %788 : vector<2x512xf32>
    %790 = vector.extract_strided_slice %789 {offsets = [0, 0], sizes = [2, 64], strides = [1, 1]} : vector<2x512xf32> to vector<2x64xf32>
    %cst_429 = arith.constant 5.000000e-01 : f32
    %791 = vector.broadcast %cst_429 : f32 to vector<2x64xf32>
    %792 = arith.mulf %791, %790 : vector<2x64xf32>
    %793 = math.tanh %792 : vector<2x64xf32>
    %cst_430 = arith.constant 5.000000e-01 : f32
    %794 = vector.broadcast %cst_430 : f32 to vector<2x64xf32>
    %795 = arith.mulf %794, %793 : vector<2x64xf32>
    %cst_431 = arith.constant 5.000000e-01 : f32
    %796 = vector.broadcast %cst_431 : f32 to vector<2x64xf32>
    %797 = arith.addf %795, %796 : vector<2x64xf32>
    %798 = vector.extract_strided_slice %789 {offsets = [0, 128], sizes = [2, 64], strides = [1, 1]} : vector<2x512xf32> to vector<2x64xf32>
    %cst_432 = arith.constant 5.000000e-01 : f32
    %799 = vector.broadcast %cst_432 : f32 to vector<2x64xf32>
    %800 = arith.mulf %799, %798 : vector<2x64xf32>
    %801 = math.tanh %800 : vector<2x64xf32>
    %cst_433 = arith.constant 5.000000e-01 : f32
    %802 = vector.broadcast %cst_433 : f32 to vector<2x64xf32>
    %803 = arith.mulf %802, %801 : vector<2x64xf32>
    %cst_434 = arith.constant 5.000000e-01 : f32
    %804 = vector.broadcast %cst_434 : f32 to vector<2x64xf32>
    %805 = arith.addf %803, %804 : vector<2x64xf32>
    %806 = vector.extract_strided_slice %789 {offsets = [0, 256], sizes = [2, 64], strides = [1, 1]} : vector<2x512xf32> to vector<2x64xf32>
    %807 = math.tanh %806 : vector<2x64xf32>
    %808 = vector.extract_strided_slice %789 {offsets = [0, 384], sizes = [2, 64], strides = [1, 1]} : vector<2x512xf32> to vector<2x64xf32>
    %cst_435 = arith.constant 5.000000e-01 : f32
    %809 = vector.broadcast %cst_435 : f32 to vector<2x64xf32>
    %810 = arith.mulf %809, %808 : vector<2x64xf32>
    %811 = math.tanh %810 : vector<2x64xf32>
    %cst_436 = arith.constant 5.000000e-01 : f32
    %812 = vector.broadcast %cst_436 : f32 to vector<2x64xf32>
    %813 = arith.mulf %812, %811 : vector<2x64xf32>
    %cst_437 = arith.constant 5.000000e-01 : f32
    %814 = vector.broadcast %cst_437 : f32 to vector<2x64xf32>
    %815 = arith.addf %813, %814 : vector<2x64xf32>
    %c0_438 = arith.constant 0 : index
    %c0_439 = arith.constant 0 : index
    %816 = vector.load %arg7[%c0_438, %c0_439] : memref<2x64xf32, #tpu.memory_space<vmem>>, vector<2x64xf32>
    %817 = arith.mulf %805, %816 : vector<2x64xf32>
    %818 = arith.mulf %797, %807 : vector<2x64xf32>
    %819 = arith.addf %817, %818 : vector<2x64xf32>
    %c0_440 = arith.constant 0 : index
    %c0_441 = arith.constant 0 : index
    %820 = vector.load %arg7[%c0_440, %c0_441] : memref<2x64xf32, #tpu.memory_space<vmem>>, vector<2x64xf32>
    tpu.vector_store %arg7[%c0_440, %c0_441], %819 {strides = array<i32>} : memref<2x64xf32, #tpu.memory_space<vmem>>, vector<2x64xf32>,
    %821 = math.tanh %819 : vector<2x64xf32>
    %822 = arith.mulf %815, %821 : vector<2x64xf32>
    %c0_442 = arith.constant 0 : index
    %c0_443 = arith.constant 0 : index
    %823 = vector.load %arg6[%c0_442, %c0_443] : memref<2x64xf32, #tpu.memory_space<vmem>>, vector<2x64xf32>
    tpu.vector_store %arg6[%c0_442, %c0_443], %822 {strides = array<i32>} : memref<2x64xf32, #tpu.memory_space<vmem>>, vector<2x64xf32>,
    %c20_i32 = arith.constant 20 : i32
    %c0_444 = arith.constant 0 : index
    %c0_445 = arith.constant 0 : index
    %824 = vector.load %arg6[%c0_444, %c0_445] : memref<2x64xf32, #tpu.memory_space<vmem>>, vector<2x64xf32>
    %825 = arith.index_cast %c20_i32 : i32 to index
    %c0_446 = arith.constant 0 : index
    %c0_447 = arith.constant 0 : index
    %826 = vector.load %arg1[%825, %c0_446, %c0_447] : memref<28x2x512xf32, #tpu.memory_space<vmem>>, vector<1x2x512xf32>
    %827 = vector.shape_cast %826 : vector<1x2x512xf32> to vector<2x512xf32>
    %c0_448 = arith.constant 0 : index
    %c0_449 = arith.constant 0 : index
    %828 = vector.load %arg2[%c0_448, %c0_449] : memref<64x512xf32, #tpu.memory_space<vmem>>, vector<64x512xf32>
    %cst_450 = arith.constant dense<0.000000e+00> : vector<2x512xf32>
    %829 = tpu.matmul %824, %828, %cst_450 {dimension_numbers = #tpu.dot_dimension_numbers<[1], [0], [0], [1], [0, 0, 1, 1], [], []>} : vector<2x64xf32>, vector<64x512xf32>, vector<2x512xf32> -> vector<2x512xf32>
    %830 = arith.addf %827, %829 : vector<2x512xf32>
    %831 = vector.extract_strided_slice %830 {offsets = [0, 0], sizes = [2, 64], strides = [1, 1]} : vector<2x512xf32> to vector<2x64xf32>
    %cst_451 = arith.constant 5.000000e-01 : f32
    %832 = vector.broadcast %cst_451 : f32 to vector<2x64xf32>
    %833 = arith.mulf %832, %831 : vector<2x64xf32>
    %834 = math.tanh %833 : vector<2x64xf32>
    %cst_452 = arith.constant 5.000000e-01 : f32
    %835 = vector.broadcast %cst_452 : f32 to vector<2x64xf32>
    %836 = arith.mulf %835, %834 : vector<2x64xf32>
    %cst_453 = arith.constant 5.000000e-01 : f32
    %837 = vector.broadcast %cst_453 : f32 to vector<2x64xf32>
    %838 = arith.addf %836, %837 : vector<2x64xf32>
    %839 = vector.extract_strided_slice %830 {offsets = [0, 128], sizes = [2, 64], strides = [1, 1]} : vector<2x512xf32> to vector<2x64xf32>
    %cst_454 = arith.constant 5.000000e-01 : f32
    %840 = vector.broadcast %cst_454 : f32 to vector<2x64xf32>
    %841 = arith.mulf %840, %839 : vector<2x64xf32>
    %842 = math.tanh %841 : vector<2x64xf32>
    %cst_455 = arith.constant 5.000000e-01 : f32
    %843 = vector.broadcast %cst_455 : f32 to vector<2x64xf32>
    %844 = arith.mulf %843, %842 : vector<2x64xf32>
    %cst_456 = arith.constant 5.000000e-01 : f32
    %845 = vector.broadcast %cst_456 : f32 to vector<2x64xf32>
    %846 = arith.addf %844, %845 : vector<2x64xf32>
    %847 = vector.extract_strided_slice %830 {offsets = [0, 256], sizes = [2, 64], strides = [1, 1]} : vector<2x512xf32> to vector<2x64xf32>
    %848 = math.tanh %847 : vector<2x64xf32>
    %849 = vector.extract_strided_slice %830 {offsets = [0, 384], sizes = [2, 64], strides = [1, 1]} : vector<2x512xf32> to vector<2x64xf32>
    %cst_457 = arith.constant 5.000000e-01 : f32
    %850 = vector.broadcast %cst_457 : f32 to vector<2x64xf32>
    %851 = arith.mulf %850, %849 : vector<2x64xf32>
    %852 = math.tanh %851 : vector<2x64xf32>
    %cst_458 = arith.constant 5.000000e-01 : f32
    %853 = vector.broadcast %cst_458 : f32 to vector<2x64xf32>
    %854 = arith.mulf %853, %852 : vector<2x64xf32>
    %cst_459 = arith.constant 5.000000e-01 : f32
    %855 = vector.broadcast %cst_459 : f32 to vector<2x64xf32>
    %856 = arith.addf %854, %855 : vector<2x64xf32>
    %c0_460 = arith.constant 0 : index
    %c0_461 = arith.constant 0 : index
    %857 = vector.load %arg7[%c0_460, %c0_461] : memref<2x64xf32, #tpu.memory_space<vmem>>, vector<2x64xf32>
    %858 = arith.mulf %846, %857 : vector<2x64xf32>
    %859 = arith.mulf %838, %848 : vector<2x64xf32>
    %860 = arith.addf %858, %859 : vector<2x64xf32>
    %c0_462 = arith.constant 0 : index
    %c0_463 = arith.constant 0 : index
    %861 = vector.load %arg7[%c0_462, %c0_463] : memref<2x64xf32, #tpu.memory_space<vmem>>, vector<2x64xf32>
    tpu.vector_store %arg7[%c0_462, %c0_463], %860 {strides = array<i32>} : memref<2x64xf32, #tpu.memory_space<vmem>>, vector<2x64xf32>,
    %862 = math.tanh %860 : vector<2x64xf32>
    %863 = arith.mulf %856, %862 : vector<2x64xf32>
    %c0_464 = arith.constant 0 : index
    %c0_465 = arith.constant 0 : index
    %864 = vector.load %arg6[%c0_464, %c0_465] : memref<2x64xf32, #tpu.memory_space<vmem>>, vector<2x64xf32>
    tpu.vector_store %arg6[%c0_464, %c0_465], %863 {strides = array<i32>} : memref<2x64xf32, #tpu.memory_space<vmem>>, vector<2x64xf32>,
    %c21_i32 = arith.constant 21 : i32
    %c0_466 = arith.constant 0 : index
    %c0_467 = arith.constant 0 : index
    %865 = vector.load %arg6[%c0_466, %c0_467] : memref<2x64xf32, #tpu.memory_space<vmem>>, vector<2x64xf32>
    %866 = arith.index_cast %c21_i32 : i32 to index
    %c0_468 = arith.constant 0 : index
    %c0_469 = arith.constant 0 : index
    %867 = vector.load %arg1[%866, %c0_468, %c0_469] : memref<28x2x512xf32, #tpu.memory_space<vmem>>, vector<1x2x512xf32>
    %868 = vector.shape_cast %867 : vector<1x2x512xf32> to vector<2x512xf32>
    %c0_470 = arith.constant 0 : index
    %c0_471 = arith.constant 0 : index
    %869 = vector.load %arg2[%c0_470, %c0_471] : memref<64x512xf32, #tpu.memory_space<vmem>>, vector<64x512xf32>
    %cst_472 = arith.constant dense<0.000000e+00> : vector<2x512xf32>
    %870 = tpu.matmul %865, %869, %cst_472 {dimension_numbers = #tpu.dot_dimension_numbers<[1], [0], [0], [1], [0, 0, 1, 1], [], []>} : vector<2x64xf32>, vector<64x512xf32>, vector<2x512xf32> -> vector<2x512xf32>
    %871 = arith.addf %868, %870 : vector<2x512xf32>
    %872 = vector.extract_strided_slice %871 {offsets = [0, 0], sizes = [2, 64], strides = [1, 1]} : vector<2x512xf32> to vector<2x64xf32>
    %cst_473 = arith.constant 5.000000e-01 : f32
    %873 = vector.broadcast %cst_473 : f32 to vector<2x64xf32>
    %874 = arith.mulf %873, %872 : vector<2x64xf32>
    %875 = math.tanh %874 : vector<2x64xf32>
    %cst_474 = arith.constant 5.000000e-01 : f32
    %876 = vector.broadcast %cst_474 : f32 to vector<2x64xf32>
    %877 = arith.mulf %876, %875 : vector<2x64xf32>
    %cst_475 = arith.constant 5.000000e-01 : f32
    %878 = vector.broadcast %cst_475 : f32 to vector<2x64xf32>
    %879 = arith.addf %877, %878 : vector<2x64xf32>
    %880 = vector.extract_strided_slice %871 {offsets = [0, 128], sizes = [2, 64], strides = [1, 1]} : vector<2x512xf32> to vector<2x64xf32>
    %cst_476 = arith.constant 5.000000e-01 : f32
    %881 = vector.broadcast %cst_476 : f32 to vector<2x64xf32>
    %882 = arith.mulf %881, %880 : vector<2x64xf32>
    %883 = math.tanh %882 : vector<2x64xf32>
    %cst_477 = arith.constant 5.000000e-01 : f32
    %884 = vector.broadcast %cst_477 : f32 to vector<2x64xf32>
    %885 = arith.mulf %884, %883 : vector<2x64xf32>
    %cst_478 = arith.constant 5.000000e-01 : f32
    %886 = vector.broadcast %cst_478 : f32 to vector<2x64xf32>
    %887 = arith.addf %885, %886 : vector<2x64xf32>
    %888 = vector.extract_strided_slice %871 {offsets = [0, 256], sizes = [2, 64], strides = [1, 1]} : vector<2x512xf32> to vector<2x64xf32>
    %889 = math.tanh %888 : vector<2x64xf32>
    %890 = vector.extract_strided_slice %871 {offsets = [0, 384], sizes = [2, 64], strides = [1, 1]} : vector<2x512xf32> to vector<2x64xf32>
    %cst_479 = arith.constant 5.000000e-01 : f32
    %891 = vector.broadcast %cst_479 : f32 to vector<2x64xf32>
    %892 = arith.mulf %891, %890 : vector<2x64xf32>
    %893 = math.tanh %892 : vector<2x64xf32>
    %cst_480 = arith.constant 5.000000e-01 : f32
    %894 = vector.broadcast %cst_480 : f32 to vector<2x64xf32>
    %895 = arith.mulf %894, %893 : vector<2x64xf32>
    %cst_481 = arith.constant 5.000000e-01 : f32
    %896 = vector.broadcast %cst_481 : f32 to vector<2x64xf32>
    %897 = arith.addf %895, %896 : vector<2x64xf32>
    %c0_482 = arith.constant 0 : index
    %c0_483 = arith.constant 0 : index
    %898 = vector.load %arg7[%c0_482, %c0_483] : memref<2x64xf32, #tpu.memory_space<vmem>>, vector<2x64xf32>
    %899 = arith.mulf %887, %898 : vector<2x64xf32>
    %900 = arith.mulf %879, %889 : vector<2x64xf32>
    %901 = arith.addf %899, %900 : vector<2x64xf32>
    %c0_484 = arith.constant 0 : index
    %c0_485 = arith.constant 0 : index
    %902 = vector.load %arg7[%c0_484, %c0_485] : memref<2x64xf32, #tpu.memory_space<vmem>>, vector<2x64xf32>
    tpu.vector_store %arg7[%c0_484, %c0_485], %901 {strides = array<i32>} : memref<2x64xf32, #tpu.memory_space<vmem>>, vector<2x64xf32>,
    %903 = math.tanh %901 : vector<2x64xf32>
    %904 = arith.mulf %897, %903 : vector<2x64xf32>
    %c0_486 = arith.constant 0 : index
    %c0_487 = arith.constant 0 : index
    %905 = vector.load %arg6[%c0_486, %c0_487] : memref<2x64xf32, #tpu.memory_space<vmem>>, vector<2x64xf32>
    tpu.vector_store %arg6[%c0_486, %c0_487], %904 {strides = array<i32>} : memref<2x64xf32, #tpu.memory_space<vmem>>, vector<2x64xf32>,
    %c22_i32 = arith.constant 22 : i32
    %c0_488 = arith.constant 0 : index
    %c0_489 = arith.constant 0 : index
    %906 = vector.load %arg6[%c0_488, %c0_489] : memref<2x64xf32, #tpu.memory_space<vmem>>, vector<2x64xf32>
    %907 = arith.index_cast %c22_i32 : i32 to index
    %c0_490 = arith.constant 0 : index
    %c0_491 = arith.constant 0 : index
    %908 = vector.load %arg1[%907, %c0_490, %c0_491] : memref<28x2x512xf32, #tpu.memory_space<vmem>>, vector<1x2x512xf32>
    %909 = vector.shape_cast %908 : vector<1x2x512xf32> to vector<2x512xf32>
    %c0_492 = arith.constant 0 : index
    %c0_493 = arith.constant 0 : index
    %910 = vector.load %arg2[%c0_492, %c0_493] : memref<64x512xf32, #tpu.memory_space<vmem>>, vector<64x512xf32>
    %cst_494 = arith.constant dense<0.000000e+00> : vector<2x512xf32>
    %911 = tpu.matmul %906, %910, %cst_494 {dimension_numbers = #tpu.dot_dimension_numbers<[1], [0], [0], [1], [0, 0, 1, 1], [], []>} : vector<2x64xf32>, vector<64x512xf32>, vector<2x512xf32> -> vector<2x512xf32>
    %912 = arith.addf %909, %911 : vector<2x512xf32>
    %913 = vector.extract_strided_slice %912 {offsets = [0, 0], sizes = [2, 64], strides = [1, 1]} : vector<2x512xf32> to vector<2x64xf32>
    %cst_495 = arith.constant 5.000000e-01 : f32
    %914 = vector.broadcast %cst_495 : f32 to vector<2x64xf32>
    %915 = arith.mulf %914, %913 : vector<2x64xf32>
    %916 = math.tanh %915 : vector<2x64xf32>
    %cst_496 = arith.constant 5.000000e-01 : f32
    %917 = vector.broadcast %cst_496 : f32 to vector<2x64xf32>
    %918 = arith.mulf %917, %916 : vector<2x64xf32>
    %cst_497 = arith.constant 5.000000e-01 : f32
    %919 = vector.broadcast %cst_497 : f32 to vector<2x64xf32>
    %920 = arith.addf %918, %919 : vector<2x64xf32>
    %921 = vector.extract_strided_slice %912 {offsets = [0, 128], sizes = [2, 64], strides = [1, 1]} : vector<2x512xf32> to vector<2x64xf32>
    %cst_498 = arith.constant 5.000000e-01 : f32
    %922 = vector.broadcast %cst_498 : f32 to vector<2x64xf32>
    %923 = arith.mulf %922, %921 : vector<2x64xf32>
    %924 = math.tanh %923 : vector<2x64xf32>
    %cst_499 = arith.constant 5.000000e-01 : f32
    %925 = vector.broadcast %cst_499 : f32 to vector<2x64xf32>
    %926 = arith.mulf %925, %924 : vector<2x64xf32>
    %cst_500 = arith.constant 5.000000e-01 : f32
    %927 = vector.broadcast %cst_500 : f32 to vector<2x64xf32>
    %928 = arith.addf %926, %927 : vector<2x64xf32>
    %929 = vector.extract_strided_slice %912 {offsets = [0, 256], sizes = [2, 64], strides = [1, 1]} : vector<2x512xf32> to vector<2x64xf32>
    %930 = math.tanh %929 : vector<2x64xf32>
    %931 = vector.extract_strided_slice %912 {offsets = [0, 384], sizes = [2, 64], strides = [1, 1]} : vector<2x512xf32> to vector<2x64xf32>
    %cst_501 = arith.constant 5.000000e-01 : f32
    %932 = vector.broadcast %cst_501 : f32 to vector<2x64xf32>
    %933 = arith.mulf %932, %931 : vector<2x64xf32>
    %934 = math.tanh %933 : vector<2x64xf32>
    %cst_502 = arith.constant 5.000000e-01 : f32
    %935 = vector.broadcast %cst_502 : f32 to vector<2x64xf32>
    %936 = arith.mulf %935, %934 : vector<2x64xf32>
    %cst_503 = arith.constant 5.000000e-01 : f32
    %937 = vector.broadcast %cst_503 : f32 to vector<2x64xf32>
    %938 = arith.addf %936, %937 : vector<2x64xf32>
    %c0_504 = arith.constant 0 : index
    %c0_505 = arith.constant 0 : index
    %939 = vector.load %arg7[%c0_504, %c0_505] : memref<2x64xf32, #tpu.memory_space<vmem>>, vector<2x64xf32>
    %940 = arith.mulf %928, %939 : vector<2x64xf32>
    %941 = arith.mulf %920, %930 : vector<2x64xf32>
    %942 = arith.addf %940, %941 : vector<2x64xf32>
    %c0_506 = arith.constant 0 : index
    %c0_507 = arith.constant 0 : index
    %943 = vector.load %arg7[%c0_506, %c0_507] : memref<2x64xf32, #tpu.memory_space<vmem>>, vector<2x64xf32>
    tpu.vector_store %arg7[%c0_506, %c0_507], %942 {strides = array<i32>} : memref<2x64xf32, #tpu.memory_space<vmem>>, vector<2x64xf32>,
    %944 = math.tanh %942 : vector<2x64xf32>
    %945 = arith.mulf %938, %944 : vector<2x64xf32>
    %c0_508 = arith.constant 0 : index
    %c0_509 = arith.constant 0 : index
    %946 = vector.load %arg6[%c0_508, %c0_509] : memref<2x64xf32, #tpu.memory_space<vmem>>, vector<2x64xf32>
    tpu.vector_store %arg6[%c0_508, %c0_509], %945 {strides = array<i32>} : memref<2x64xf32, #tpu.memory_space<vmem>>, vector<2x64xf32>,
    %c23_i32 = arith.constant 23 : i32
    %c0_510 = arith.constant 0 : index
    %c0_511 = arith.constant 0 : index
    %947 = vector.load %arg6[%c0_510, %c0_511] : memref<2x64xf32, #tpu.memory_space<vmem>>, vector<2x64xf32>
    %948 = arith.index_cast %c23_i32 : i32 to index
    %c0_512 = arith.constant 0 : index
    %c0_513 = arith.constant 0 : index
    %949 = vector.load %arg1[%948, %c0_512, %c0_513] : memref<28x2x512xf32, #tpu.memory_space<vmem>>, vector<1x2x512xf32>
    %950 = vector.shape_cast %949 : vector<1x2x512xf32> to vector<2x512xf32>
    %c0_514 = arith.constant 0 : index
    %c0_515 = arith.constant 0 : index
    %951 = vector.load %arg2[%c0_514, %c0_515] : memref<64x512xf32, #tpu.memory_space<vmem>>, vector<64x512xf32>
    %cst_516 = arith.constant dense<0.000000e+00> : vector<2x512xf32>
    %952 = tpu.matmul %947, %951, %cst_516 {dimension_numbers = #tpu.dot_dimension_numbers<[1], [0], [0], [1], [0, 0, 1, 1], [], []>} : vector<2x64xf32>, vector<64x512xf32>, vector<2x512xf32> -> vector<2x512xf32>
    %953 = arith.addf %950, %952 : vector<2x512xf32>
    %954 = vector.extract_strided_slice %953 {offsets = [0, 0], sizes = [2, 64], strides = [1, 1]} : vector<2x512xf32> to vector<2x64xf32>
    %cst_517 = arith.constant 5.000000e-01 : f32
    %955 = vector.broadcast %cst_517 : f32 to vector<2x64xf32>
    %956 = arith.mulf %955, %954 : vector<2x64xf32>
    %957 = math.tanh %956 : vector<2x64xf32>
    %cst_518 = arith.constant 5.000000e-01 : f32
    %958 = vector.broadcast %cst_518 : f32 to vector<2x64xf32>
    %959 = arith.mulf %958, %957 : vector<2x64xf32>
    %cst_519 = arith.constant 5.000000e-01 : f32
    %960 = vector.broadcast %cst_519 : f32 to vector<2x64xf32>
    %961 = arith.addf %959, %960 : vector<2x64xf32>
    %962 = vector.extract_strided_slice %953 {offsets = [0, 128], sizes = [2, 64], strides = [1, 1]} : vector<2x512xf32> to vector<2x64xf32>
    %cst_520 = arith.constant 5.000000e-01 : f32
    %963 = vector.broadcast %cst_520 : f32 to vector<2x64xf32>
    %964 = arith.mulf %963, %962 : vector<2x64xf32>
    %965 = math.tanh %964 : vector<2x64xf32>
    %cst_521 = arith.constant 5.000000e-01 : f32
    %966 = vector.broadcast %cst_521 : f32 to vector<2x64xf32>
    %967 = arith.mulf %966, %965 : vector<2x64xf32>
    %cst_522 = arith.constant 5.000000e-01 : f32
    %968 = vector.broadcast %cst_522 : f32 to vector<2x64xf32>
    %969 = arith.addf %967, %968 : vector<2x64xf32>
    %970 = vector.extract_strided_slice %953 {offsets = [0, 256], sizes = [2, 64], strides = [1, 1]} : vector<2x512xf32> to vector<2x64xf32>
    %971 = math.tanh %970 : vector<2x64xf32>
    %972 = vector.extract_strided_slice %953 {offsets = [0, 384], sizes = [2, 64], strides = [1, 1]} : vector<2x512xf32> to vector<2x64xf32>
    %cst_523 = arith.constant 5.000000e-01 : f32
    %973 = vector.broadcast %cst_523 : f32 to vector<2x64xf32>
    %974 = arith.mulf %973, %972 : vector<2x64xf32>
    %975 = math.tanh %974 : vector<2x64xf32>
    %cst_524 = arith.constant 5.000000e-01 : f32
    %976 = vector.broadcast %cst_524 : f32 to vector<2x64xf32>
    %977 = arith.mulf %976, %975 : vector<2x64xf32>
    %cst_525 = arith.constant 5.000000e-01 : f32
    %978 = vector.broadcast %cst_525 : f32 to vector<2x64xf32>
    %979 = arith.addf %977, %978 : vector<2x64xf32>
    %c0_526 = arith.constant 0 : index
    %c0_527 = arith.constant 0 : index
    %980 = vector.load %arg7[%c0_526, %c0_527] : memref<2x64xf32, #tpu.memory_space<vmem>>, vector<2x64xf32>
    %981 = arith.mulf %969, %980 : vector<2x64xf32>
    %982 = arith.mulf %961, %971 : vector<2x64xf32>
    %983 = arith.addf %981, %982 : vector<2x64xf32>
    %c0_528 = arith.constant 0 : index
    %c0_529 = arith.constant 0 : index
    %984 = vector.load %arg7[%c0_528, %c0_529] : memref<2x64xf32, #tpu.memory_space<vmem>>, vector<2x64xf32>
    tpu.vector_store %arg7[%c0_528, %c0_529], %983 {strides = array<i32>} : memref<2x64xf32, #tpu.memory_space<vmem>>, vector<2x64xf32>,
    %985 = math.tanh %983 : vector<2x64xf32>
    %986 = arith.mulf %979, %985 : vector<2x64xf32>
    %c0_530 = arith.constant 0 : index
    %c0_531 = arith.constant 0 : index
    %987 = vector.load %arg6[%c0_530, %c0_531] : memref<2x64xf32, #tpu.memory_space<vmem>>, vector<2x64xf32>
    tpu.vector_store %arg6[%c0_530, %c0_531], %986 {strides = array<i32>} : memref<2x64xf32, #tpu.memory_space<vmem>>, vector<2x64xf32>,
    %c24_i32 = arith.constant 24 : i32
    %c0_532 = arith.constant 0 : index
    %c0_533 = arith.constant 0 : index
    %988 = vector.load %arg6[%c0_532, %c0_533] : memref<2x64xf32, #tpu.memory_space<vmem>>, vector<2x64xf32>
    %989 = arith.index_cast %c24_i32 : i32 to index
    %c0_534 = arith.constant 0 : index
    %c0_535 = arith.constant 0 : index
    %990 = vector.load %arg1[%989, %c0_534, %c0_535] : memref<28x2x512xf32, #tpu.memory_space<vmem>>, vector<1x2x512xf32>
    %991 = vector.shape_cast %990 : vector<1x2x512xf32> to vector<2x512xf32>
    %c0_536 = arith.constant 0 : index
    %c0_537 = arith.constant 0 : index
    %992 = vector.load %arg2[%c0_536, %c0_537] : memref<64x512xf32, #tpu.memory_space<vmem>>, vector<64x512xf32>
    %cst_538 = arith.constant dense<0.000000e+00> : vector<2x512xf32>
    %993 = tpu.matmul %988, %992, %cst_538 {dimension_numbers = #tpu.dot_dimension_numbers<[1], [0], [0], [1], [0, 0, 1, 1], [], []>} : vector<2x64xf32>, vector<64x512xf32>, vector<2x512xf32> -> vector<2x512xf32>
    %994 = arith.addf %991, %993 : vector<2x512xf32>
    %995 = vector.extract_strided_slice %994 {offsets = [0, 0], sizes = [2, 64], strides = [1, 1]} : vector<2x512xf32> to vector<2x64xf32>
    %cst_539 = arith.constant 5.000000e-01 : f32
    %996 = vector.broadcast %cst_539 : f32 to vector<2x64xf32>
    %997 = arith.mulf %996, %995 : vector<2x64xf32>
    %998 = math.tanh %997 : vector<2x64xf32>
    %cst_540 = arith.constant 5.000000e-01 : f32
    %999 = vector.broadcast %cst_540 : f32 to vector<2x64xf32>
    %1000 = arith.mulf %999, %998 : vector<2x64xf32>
    %cst_541 = arith.constant 5.000000e-01 : f32
    %1001 = vector.broadcast %cst_541 : f32 to vector<2x64xf32>
    %1002 = arith.addf %1000, %1001 : vector<2x64xf32>
    %1003 = vector.extract_strided_slice %994 {offsets = [0, 128], sizes = [2, 64], strides = [1, 1]} : vector<2x512xf32> to vector<2x64xf32>
    %cst_542 = arith.constant 5.000000e-01 : f32
    %1004 = vector.broadcast %cst_542 : f32 to vector<2x64xf32>
    %1005 = arith.mulf %1004, %1003 : vector<2x64xf32>
    %1006 = math.tanh %1005 : vector<2x64xf32>
    %cst_543 = arith.constant 5.000000e-01 : f32
    %1007 = vector.broadcast %cst_543 : f32 to vector<2x64xf32>
    %1008 = arith.mulf %1007, %1006 : vector<2x64xf32>
    %cst_544 = arith.constant 5.000000e-01 : f32
    %1009 = vector.broadcast %cst_544 : f32 to vector<2x64xf32>
    %1010 = arith.addf %1008, %1009 : vector<2x64xf32>
    %1011 = vector.extract_strided_slice %994 {offsets = [0, 256], sizes = [2, 64], strides = [1, 1]} : vector<2x512xf32> to vector<2x64xf32>
    %1012 = math.tanh %1011 : vector<2x64xf32>
    %1013 = vector.extract_strided_slice %994 {offsets = [0, 384], sizes = [2, 64], strides = [1, 1]} : vector<2x512xf32> to vector<2x64xf32>
    %cst_545 = arith.constant 5.000000e-01 : f32
    %1014 = vector.broadcast %cst_545 : f32 to vector<2x64xf32>
    %1015 = arith.mulf %1014, %1013 : vector<2x64xf32>
    %1016 = math.tanh %1015 : vector<2x64xf32>
    %cst_546 = arith.constant 5.000000e-01 : f32
    %1017 = vector.broadcast %cst_546 : f32 to vector<2x64xf32>
    %1018 = arith.mulf %1017, %1016 : vector<2x64xf32>
    %cst_547 = arith.constant 5.000000e-01 : f32
    %1019 = vector.broadcast %cst_547 : f32 to vector<2x64xf32>
    %1020 = arith.addf %1018, %1019 : vector<2x64xf32>
    %c0_548 = arith.constant 0 : index
    %c0_549 = arith.constant 0 : index
    %1021 = vector.load %arg7[%c0_548, %c0_549] : memref<2x64xf32, #tpu.memory_space<vmem>>, vector<2x64xf32>
    %1022 = arith.mulf %1010, %1021 : vector<2x64xf32>
    %1023 = arith.mulf %1002, %1012 : vector<2x64xf32>
    %1024 = arith.addf %1022, %1023 : vector<2x64xf32>
    %c0_550 = arith.constant 0 : index
    %c0_551 = arith.constant 0 : index
    %1025 = vector.load %arg7[%c0_550, %c0_551] : memref<2x64xf32, #tpu.memory_space<vmem>>, vector<2x64xf32>
    tpu.vector_store %arg7[%c0_550, %c0_551], %1024 {strides = array<i32>} : memref<2x64xf32, #tpu.memory_space<vmem>>, vector<2x64xf32>,
    %1026 = math.tanh %1024 : vector<2x64xf32>
    %1027 = arith.mulf %1020, %1026 : vector<2x64xf32>
    %c0_552 = arith.constant 0 : index
    %c0_553 = arith.constant 0 : index
    %1028 = vector.load %arg6[%c0_552, %c0_553] : memref<2x64xf32, #tpu.memory_space<vmem>>, vector<2x64xf32>
    tpu.vector_store %arg6[%c0_552, %c0_553], %1027 {strides = array<i32>} : memref<2x64xf32, #tpu.memory_space<vmem>>, vector<2x64xf32>,
    %c25_i32 = arith.constant 25 : i32
    %c0_554 = arith.constant 0 : index
    %c0_555 = arith.constant 0 : index
    %1029 = vector.load %arg6[%c0_554, %c0_555] : memref<2x64xf32, #tpu.memory_space<vmem>>, vector<2x64xf32>
    %1030 = arith.index_cast %c25_i32 : i32 to index
    %c0_556 = arith.constant 0 : index
    %c0_557 = arith.constant 0 : index
    %1031 = vector.load %arg1[%1030, %c0_556, %c0_557] : memref<28x2x512xf32, #tpu.memory_space<vmem>>, vector<1x2x512xf32>
    %1032 = vector.shape_cast %1031 : vector<1x2x512xf32> to vector<2x512xf32>
    %c0_558 = arith.constant 0 : index
    %c0_559 = arith.constant 0 : index
    %1033 = vector.load %arg2[%c0_558, %c0_559] : memref<64x512xf32, #tpu.memory_space<vmem>>, vector<64x512xf32>
    %cst_560 = arith.constant dense<0.000000e+00> : vector<2x512xf32>
    %1034 = tpu.matmul %1029, %1033, %cst_560 {dimension_numbers = #tpu.dot_dimension_numbers<[1], [0], [0], [1], [0, 0, 1, 1], [], []>} : vector<2x64xf32>, vector<64x512xf32>, vector<2x512xf32> -> vector<2x512xf32>
    %1035 = arith.addf %1032, %1034 : vector<2x512xf32>
    %1036 = vector.extract_strided_slice %1035 {offsets = [0, 0], sizes = [2, 64], strides = [1, 1]} : vector<2x512xf32> to vector<2x64xf32>
    %cst_561 = arith.constant 5.000000e-01 : f32
    %1037 = vector.broadcast %cst_561 : f32 to vector<2x64xf32>
    %1038 = arith.mulf %1037, %1036 : vector<2x64xf32>
    %1039 = math.tanh %1038 : vector<2x64xf32>
    %cst_562 = arith.constant 5.000000e-01 : f32
    %1040 = vector.broadcast %cst_562 : f32 to vector<2x64xf32>
    %1041 = arith.mulf %1040, %1039 : vector<2x64xf32>
    %cst_563 = arith.constant 5.000000e-01 : f32
    %1042 = vector.broadcast %cst_563 : f32 to vector<2x64xf32>
    %1043 = arith.addf %1041, %1042 : vector<2x64xf32>
    %1044 = vector.extract_strided_slice %1035 {offsets = [0, 128], sizes = [2, 64], strides = [1, 1]} : vector<2x512xf32> to vector<2x64xf32>
    %cst_564 = arith.constant 5.000000e-01 : f32
    %1045 = vector.broadcast %cst_564 : f32 to vector<2x64xf32>
    %1046 = arith.mulf %1045, %1044 : vector<2x64xf32>
    %1047 = math.tanh %1046 : vector<2x64xf32>
    %cst_565 = arith.constant 5.000000e-01 : f32
    %1048 = vector.broadcast %cst_565 : f32 to vector<2x64xf32>
    %1049 = arith.mulf %1048, %1047 : vector<2x64xf32>
    %cst_566 = arith.constant 5.000000e-01 : f32
    %1050 = vector.broadcast %cst_566 : f32 to vector<2x64xf32>
    %1051 = arith.addf %1049, %1050 : vector<2x64xf32>
    %1052 = vector.extract_strided_slice %1035 {offsets = [0, 256], sizes = [2, 64], strides = [1, 1]} : vector<2x512xf32> to vector<2x64xf32>
    %1053 = math.tanh %1052 : vector<2x64xf32>
    %1054 = vector.extract_strided_slice %1035 {offsets = [0, 384], sizes = [2, 64], strides = [1, 1]} : vector<2x512xf32> to vector<2x64xf32>
    %cst_567 = arith.constant 5.000000e-01 : f32
    %1055 = vector.broadcast %cst_567 : f32 to vector<2x64xf32>
    %1056 = arith.mulf %1055, %1054 : vector<2x64xf32>
    %1057 = math.tanh %1056 : vector<2x64xf32>
    %cst_568 = arith.constant 5.000000e-01 : f32
    %1058 = vector.broadcast %cst_568 : f32 to vector<2x64xf32>
    %1059 = arith.mulf %1058, %1057 : vector<2x64xf32>
    %cst_569 = arith.constant 5.000000e-01 : f32
    %1060 = vector.broadcast %cst_569 : f32 to vector<2x64xf32>
    %1061 = arith.addf %1059, %1060 : vector<2x64xf32>
    %c0_570 = arith.constant 0 : index
    %c0_571 = arith.constant 0 : index
    %1062 = vector.load %arg7[%c0_570, %c0_571] : memref<2x64xf32, #tpu.memory_space<vmem>>, vector<2x64xf32>
    %1063 = arith.mulf %1051, %1062 : vector<2x64xf32>
    %1064 = arith.mulf %1043, %1053 : vector<2x64xf32>
    %1065 = arith.addf %1063, %1064 : vector<2x64xf32>
    %c0_572 = arith.constant 0 : index
    %c0_573 = arith.constant 0 : index
    %1066 = vector.load %arg7[%c0_572, %c0_573] : memref<2x64xf32, #tpu.memory_space<vmem>>, vector<2x64xf32>
    tpu.vector_store %arg7[%c0_572, %c0_573], %1065 {strides = array<i32>} : memref<2x64xf32, #tpu.memory_space<vmem>>, vector<2x64xf32>,
    %1067 = math.tanh %1065 : vector<2x64xf32>
    %1068 = arith.mulf %1061, %1067 : vector<2x64xf32>
    %c0_574 = arith.constant 0 : index
    %c0_575 = arith.constant 0 : index
    %1069 = vector.load %arg6[%c0_574, %c0_575] : memref<2x64xf32, #tpu.memory_space<vmem>>, vector<2x64xf32>
    tpu.vector_store %arg6[%c0_574, %c0_575], %1068 {strides = array<i32>} : memref<2x64xf32, #tpu.memory_space<vmem>>, vector<2x64xf32>,
    %c26_i32 = arith.constant 26 : i32
    %c0_576 = arith.constant 0 : index
    %c0_577 = arith.constant 0 : index
    %1070 = vector.load %arg6[%c0_576, %c0_577] : memref<2x64xf32, #tpu.memory_space<vmem>>, vector<2x64xf32>
    %1071 = arith.index_cast %c26_i32 : i32 to index
    %c0_578 = arith.constant 0 : index
    %c0_579 = arith.constant 0 : index
    %1072 = vector.load %arg1[%1071, %c0_578, %c0_579] : memref<28x2x512xf32, #tpu.memory_space<vmem>>, vector<1x2x512xf32>
    %1073 = vector.shape_cast %1072 : vector<1x2x512xf32> to vector<2x512xf32>
    %c0_580 = arith.constant 0 : index
    %c0_581 = arith.constant 0 : index
    %1074 = vector.load %arg2[%c0_580, %c0_581] : memref<64x512xf32, #tpu.memory_space<vmem>>, vector<64x512xf32>
    %cst_582 = arith.constant dense<0.000000e+00> : vector<2x512xf32>
    %1075 = tpu.matmul %1070, %1074, %cst_582 {dimension_numbers = #tpu.dot_dimension_numbers<[1], [0], [0], [1], [0, 0, 1, 1], [], []>} : vector<2x64xf32>, vector<64x512xf32>, vector<2x512xf32> -> vector<2x512xf32>
    %1076 = arith.addf %1073, %1075 : vector<2x512xf32>
    %1077 = vector.extract_strided_slice %1076 {offsets = [0, 0], sizes = [2, 64], strides = [1, 1]} : vector<2x512xf32> to vector<2x64xf32>
    %cst_583 = arith.constant 5.000000e-01 : f32
    %1078 = vector.broadcast %cst_583 : f32 to vector<2x64xf32>
    %1079 = arith.mulf %1078, %1077 : vector<2x64xf32>
    %1080 = math.tanh %1079 : vector<2x64xf32>
    %cst_584 = arith.constant 5.000000e-01 : f32
    %1081 = vector.broadcast %cst_584 : f32 to vector<2x64xf32>
    %1082 = arith.mulf %1081, %1080 : vector<2x64xf32>
    %cst_585 = arith.constant 5.000000e-01 : f32
    %1083 = vector.broadcast %cst_585 : f32 to vector<2x64xf32>
    %1084 = arith.addf %1082, %1083 : vector<2x64xf32>
    %1085 = vector.extract_strided_slice %1076 {offsets = [0, 128], sizes = [2, 64], strides = [1, 1]} : vector<2x512xf32> to vector<2x64xf32>
    %cst_586 = arith.constant 5.000000e-01 : f32
    %1086 = vector.broadcast %cst_586 : f32 to vector<2x64xf32>
    %1087 = arith.mulf %1086, %1085 : vector<2x64xf32>
    %1088 = math.tanh %1087 : vector<2x64xf32>
    %cst_587 = arith.constant 5.000000e-01 : f32
    %1089 = vector.broadcast %cst_587 : f32 to vector<2x64xf32>
    %1090 = arith.mulf %1089, %1088 : vector<2x64xf32>
    %cst_588 = arith.constant 5.000000e-01 : f32
    %1091 = vector.broadcast %cst_588 : f32 to vector<2x64xf32>
    %1092 = arith.addf %1090, %1091 : vector<2x64xf32>
    %1093 = vector.extract_strided_slice %1076 {offsets = [0, 256], sizes = [2, 64], strides = [1, 1]} : vector<2x512xf32> to vector<2x64xf32>
    %1094 = math.tanh %1093 : vector<2x64xf32>
    %1095 = vector.extract_strided_slice %1076 {offsets = [0, 384], sizes = [2, 64], strides = [1, 1]} : vector<2x512xf32> to vector<2x64xf32>
    %cst_589 = arith.constant 5.000000e-01 : f32
    %1096 = vector.broadcast %cst_589 : f32 to vector<2x64xf32>
    %1097 = arith.mulf %1096, %1095 : vector<2x64xf32>
    %1098 = math.tanh %1097 : vector<2x64xf32>
    %cst_590 = arith.constant 5.000000e-01 : f32
    %1099 = vector.broadcast %cst_590 : f32 to vector<2x64xf32>
    %1100 = arith.mulf %1099, %1098 : vector<2x64xf32>
    %cst_591 = arith.constant 5.000000e-01 : f32
    %1101 = vector.broadcast %cst_591 : f32 to vector<2x64xf32>
    %1102 = arith.addf %1100, %1101 : vector<2x64xf32>
    %c0_592 = arith.constant 0 : index
    %c0_593 = arith.constant 0 : index
    %1103 = vector.load %arg7[%c0_592, %c0_593] : memref<2x64xf32, #tpu.memory_space<vmem>>, vector<2x64xf32>
    %1104 = arith.mulf %1092, %1103 : vector<2x64xf32>
    %1105 = arith.mulf %1084, %1094 : vector<2x64xf32>
    %1106 = arith.addf %1104, %1105 : vector<2x64xf32>
    %c0_594 = arith.constant 0 : index
    %c0_595 = arith.constant 0 : index
    %1107 = vector.load %arg7[%c0_594, %c0_595] : memref<2x64xf32, #tpu.memory_space<vmem>>, vector<2x64xf32>
    tpu.vector_store %arg7[%c0_594, %c0_595], %1106 {strides = array<i32>} : memref<2x64xf32, #tpu.memory_space<vmem>>, vector<2x64xf32>,
    %1108 = math.tanh %1106 : vector<2x64xf32>
    %1109 = arith.mulf %1102, %1108 : vector<2x64xf32>
    %c0_596 = arith.constant 0 : index
    %c0_597 = arith.constant 0 : index
    %1110 = vector.load %arg6[%c0_596, %c0_597] : memref<2x64xf32, #tpu.memory_space<vmem>>, vector<2x64xf32>
    tpu.vector_store %arg6[%c0_596, %c0_597], %1109 {strides = array<i32>} : memref<2x64xf32, #tpu.memory_space<vmem>>, vector<2x64xf32>,
    %c27_i32 = arith.constant 27 : i32
    %c0_598 = arith.constant 0 : index
    %c0_599 = arith.constant 0 : index
    %1111 = vector.load %arg6[%c0_598, %c0_599] : memref<2x64xf32, #tpu.memory_space<vmem>>, vector<2x64xf32>
    %1112 = arith.index_cast %c27_i32 : i32 to index
    %c0_600 = arith.constant 0 : index
    %c0_601 = arith.constant 0 : index
    %1113 = vector.load %arg1[%1112, %c0_600, %c0_601] : memref<28x2x512xf32, #tpu.memory_space<vmem>>, vector<1x2x512xf32>
    %1114 = vector.shape_cast %1113 : vector<1x2x512xf32> to vector<2x512xf32>
    %c0_602 = arith.constant 0 : index
    %c0_603 = arith.constant 0 : index
    %1115 = vector.load %arg2[%c0_602, %c0_603] : memref<64x512xf32, #tpu.memory_space<vmem>>, vector<64x512xf32>
    %cst_604 = arith.constant dense<0.000000e+00> : vector<2x512xf32>
    %1116 = tpu.matmul %1111, %1115, %cst_604 {dimension_numbers = #tpu.dot_dimension_numbers<[1], [0], [0], [1], [0, 0, 1, 1], [], []>} : vector<2x64xf32>, vector<64x512xf32>, vector<2x512xf32> -> vector<2x512xf32>
    %1117 = arith.addf %1114, %1116 : vector<2x512xf32>
    %1118 = vector.extract_strided_slice %1117 {offsets = [0, 0], sizes = [2, 64], strides = [1, 1]} : vector<2x512xf32> to vector<2x64xf32>
    %cst_605 = arith.constant 5.000000e-01 : f32
    %1119 = vector.broadcast %cst_605 : f32 to vector<2x64xf32>
    %1120 = arith.mulf %1119, %1118 : vector<2x64xf32>
    %1121 = math.tanh %1120 : vector<2x64xf32>
    %cst_606 = arith.constant 5.000000e-01 : f32
    %1122 = vector.broadcast %cst_606 : f32 to vector<2x64xf32>
    %1123 = arith.mulf %1122, %1121 : vector<2x64xf32>
    %cst_607 = arith.constant 5.000000e-01 : f32
    %1124 = vector.broadcast %cst_607 : f32 to vector<2x64xf32>
    %1125 = arith.addf %1123, %1124 : vector<2x64xf32>
    %1126 = vector.extract_strided_slice %1117 {offsets = [0, 128], sizes = [2, 64], strides = [1, 1]} : vector<2x512xf32> to vector<2x64xf32>
    %cst_608 = arith.constant 5.000000e-01 : f32
    %1127 = vector.broadcast %cst_608 : f32 to vector<2x64xf32>
    %1128 = arith.mulf %1127, %1126 : vector<2x64xf32>
    %1129 = math.tanh %1128 : vector<2x64xf32>
    %cst_609 = arith.constant 5.000000e-01 : f32
    %1130 = vector.broadcast %cst_609 : f32 to vector<2x64xf32>
    %1131 = arith.mulf %1130, %1129 : vector<2x64xf32>
    %cst_610 = arith.constant 5.000000e-01 : f32
    %1132 = vector.broadcast %cst_610 : f32 to vector<2x64xf32>
    %1133 = arith.addf %1131, %1132 : vector<2x64xf32>
    %1134 = vector.extract_strided_slice %1117 {offsets = [0, 256], sizes = [2, 64], strides = [1, 1]} : vector<2x512xf32> to vector<2x64xf32>
    %1135 = math.tanh %1134 : vector<2x64xf32>
    %1136 = vector.extract_strided_slice %1117 {offsets = [0, 384], sizes = [2, 64], strides = [1, 1]} : vector<2x512xf32> to vector<2x64xf32>
    %cst_611 = arith.constant 5.000000e-01 : f32
    %1137 = vector.broadcast %cst_611 : f32 to vector<2x64xf32>
    %1138 = arith.mulf %1137, %1136 : vector<2x64xf32>
    %1139 = math.tanh %1138 : vector<2x64xf32>
    %cst_612 = arith.constant 5.000000e-01 : f32
    %1140 = vector.broadcast %cst_612 : f32 to vector<2x64xf32>
    %1141 = arith.mulf %1140, %1139 : vector<2x64xf32>
    %cst_613 = arith.constant 5.000000e-01 : f32
    %1142 = vector.broadcast %cst_613 : f32 to vector<2x64xf32>
    %1143 = arith.addf %1141, %1142 : vector<2x64xf32>
    %c0_614 = arith.constant 0 : index
    %c0_615 = arith.constant 0 : index
    %1144 = vector.load %arg7[%c0_614, %c0_615] : memref<2x64xf32, #tpu.memory_space<vmem>>, vector<2x64xf32>
    %1145 = arith.mulf %1133, %1144 : vector<2x64xf32>
    %1146 = arith.mulf %1125, %1135 : vector<2x64xf32>
    %1147 = arith.addf %1145, %1146 : vector<2x64xf32>
    %c0_616 = arith.constant 0 : index
    %c0_617 = arith.constant 0 : index
    %1148 = vector.load %arg7[%c0_616, %c0_617] : memref<2x64xf32, #tpu.memory_space<vmem>>, vector<2x64xf32>
    tpu.vector_store %arg7[%c0_616, %c0_617], %1147 {strides = array<i32>} : memref<2x64xf32, #tpu.memory_space<vmem>>, vector<2x64xf32>,
    %1149 = math.tanh %1147 : vector<2x64xf32>
    %1150 = arith.mulf %1143, %1149 : vector<2x64xf32>
    %c0_618 = arith.constant 0 : index
    %c0_619 = arith.constant 0 : index
    %1151 = vector.load %arg6[%c0_618, %c0_619] : memref<2x64xf32, #tpu.memory_space<vmem>>, vector<2x64xf32>
    tpu.vector_store %arg6[%c0_618, %c0_619], %1150 {strides = array<i32>} : memref<2x64xf32, #tpu.memory_space<vmem>>, vector<2x64xf32>,
    %c28_i32 = arith.constant 28 : i32
    %c0_620 = arith.constant 0 : index
    %c0_621 = arith.constant 0 : index
    %1152 = vector.load %arg6[%c0_620, %c0_621] : memref<2x64xf32, #tpu.memory_space<vmem>>, vector<2x64xf32>
    %c0_622 = arith.constant 0 : index
    %c0_623 = arith.constant 0 : index
    %1153 = vector.load %arg3[%c0_622, %c0_623] : memref<64x128xf32, #tpu.memory_space<vmem>>, vector<64x128xf32>
    %cst_624 = arith.constant dense<0.000000e+00> : vector<2x128xf32>
    %1154 = tpu.matmul %1152, %1153, %cst_624 {dimension_numbers = #tpu.dot_dimension_numbers<[1], [0], [0], [1], [0, 0, 1, 1], [], []>} : vector<2x64xf32>, vector<64x128xf32>, vector<2x128xf32> -> vector<2x128xf32>
    %c0_625 = arith.constant 0 : index
    %c0_626 = arith.constant 0 : index
    %1155 = vector.load %arg4[%c0_625, %c0_626] : memref<1x128xf32, #tpu.memory_space<vmem>>, vector<1x128xf32>
    %1156 = vector.broadcast %1155 : vector<1x128xf32> to vector<2x128xf32>
    %1157 = arith.addf %1154, %1156 : vector<2x128xf32>
    %cst_627 = arith.constant dense<0xFF800000> : vector<2xf32>
    %1158 = vector.multi_reduction <maximumf>, %1157, %cst_627 [1] : vector<2x128xf32> to vector<2xf32>
    %1159 = vector.shape_cast %1158 : vector<2xf32> to vector<2x1xf32>
    %1160 = vector.broadcast %1159 : vector<2x1xf32> to vector<2x128xf32>
    %1161 = arith.subf %1157, %1160 : vector<2x128xf32>
    %1162 = math.exp %1161 : vector<2x128xf32>
    %cst_628 = arith.constant dense<0.000000e+00> : vector<2xf32>
    %1163 = vector.multi_reduction <add>, %1162, %cst_628 [1] : vector<2x128xf32> to vector<2xf32>
    %1164 = vector.shape_cast %1163 : vector<2xf32> to vector<2x1xf32>
    %1165 = vector.broadcast %1164 : vector<2x1xf32> to vector<2x128xf32>
    %1166 = arith.divf %1162, %1165 : vector<2x128xf32>
    %c0_629 = arith.constant 0 : index
    %c0_630 = arith.constant 0 : index
    %1167 = vector.load %arg5[%c0_629, %c0_630] : memref<2x128xf32, #tpu.memory_space<vmem>>, vector<2x128xf32>
    tpu.vector_store %arg5[%c0_629, %c0_630], %1166 {strides = array<i32>} : memref<2x128xf32, #tpu.memory_space<vmem>>, vector<2x128xf32>,
    return
  }
  func.func @transform_0(%arg0: i32) -> (i32, i32, i32) {
    %c0_i32 = arith.constant 0 : i32
    %c0_i32_0 = arith.constant 0 : i32
    %c0_i32_1 = arith.constant 0 : i32
    return %c0_i32, %arg0, %c0_i32_0 : i32, i32, i32
  }
  func.func @transform_1(%arg0: i32) -> (i32, i32) {
    %c0_i32 = arith.constant 0 : i32
    %c0_i32_0 = arith.constant 0 : i32
    %c0_i32_1 = arith.constant 0 : i32
    return %c0_i32, %c0_i32_0 : i32, i32
  }
  func.func @transform_2(%arg0: i32) -> (i32, i32) {
    %c0_i32 = arith.constant 0 : i32
    %c0_i32_0 = arith.constant 0 : i32
    %c0_i32_1 = arith.constant 0 : i32
    return %c0_i32, %c0_i32_0 : i32, i32
  }
  func.func @transform_3(%arg0: i32) -> (i32, i32) {
    %c0_i32 = arith.constant 0 : i32
    %c0_i32_0 = arith.constant 0 : i32
    %c0_i32_1 = arith.constant 0 : i32
    return %c0_i32, %c0_i32_0 : i32, i32
  }
  func.func @transform_4(%arg0: i32) -> (i32, i32) {
    %c0_i32 = arith.constant 0 : i32
    %c0_i32_0 = arith.constant 0 : i32
    return %arg0, %c0_i32 : i32, i32
  }
}

</mosaic_0001>

<bundles_post_ra>
// kernel: tpu_custom_call.1
= control target key start
LH: loop header
LB: loop body
LE: loop exit
PB: predicated region body
PF: predicated region fallthrough
CT: control target
= control target key end

     0   :  { %9 = vsyncpa [#allocation5], 0  ;;  %s8992_s0 = inlined_call_operand.hbm [shape: f32[28,2,512], index: 0, kind: input, shape index: {}]   ;;  %s8993_s1 = inlined_call_operand.hbm [shape: f32[64,512], index: 1, kind: input, shape index: {}]   ;;  %s8994_s2 = inlined_call_operand.hbm [shape: f32[64,128], index: 2, kind: input, shape index: {}]   ;;  %s8995_s3 = inlined_call_operand.vmem [shape: f32[1,128], index: 3, kind: input, shape index: {}]   ;;  %s8996_s4 = inlined_call_operand.hbm [shape: f32[2,128], index: 4, kind: output, shape index: {}]  }
   0x1   :  { %10 = vsyncpa [#allocation8], 0 }
   0x2   :  { %11 = vsyncpa [#allocation6], 0  ;;  %s8032_s15 = smov [#allocation7]   ;;  %s7938_s19 = scalar_lea.hbm %s8993_s1, 4096 }
   0x3   :  { %s29_s16 = sshll.u32 %s8032_s15, 4  ;;  %p7939_p0 = scmp.ne.s32.totalorder %s8993_s1, %s7938_s19  ;;  %s30_s16 = int_to_ptr.vmem [resolvable:$true] %s29_s16 }
   0x4   :  { %p7942_p1 = scmp.lt.u32.totalorder %s7938_s19, %s8993_s1 }
   0x6   :  { %p7944_p2 = pnand %p7942_p1, %p7939_p0 }
   0x8   :  { %7947 = shalt.err (!%p7944_p2)
}
   0x9   :  { %s7948_s24 = scalar_lea.vmem %s30_s16, 4096  ;;  %p7953_p4 = scmp.lt.s32.totalorder %s30_s16, %s30_s16 }
   0xa   :  { %p7949_p3 = scmp.ne.s32.totalorder %s30_s16, %s7948_s24  ;;  %p7954_p5 = scmp.lt.s32.totalorder %s7948_s24, %s7948_s24 }
   0xc   :  { %p7955_p6 = por %p7954_p5, %p7953_p4 }
   0xe   :  { %p7956_p7 = pnand %p7955_p6, %p7949_p3 }
  0x10   :  { %7959 = shalt.err (!%p7956_p7)
}
  0x11   :  { %s8033_s25 = smov 512   ;;  %s8034_s26 = smov 32  }
  0x12   :  { %35 = dma.hbm_to_vmem [thread:$0]  %s8993_s1, 4096, %s30_s16, [#allocation8], %s8033_s25, %s8033_s25, %s8034_s26  }
  0x13   :  { %s8035_s29 = smov [#allocation4]   ;;  %s7960_s7 = scalar_lea.hbm %s8992_s0, 3584 }
  0x14   :  { %s17_s30 = sshll.u32 %s8035_s29, 4  ;;  %p7961_p8 = scmp.ne.s32.totalorder %s8992_s0, %s7960_s7  ;;  %s18_s30 = int_to_ptr.vmem [resolvable:$true] %s17_s30 }
  0x15   :  { %p7964_p9 = scmp.lt.u32.totalorder %s7960_s7, %s8992_s0 }
  0x17   :  { %p7966_p10 = pnand %p7964_p9, %p7961_p8 }
  0x19   :  { %7969 = shalt.err (!%p7966_p10)
}
  0x1a   :  { %s7970_s12 = scalar_lea.vmem %s18_s30, 3584  ;;  %p7975_p12 = scmp.lt.s32.totalorder %s18_s30, %s18_s30 }
  0x1b   :  { %p7971_p11 = scmp.ne.s32.totalorder %s18_s30, %s7970_s12  ;;  %p7976_p13 = scmp.lt.s32.totalorder %s7970_s12, %s7970_s12 }
  0x1d   :  { %p7977_p0 = por %p7976_p13, %p7975_p12 }
  0x1f   :  { %p7978_p1 = pnand %p7977_p0, %p7971_p11 }
  0x21   :  { %7981 = shalt.err (!%p7978_p1)
}
  0x22   :  { %s8036_s1 = smov 128   ;;  %s8037_s13 = smov 8  }
  0x23   :  { %23 = dma.hbm_to_vmem [thread:$0]  %s8992_s0, 3584, %s18_s30, [#allocation5], %s8036_s1, %s8036_s1, %s8037_s13  }
  0x24   :  { %s8038_s16 = smov [#allocation9]   ;;  %s7982_s20 = scalar_lea.hbm %s8994_s2, 1024 }
  0x25   :  { %s41_s17 = sshll.u32 %s8038_s16, 4  ;;  %p7983_p2 = scmp.ne.s32.totalorder %s8994_s2, %s7982_s20  ;;  %s42_s17 = int_to_ptr.vmem [resolvable:$true] %s41_s17 }
  0x26   :  { %p7986_p3 = scmp.lt.u32.totalorder %s7982_s20, %s8994_s2 }
  0x28   :  { %p7988_p4 = pnand %p7986_p3, %p7983_p2 }
  0x2a   :  { %7991 = shalt.err (!%p7988_p4)
}
  0x2b   :  { %s7992_s25 = scalar_lea.vmem %s42_s17, 1024  ;;  %p7997_p6 = scmp.lt.s32.totalorder %s42_s17, %s42_s17 }
  0x2c   :  { %p7993_p5 = scmp.ne.s32.totalorder %s42_s17, %s7992_s25  ;;  %p7998_p7 = scmp.lt.s32.totalorder %s7992_s25, %s7992_s25 }
  0x2e   :  { %p7999_p8 = por %p7998_p7, %p7997_p6 }
  0x30   :  { %p8000_p9 = pnand %p7999_p8, %p7993_p5 }
  0x32   :  { %8003 = shalt.err (!%p8000_p9)
}
  0x33   :  { %47 = dma.hbm_to_vmem [thread:$0]  %s8994_s2, 1024, %s42_s17, [#allocation8], %s8036_s1, %s8036_s1, %s8037_s13  }
  0x34   :  { %8026 = dma.done.wait [#allocation5], 3584  }
  0x35   :  { %8027 = vsyncadd [#allocation5], 4294963712 }
  0x36   :  { %8028 = dma.done.wait [#allocation8], 5120  }
  0x37   :  { %8029 = vsyncadd [#allocation8], 4294962176  ;;  %vm59_vm0 = vcmask 517120   ;;  %v8039_v0 = vmov 0.0   ;;  %v65_v1 = vld [vmem:[#allocation7 + $0x8] sm:$0xff]  ;;  %v67_v3 = vld [vmem:[#allocation7 + $0x18] sm:$0xff]  ;;  %v251_v52 = vlaneseq }
  0x38   :  { %164 = vmatprep.mubr.f32.mxu0 %v8039_v0  ;;  %235 = vmatprep.mubr.f32.mxu1 %v8039_v0  ;;  %60 = vst.msk [vmem:[#allocation2] sm:$0x3] %vm59_vm0, %v8039_v0  ;;  %61 = vst.msk [vmem:[#allocation3] sm:$0x3] %vm59_vm0, %v8039_v0  ;;  %v69_v2 = vld [vmem:[#allocation7 + $0x28] sm:$0xff]  ;;  %v71_v5 = vld [vmem:[#allocation7 + $0x38] sm:$0xff] }
  0x39   :  { %v8111_v4 = vpack.c.bf16 %v69_v2, %v65_v1  ;;  %v64_v6 = vld [vmem:[#allocation7] sm:$0xff]  ;;  %v8113_v8 = vpack.c.bf16 %v71_v5, %v67_v3  ;;  %v66_v10 = vld [vmem:[#allocation7 + $0x10] sm:$0xff]  ;;  %v73_v12 = vld [vmem:[#allocation7 + $0x48] sm:$0xff]  ;;  %vm96_vm1 = vcmask 523264   ;;  %v8040_v50 = vmov 1983009808  }
  0x3a   :  { %v68_v7 = vld [vmem:[#allocation7 + $0x20] sm:$0xff]  ;;  %v70_v11 = vld [vmem:[#allocation7 + $0x30] sm:$0xff]  ;;  %v77_v14 = vld [vmem:[#allocation7 + $0x68] sm:$0xff]  ;;  %v249_v51 = vunpack.c.l.s4 %v8040_v50  ;;  %v252_v54 = vshrl.u32 %v251_v52, 7  ;;  %vm8042_vm2 = vmmov 0   ;;  %vm6619_vm3 = vcmask 1041408  }
  0x3b   :  { %v8115_v9 = vpack.c.bf16 %v68_v7, %v64_v6  ;;  %6735 = vmatprep.subr.bf16.mxu0 %v8111_v4  ;;  %v8118_v13 = vpack.c.bf16 %v70_v11, %v66_v10  ;;  %v75_v15 = vld [vmem:[#allocation7 + $0x58] sm:$0xff]  ;;  %6751 = vmatprep.subr.bf16.mxu1 %v8113_v8  ;;  %v8122_v17 = vpack.c.bf16 %v77_v14, %v73_v12  ;;  %v72_v19 = vld [vmem:[#allocation7 + $0x40] sm:$0xff]  ;;  %v74_v21 = vld [vmem:[#allocation7 + $0x50] sm:$0xff]  ;;  %s8043_s28 = smov [#allocation10]  }
  0x3c   :  { %v79_v16 = vld [vmem:[#allocation7 + $0x78] sm:$0xff]  ;;  %v76_v20 = vld [vmem:[#allocation7 + $0x60] sm:$0xff]  ;;  %v78_v23 = vld [vmem:[#allocation7 + $0x70] sm:$0xff]  ;;  %v250_v53 = vunpack.c.0.s8 %v249_v51  ;;  %s6638_s29 = sshll.u32 %s8043_s28, 4  ;;  %s6639_s29 = int_to_ptr.vmem [resolvable:$true] %s6638_s29 }
  0x3d   :  { %6737 = vmatpush1.bf16.msra.mxu0 %v8115_v9  ;;  %v8124_v18 = vpack.c.bf16 %v79_v16, %v75_v15  ;;  %6753 = vmatpush1.bf16.msra.mxu1 %v8118_v13  ;;  %v8127_v22 = vpack.c.bf16 %v76_v20, %v72_v19  ;;  %v81_v24 = vld [vmem:[#allocation7 + $0x88] sm:$0xff]  ;;  %v8131_v26 = vpack.c.bf16 %v78_v23, %v74_v21  ;;  %v83_v28 = vld [vmem:[#allocation7 + $0x98] sm:$0xff]  ;;  %v80_v30 = vld [vmem:[#allocation7 + $0x80] sm:$0xff]  ;;  %p8009_p11 = scmp.lt.s32.totalorder %s6639_s29, %s6639_s29 }
  0x3e   :  { %v85_v25 = vld [vmem:[#allocation7 + $0xa8] sm:$0xff]  ;;  %6739 = vmatprep.subr.bf16.mxu0 %v8122_v17  ;;  %v87_v29 = vld [vmem:[#allocation7 + $0xb8] sm:$0xff]  ;;  %v84_v32 = vld [vmem:[#allocation7 + $0xa0] sm:$0xff]  ;;  %v8181_v56 = vsub.s32 %v250_v53, %v252_v54 }
  0x3f   :  { %6755 = vmatprep.subr.bf16.mxu1 %v8124_v18  ;;  %v8133_v27 = vpack.c.bf16 %v85_v25, %v81_v24  ;;  %v8135_v31 = vpack.c.bf16 %v87_v29, %v83_v28  ;;  %v82_v33 = vld [vmem:[#allocation7 + $0x90] sm:$0xff]  ;;  %v8138_v35 = vpack.c.bf16 %v84_v32, %v80_v30  ;;  %v89_v36 = vld [vmem:[#allocation7 + $0xc8] sm:$0xff]  ;;  %v91_v38 = vld [vmem:[#allocation7 + $0xd8] sm:$0xff] }
  0x40   :  { %v86_v34 = vld [vmem:[#allocation7 + $0xb0] sm:$0xff]  ;;  %v93_v37 = vld [vmem:[#allocation7 + $0xe8] sm:$0xff]  ;;  %v95_v41 = vld [vmem:[#allocation7 + $0xf8] sm:$0xff] }
  0x41   :  { %6741 = vmatpush1.bf16.msra.mxu0 %v8127_v22  ;;  %6757 = vmatpush1.bf16.msra.mxu1 %v8131_v26  ;;  %v8142_v39 = vpack.c.bf16 %v86_v34, %v82_v33  ;;  %v8144_v40 = vpack.c.bf16 %v93_v37, %v89_v36  ;;  %v88_v42 = vld [vmem:[#allocation7 + $0xc0] sm:$0xff]  ;;  %v8147_v44 = vpack.c.bf16 %v95_v41, %v91_v38  ;;  %v90_v45 = vld [vmem:[#allocation7 + $0xd0] sm:$0xff]  ;;  %v62_v49 = vld [vmem:[#allocation2] sm:$0x3] }
  0x42   :  { %6743 = vmatprep.subr.bf16.mxu0 %v8133_v27  ;;  %v92_v43 = vld [vmem:[#allocation7 + $0xe0] sm:$0xff]  ;;  %6759 = vmatprep.subr.bf16.mxu1 %v8135_v31  ;;  %v94_v46 = vld [vmem:[#allocation7 + $0xf0] sm:$0xff]  ;;  %v285_v21 = vld [vmem:[#allocation3] sm:$0x3] }
  0x43   :  { %v8150_v47 = vpack.c.bf16 %v92_v43, %v88_v42  ;;  %v8154_v48 = vpack.c.bf16 %v94_v46, %v90_v45  ;;  %v63_v1 = vld [vmem:[#allocation4] sm:$0xff]  ;;  %v295_v51 = vld [vmem:[#allocation4 + $0x8] sm:$0xff] }
  0x45   :  { %6745 = vmatpush1.bf16.msra.mxu0 %v8138_v35  ;;  %6761 = vmatpush1.bf16.msra.mxu1 %v8142_v39 }
  0x46   :  { %6747 = vmatprep.subr.bf16.mxu0 %v8144_v40  ;;  %6763 = vmatprep.subr.bf16.mxu1 %v8147_v44 }
  0x49   :  { %6749 = vmatpush1.bf16.msra.mxu0 %v8150_v47  ;;  %6765 = vmatpush1.bf16.msra.mxu1 %v8154_v48 }
  0x4a   :  { %6767 = vmatprep.subr.bf16.mxu0 %v8111_v4  ;;  %6783 = vmatprep.subr.bf16.mxu1 %v8113_v8 }
  0x4c   :  { %6648 = vmatmul.mubr.msk.f32.vlgmr.msra.gmra.mrb[0].mxu0 %vm96_vm1, %v62_v49  ;;  %6649 = vmatmul.mubr.msk.f32.vlgmr.msra.gmra.mrb[0].mxu1 %vm96_vm1, %v62_v49 }
  0x4d   :  { %6769 = vmatpush1.bf16.msra.mxu0 %v8115_v9  ;;  %6785 = vmatpush1.bf16.msra.mxu1 %v8118_v13 }
  0x4e   :  { %6771 = vmatprep.subr.bf16.mxu0 %v8122_v17  ;;  %6787 = vmatprep.subr.bf16.mxu1 %v8124_v18 }
  0x4f   :  { %395 = vmatprep.mubr.f32.mxu0 %v8039_v0  ;;  %466 = vmatprep.mubr.f32.mxu1 %v8039_v0 }
  0x51   :  { %6773 = vmatpush1.bf16.msra.mxu0 %v8127_v22  ;;  %6789 = vmatpush1.bf16.msra.mxu1 %v8131_v26 }
  0x52   :  { %6775 = vmatprep.subr.bf16.mxu0 %v8133_v27  ;;  %6791 = vmatprep.subr.bf16.mxu1 %v8135_v31 }
  0x55   :  { %6777 = vmatpush1.bf16.msra.mxu0 %v8138_v35  ;;  %6793 = vmatpush1.bf16.msra.mxu1 %v8142_v39 }
  0x56   :  { %6779 = vmatprep.subr.bf16.mxu0 %v8144_v40  ;;  %6795 = vmatprep.subr.bf16.mxu1 %v8147_v44 }
  0x59   :  { %6781 = vmatpush1.bf16.msra.mxu0 %v8150_v47  ;;  %6797 = vmatpush1.bf16.msra.mxu1 %v8154_v48 }
  0x5a   :  { %6799 = vmatprep.subr.bf16.mxu0 %v8111_v4  ;;  %6815 = vmatprep.subr.bf16.mxu1 %v8113_v8 }
 0x11f   :  { %v166_v55 = vpop.f32.mrb[0].mxu0  ;;  %v237_v57 = vpop.f32.mrb[0].mxu1 }
 0x120   :  { %v168_v58 = vpop.f32.mrb[1].mxu0  ;;  %v239_v60 = vpop.f32.mrb[1].mxu1 }
 0x121   :  { %v246_v59 = vcombine.low %v166_v55, %v168_v58  ;;  %v247_v61 = vcombine.low %v237_v57, %v239_v60 }
 0x123   :  { %v254_v62 = vrot.slane %v246_v59, %v8181_v56  ;;  %v261_v63 = vrot.slane %v247_v61, %v8181_v56 }
 0x125   :  { %v262_v2 = vcombine.low %v254_v62, %v261_v63 }
 0x127   :  { %v264_v3 = vadd.f32 %v262_v2, %v63_v1 }
 0x129   :  { %v265_v5 = vmul.f32 0.5, %v264_v3  ;;  %v270_v6 = vrot.slane %v264_v3, 2  ;;  %v276_v10 = vrot.slane %v264_v3, 4  ;;  %v279_v11 = vrot.slane %v264_v3, 6 }
 0x12b   :  { %7654 = vtanh.f32 %v265_v5  ;;  %v272_v7 = vmul.f32 0.5, %v270_v6  ;;  %v281_v12 = vmul.f32 0.5, %v279_v11 }
 0x12d   :  { %7656 = vtanh.f32 %v272_v7 }
 0x12e   :  { %7658 = vtanh.f32 %v276_v10 }
 0x12f   :  { %7660 = vtanh.f32 %v281_v12 }
 0x135   :  { %v7655_v14 = vpop.eup %7654 }
 0x136   :  { %v267_v15 = vmul.f32 0.5, %v7655_v14 }
 0x137   :  { %v7657_v16 = vpop.eup %7656 }
 0x138   :  { %v268_v19 = vadd.f32 0.5, %v267_v15  ;;  %v274_v20 = vmul.f32 0.5, %v7657_v16  ;;  %v7659_v24 = vpop.eup %7658 }
 0x139   :  { %v7661_v30 = vpop.eup %7660 }
 0x13a   :  { %v275_v23 = vadd.f32 0.5, %v274_v20  ;;  %v287_v28 = vmul.f32 %v7659_v24, %v268_v19  ;;  %v283_v32 = vmul.f32 0.5, %v7661_v30 }
 0x13c   :  { %v286_v25 = vmul.f32 %v285_v21, %v275_v23  ;;  %v284_v33 = vadd.f32 0.5, %v283_v32 }
 0x13e   :  { %v288_v29 = vadd.f32 %v287_v28, %v286_v25 }
 0x140   :  { %289 = vst.msk [vmem:[#allocation3] sm:$0x3] %vm59_vm0, %v288_v29  ;;  %7662 = vtanh.f32 %v288_v29 }
 0x147   :  { %v516_v6 = vld [vmem:[#allocation3] sm:$0x3] }
 0x14a   :  { %v7663_v34 = vpop.eup %7662 }
 0x14b   :  { %v291_v36 = vmul.f32 %v7663_v34, %v284_v33  ;;  %v526_v33 = vld [vmem:[#allocation4 + $0x10] sm:$0xff] }
 0x14d   :  { %292 = vst.msk [vmem:[#allocation2] sm:$0x3] %vm59_vm0, %v291_v36 }
 0x154   :  { %v293_v37 = vld [vmem:[#allocation2] sm:$0x3] }
 0x155   :  { %6650 = vmatmul.mubr.msk.f32.vlgmr.msra.gmra.mrb[2].mxu0 %vm96_vm1, %v293_v37  ;;  %6651 = vmatmul.mubr.msk.f32.vlgmr.msra.gmra.mrb[2].mxu1 %vm96_vm1, %v293_v37 }
 0x156   :  { %6801 = vmatpush1.bf16.msra.mxu0 %v8115_v9  ;;  %6817 = vmatpush1.bf16.msra.mxu1 %v8118_v13 }
 0x157   :  { %6803 = vmatprep.subr.bf16.mxu0 %v8122_v17  ;;  %6819 = vmatprep.subr.bf16.mxu1 %v8124_v18 }
 0x158   :  { %626 = vmatprep.mubr.f32.mxu0 %v8039_v0  ;;  %697 = vmatprep.mubr.f32.mxu1 %v8039_v0 }
 0x15a   :  { %6805 = vmatpush1.bf16.msra.mxu0 %v8127_v22  ;;  %6821 = vmatpush1.bf16.msra.mxu1 %v8131_v26 }
 0x15b   :  { %6807 = vmatprep.subr.bf16.mxu0 %v8133_v27  ;;  %6823 = vmatprep.subr.bf16.mxu1 %v8135_v31 }
 0x15e   :  { %6809 = vmatpush1.bf16.msra.mxu0 %v8138_v35  ;;  %6825 = vmatpush1.bf16.msra.mxu1 %v8142_v39 }
 0x15f   :  { %6811 = vmatprep.subr.bf16.mxu0 %v8144_v40  ;;  %6827 = vmatprep.subr.bf16.mxu1 %v8147_v44 }
 0x162   :  { %6813 = vmatpush1.bf16.msra.mxu0 %v8150_v47  ;;  %6829 = vmatpush1.bf16.msra.mxu1 %v8154_v48 }
 0x163   :  { %6831 = vmatprep.subr.bf16.mxu0 %v8111_v4  ;;  %6847 = vmatprep.subr.bf16.mxu1 %v8113_v8 }
 0x228   :  { %v397_v38 = vpop.f32.mrb[2].mxu0  ;;  %v468_v41 = vpop.f32.mrb[2].mxu1 }
 0x229   :  { %v399_v42 = vpop.f32.mrb[3].mxu0  ;;  %v470_v43 = vpop.f32.mrb[3].mxu1 }
 0x22a   :  { %v477_v45 = vcombine.low %v397_v38, %v399_v42  ;;  %v478_v46 = vcombine.low %v468_v41, %v470_v43 }
 0x22c   :  { %v485_v49 = vrot.slane %v477_v45, %v8181_v56  ;;  %v492_v50 = vrot.slane %v478_v46, %v8181_v56 }
 0x22e   :  { %v493_v52 = vcombine.low %v485_v49, %v492_v50 }
 0x230   :  { %v495_v53 = vadd.f32 %v493_v52, %v295_v51 }
 0x232   :  { %v496_v54 = vmul.f32 0.5, %v495_v53  ;;  %v501_v55 = vrot.slane %v495_v53, 2  ;;  %v507_v58 = vrot.slane %v495_v53, 4  ;;  %v510_v59 = vrot.slane %v495_v53, 6 }
 0x234   :  { %7664 = vtanh.f32 %v496_v54  ;;  %v503_v57 = vmul.f32 0.5, %v501_v55  ;;  %v512_v60 = vmul.f32 0.5, %v510_v59 }
 0x236   :  { %7666 = vtanh.f32 %v503_v57 }
 0x237   :  { %7668 = vtanh.f32 %v507_v58 }
 0x238   :  { %7670 = vtanh.f32 %v512_v60 }
 0x23e   :  { %v7665_v61 = vpop.eup %7664 }
 0x23f   :  { %v498_v62 = vmul.f32 0.5, %v7665_v61 }
 0x240   :  { %v7667_v63 = vpop.eup %7666 }
 0x241   :  { %v499_v1 = vadd.f32 0.5, %v498_v62  ;;  %v505_v2 = vmul.f32 0.5, %v7667_v63  ;;  %v7669_v5 = vpop.eup %7668 }
 0x242   :  { %v7671_v12 = vpop.eup %7670 }
 0x243   :  { %v506_v3 = vadd.f32 0.5, %v505_v2  ;;  %v518_v10 = vmul.f32 %v7669_v5, %v499_v1  ;;  %v514_v14 = vmul.f32 0.5, %v7671_v12 }
 0x245   :  { %v517_v7 = vmul.f32 %v516_v6, %v506_v3  ;;  %v515_v15 = vadd.f32 0.5, %v514_v14 }
 0x247   :  { %v519_v11 = vadd.f32 %v518_v10, %v517_v7 }
 0x249   :  { %520 = vst.msk [vmem:[#allocation3] sm:$0x3] %vm59_vm0, %v519_v11  ;;  %7672 = vtanh.f32 %v519_v11 }
 0x250   :  { %v747_v53 = vld [vmem:[#allocation3] sm:$0x3] }
 0x253   :  { %v7673_v16 = vpop.eup %7672 }
 0x254   :  { %v522_v19 = vmul.f32 %v7673_v16, %v515_v15 }
 0x256   :  { %523 = vst.msk [vmem:[#allocation2] sm:$0x3] %vm59_vm0, %v522_v19 }
 0x25d   :  { %v524_v20 = vld [vmem:[#allocation2] sm:$0x3] }
 0x25e   :  { %6652 = vmatmul.mubr.msk.f32.vlgmr.msra.gmra.mrb[4].mxu0 %vm96_vm1, %v524_v20  ;;  %6653 = vmatmul.mubr.msk.f32.vlgmr.msra.gmra.mrb[4].mxu1 %vm96_vm1, %v524_v20 }
 0x25f   :  { %6833 = vmatpush1.bf16.msra.mxu0 %v8115_v9  ;;  %6849 = vmatpush1.bf16.msra.mxu1 %v8118_v13 }
 0x260   :  { %6835 = vmatprep.subr.bf16.mxu0 %v8122_v17  ;;  %6851 = vmatprep.subr.bf16.mxu1 %v8124_v18 }
 0x261   :  { %857 = vmatprep.mubr.f32.mxu0 %v8039_v0  ;;  %928 = vmatprep.mubr.f32.mxu1 %v8039_v0 }
 0x263   :  { %6837 = vmatpush1.bf16.msra.mxu0 %v8127_v22  ;;  %6853 = vmatpush1.bf16.msra.mxu1 %v8131_v26 }
 0x264   :  { %6839 = vmatprep.subr.bf16.mxu0 %v8133_v27  ;;  %6855 = vmatprep.subr.bf16.mxu1 %v8135_v31 }
 0x267   :  { %6841 = vmatpush1.bf16.msra.mxu0 %v8138_v35  ;;  %6857 = vmatpush1.bf16.msra.mxu1 %v8142_v39 }
 0x268   :  { %6843 = vmatprep.subr.bf16.mxu0 %v8144_v40  ;;  %6859 = vmatprep.subr.bf16.mxu1 %v8147_v44 }
 0x26b   :  { %6845 = vmatpush1.bf16.msra.mxu0 %v8150_v47  ;;  %6861 = vmatpush1.bf16.msra.mxu1 %v8154_v48 }
 0x26c   :  { %6863 = vmatprep.subr.bf16.mxu0 %v8111_v4  ;;  %6879 = vmatprep.subr.bf16.mxu1 %v8113_v8 }
 0x331   :  { %v628_v21 = vpop.f32.mrb[4].mxu0  ;;  %v699_v23 = vpop.f32.mrb[4].mxu1 }
 0x332   :  { %v630_v24 = vpop.f32.mrb[5].mxu0  ;;  %v701_v25 = vpop.f32.mrb[5].mxu1 }
 0x333   :  { %v708_v28 = vcombine.low %v628_v21, %v630_v24  ;;  %v709_v29 = vcombine.low %v699_v23, %v701_v25 }
 0x335   :  { %v716_v30 = vrot.slane %v708_v28, %v8181_v56  ;;  %v723_v32 = vrot.slane %v709_v29, %v8181_v56 }
 0x337   :  { %v724_v34 = vcombine.low %v716_v30, %v723_v32  ;;  %v1221_v30 = vld [vmem:[#allocation7 + $0x8] sm:$0xff] }
 0x338   :  { %v1225_v32 = vld [vmem:[#allocation7 + $0x28] sm:$0xff] }
 0x339   :  { %v726_v36 = vadd.f32 %v724_v34, %v526_v33  ;;  %v1223_v33 = vld [vmem:[#allocation7 + $0x18] sm:$0xff]  ;;  %v8261_v34 = vpack.c.bf16 %v1225_v32, %v1221_v30 }
 0x33b   :  { %v727_v37 = vmul.f32 0.5, %v726_v36  ;;  %v732_v38 = vrot.slane %v726_v36, 2  ;;  %v738_v4 = vrot.slane %v726_v36, 4  ;;  %v741_v8 = vrot.slane %v726_v36, 6  ;;  %v1227_v36 = vld [vmem:[#allocation7 + $0x38] sm:$0xff] }
 0x33d   :  { %7674 = vtanh.f32 %v727_v37  ;;  %v734_v41 = vmul.f32 0.5, %v732_v38  ;;  %v743_v42 = vmul.f32 0.5, %v741_v8  ;;  %v1220_v37 = vld [vmem:[#allocation7] sm:$0xff]  ;;  %v1222_v8 = vld [vmem:[#allocation7 + $0x10] sm:$0xff] }
 0x33e   :  { %v1224_v38 = vld [vmem:[#allocation7 + $0x20] sm:$0xff] }
 0x33f   :  { %7676 = vtanh.f32 %v734_v41  ;;  %v8263_v41 = vpack.c.bf16 %v1227_v36, %v1223_v33 }
 0x340   :  { %7678 = vtanh.f32 %v738_v4  ;;  %v8265_v4 = vpack.c.bf16 %v1224_v38, %v1220_v37 }
 0x341   :  { %7680 = vtanh.f32 %v743_v42  ;;  %v1226_v42 = vld [vmem:[#allocation7 + $0x30] sm:$0xff] }
 0x347   :  { %v7675_v43 = vpop.eup %7674 }
 0x348   :  { %v729_v45 = vmul.f32 0.5, %v7675_v43  ;;  %v8268_v43 = vpack.c.bf16 %v1226_v42, %v1222_v8 }
 0x349   :  { %v7677_v46 = vpop.eup %7676 }
 0x34a   :  { %v730_v49 = vadd.f32 0.5, %v729_v45  ;;  %v736_v50 = vmul.f32 0.5, %v7677_v46  ;;  %v7679_v52 = vpop.eup %7678  ;;  %v1229_v45 = vld [vmem:[#allocation7 + $0x48] sm:$0xff] }
 0x34b   :  { %v7681_v58 = vpop.eup %7680  ;;  %v1233_v46 = vld [vmem:[#allocation7 + $0x68] sm:$0xff] }
 0x34c   :  { %v737_v51 = vadd.f32 0.5, %v736_v50  ;;  %v749_v55 = vmul.f32 %v7679_v52, %v730_v49  ;;  %v745_v59 = vmul.f32 0.5, %v7681_v58  ;;  %v1231_v49 = vld [vmem:[#allocation7 + $0x58] sm:$0xff]  ;;  %v8273_v50 = vpack.c.bf16 %v1233_v46, %v1229_v45  ;;  %v1228_v52 = vld [vmem:[#allocation7 + $0x40] sm:$0xff]  ;;  %v1234_v58 = vld [vmem:[#allocation7 + $0x70] sm:$0xff] }
 0x34e   :  { %v748_v54 = vmul.f32 %v747_v53, %v737_v51  ;;  %v746_v60 = vadd.f32 0.5, %v745_v59  ;;  %v1235_v51 = vld [vmem:[#allocation7 + $0x78] sm:$0xff]  ;;  %v1232_v53 = vld [vmem:[#allocation7 + $0x60] sm:$0xff] }
 0x350   :  { %v750_v57 = vadd.f32 %v749_v55, %v748_v54  ;;  %v8275_v54 = vpack.c.bf16 %v1235_v51, %v1231_v49  ;;  %v8277_v55 = vpack.c.bf16 %v1232_v53, %v1228_v52 }
 0x352   :  { %751 = vst.msk [vmem:[#allocation3] sm:$0x3] %vm59_vm0, %v750_v57  ;;  %7682 = vtanh.f32 %v750_v57  ;;  %v1230_v57 = vld [vmem:[#allocation7 + $0x50] sm:$0xff] }
 0x353   :  { %v8280_v59 = vpack.c.bf16 %v1234_v58, %v1230_v57 }
 0x359   :  { %v978_v15 = vld [vmem:[#allocation3] sm:$0x3] }
 0x35c   :  { %v7683_v61 = vpop.eup %7682 }
 0x35d   :  { %v753_v62 = vmul.f32 %v7683_v61, %v746_v60  ;;  %v1237_v60 = vld [vmem:[#allocation7 + $0x88] sm:$0xff] }
 0x35e   :  { %v1241_v61 = vld [vmem:[#allocation7 + $0xa8] sm:$0xff] }
 0x35f   :  { %754 = vst.msk [vmem:[#allocation2] sm:$0x3] %vm59_vm0, %v753_v62  ;;  %v1239_v62 = vld [vmem:[#allocation7 + $0x98] sm:$0xff] }
 0x366   :  { %v755_v63 = vld [vmem:[#allocation2] sm:$0x3] }
 0x367   :  { %6654 = vmatmul.mubr.msk.f32.vlgmr.msra.gmra.mrb[6].mxu0 %vm96_vm1, %v755_v63  ;;  %6655 = vmatmul.mubr.msk.f32.vlgmr.msra.gmra.mrb[6].mxu1 %vm96_vm1, %v755_v63  ;;  %v8285_v63 = vpack.c.bf16 %v1241_v61, %v1237_v60 }
 0x368   :  { %6865 = vmatpush1.bf16.msra.mxu0 %v8115_v9  ;;  %6881 = vmatpush1.bf16.msra.mxu1 %v8118_v13 }
 0x369   :  { %6867 = vmatprep.subr.bf16.mxu0 %v8122_v17  ;;  %6883 = vmatprep.subr.bf16.mxu1 %v8124_v18 }
 0x36a   :  { %1088 = vmatprep.mubr.f32.mxu0 %v8039_v0  ;;  %1159 = vmatprep.mubr.f32.mxu1 %v8039_v0 }
 0x36c   :  { %6869 = vmatpush1.bf16.msra.mxu0 %v8127_v22  ;;  %6885 = vmatpush1.bf16.msra.mxu1 %v8131_v26 }
 0x36d   :  { %6871 = vmatprep.subr.bf16.mxu0 %v8133_v27  ;;  %6887 = vmatprep.subr.bf16.mxu1 %v8135_v31 }
 0x370   :  { %6873 = vmatpush1.bf16.msra.mxu0 %v8138_v35  ;;  %6889 = vmatpush1.bf16.msra.mxu1 %v8142_v39  ;;  %v757_v35 = vld [vmem:[#allocation4 + $0x18] sm:$0xff] }
 0x371   :  { %6875 = vmatprep.subr.bf16.mxu0 %v8144_v40  ;;  %6891 = vmatprep.subr.bf16.mxu1 %v8147_v44 }
 0x374   :  { %6877 = vmatpush1.bf16.msra.mxu0 %v8150_v47  ;;  %6893 = vmatpush1.bf16.msra.mxu1 %v8154_v48 }
 0x375   :  { %6895 = vmatprep.subr.bf16.mxu0 %v8261_v34  ;;  %6911 = vmatprep.subr.bf16.mxu1 %v8263_v41 }
 0x43a   :  { %v859_v9 = vpop.f32.mrb[6].mxu0  ;;  %v930_v13 = vpop.f32.mrb[6].mxu1 }
 0x43b   :  { %v861_v17 = vpop.f32.mrb[7].mxu0  ;;  %v932_v18 = vpop.f32.mrb[7].mxu1 }
 0x43c   :  { %v939_v22 = vcombine.low %v859_v9, %v861_v17  ;;  %v940_v26 = vcombine.low %v930_v13, %v932_v18  ;;  %v1243_v9 = vld [vmem:[#allocation7 + $0xb8] sm:$0xff]  ;;  %v1236_v13 = vld [vmem:[#allocation7 + $0x80] sm:$0xff] }
 0x43d   :  { %v1240_v17 = vld [vmem:[#allocation7 + $0xa0] sm:$0xff]  ;;  %v8287_v18 = vpack.c.bf16 %v1243_v9, %v1239_v62 }
 0x43e   :  { %v947_v27 = vrot.slane %v939_v22, %v8181_v56  ;;  %v954_v31 = vrot.slane %v940_v26, %v8181_v56  ;;  %v8289_v22 = vpack.c.bf16 %v1240_v17, %v1236_v13  ;;  %v1238_v26 = vld [vmem:[#allocation7 + $0x90] sm:$0xff] }
 0x440   :  { %v955_v39 = vcombine.low %v947_v27, %v954_v31  ;;  %v1242_v27 = vld [vmem:[#allocation7 + $0xb0] sm:$0xff] }
 0x441   :  { %v8292_v31 = vpack.c.bf16 %v1242_v27, %v1238_v26 }
 0x442   :  { %v957_v1 = vadd.f32 %v955_v39, %v757_v35  ;;  %v1245_v35 = vld [vmem:[#allocation7 + $0xc8] sm:$0xff] }
 0x443   :  { %v1249_v39 = vld [vmem:[#allocation7 + $0xe8] sm:$0xff] }
 0x444   :  { %v958_v40 = vmul.f32 0.5, %v957_v1  ;;  %v963_v2 = vrot.slane %v957_v1, 2  ;;  %v969_v47 = vrot.slane %v957_v1, 4  ;;  %v972_v48 = vrot.slane %v957_v1, 6  ;;  %v1247_v1 = vld [vmem:[#allocation7 + $0xd8] sm:$0xff] }
 0x446   :  { %7684 = vtanh.f32 %v958_v40  ;;  %v965_v44 = vmul.f32 0.5, %v963_v2  ;;  %v974_v3 = vmul.f32 0.5, %v972_v48  ;;  %v8297_v40 = vpack.c.bf16 %v1249_v39, %v1245_v35  ;;  %v1251_v2 = vld [vmem:[#allocation7 + $0xf8] sm:$0xff] }
 0x447   :  { %v8299_v48 = vpack.c.bf16 %v1251_v2, %v1247_v1 }
 0x448   :  { %7686 = vtanh.f32 %v965_v44  ;;  %v1244_v44 = vld [vmem:[#allocation7 + $0xc0] sm:$0xff] }
 0x449   :  { %7688 = vtanh.f32 %v969_v47  ;;  %v1248_v47 = vld [vmem:[#allocation7 + $0xe0] sm:$0xff] }
 0x44a   :  { %7690 = vtanh.f32 %v974_v3  ;;  %v8301_v3 = vpack.c.bf16 %v1248_v47, %v1244_v44  ;;  %v1219_v44 = vld [vmem:[#allocation4 + $0x28] sm:$0xff] }
 0x450   :  { %v7685_v5 = vpop.eup %7684 }
 0x451   :  { %v960_v6 = vmul.f32 0.5, %v7685_v5  ;;  %v1246_v5 = vld [vmem:[#allocation7 + $0xd0] sm:$0xff] }
 0x452   :  { %v7687_v7 = vpop.eup %7686 }
 0x453   :  { %v961_v10 = vadd.f32 0.5, %v960_v6  ;;  %v967_v11 = vmul.f32 0.5, %v7687_v7  ;;  %v7689_v14 = vpop.eup %7688  ;;  %v1250_v6 = vld [vmem:[#allocation7 + $0xf0] sm:$0xff] }
 0x454   :  { %v7691_v21 = vpop.eup %7690  ;;  %v8304_v7 = vpack.c.bf16 %v1250_v6, %v1246_v5 }
 0x455   :  { %v968_v12 = vadd.f32 0.5, %v967_v11  ;;  %v980_v19 = vmul.f32 %v7689_v14, %v961_v10  ;;  %v976_v23 = vmul.f32 0.5, %v7691_v21  ;;  %v988_v21 = vld [vmem:[#allocation4 + $0x20] sm:$0xff] }
 0x457   :  { %v979_v16 = vmul.f32 %v978_v15, %v968_v12  ;;  %v977_v24 = vadd.f32 0.5, %v976_v23 }
 0x459   :  { %v981_v20 = vadd.f32 %v980_v19, %v979_v16 }
 0x45b   :  { %982 = vst.msk [vmem:[#allocation3] sm:$0x3] %vm59_vm0, %v981_v20  ;;  %7692 = vtanh.f32 %v981_v20 }
 0x462   :  { %v1209_v49 = vld [vmem:[#allocation3] sm:$0x3] }
 0x465   :  { %v7693_v25 = vpop.eup %7692 }
 0x466   :  { %v984_v28 = vmul.f32 %v7693_v25, %v977_v24 }
 0x468   :  { %985 = vst.msk [vmem:[#allocation2] sm:$0x3] %vm59_vm0, %v984_v28 }
 0x46f   :  { %v986_v29 = vld [vmem:[#allocation2] sm:$0x3] }
 0x470   :  { %6656 = vmatmul.mubr.msk.f32.vlgmr.msra.gmra.mrb[8].mxu0 %vm96_vm1, %v986_v29  ;;  %6657 = vmatmul.mubr.msk.f32.vlgmr.msra.gmra.mrb[8].mxu1 %vm96_vm1, %v986_v29 }
 0x471   :  { %1319 = vmatprep.mubr.f32.mxu0 %v8039_v0  ;;  %1390 = vmatprep.mubr.f32.mxu1 %v8039_v0 }
 0x472   :  { %6897 = vmatpush1.bf16.msra.mxu0 %v8265_v4  ;;  %6913 = vmatpush1.bf16.msra.mxu1 %v8268_v43 }
 0x473   :  { %6899 = vmatprep.subr.bf16.mxu0 %v8273_v50  ;;  %6915 = vmatprep.subr.bf16.mxu1 %v8275_v54 }
 0x476   :  { %6901 = vmatpush1.bf16.msra.mxu0 %v8277_v55  ;;  %6917 = vmatpush1.bf16.msra.mxu1 %v8280_v59 }
 0x477   :  { %6903 = vmatprep.subr.bf16.mxu0 %v8285_v63  ;;  %6919 = vmatprep.subr.bf16.mxu1 %v8287_v18 }
 0x47a   :  { %6905 = vmatpush1.bf16.msra.mxu0 %v8289_v22  ;;  %6921 = vmatpush1.bf16.msra.mxu1 %v8292_v31 }
 0x47b   :  { %6907 = vmatprep.subr.bf16.mxu0 %v8297_v40  ;;  %6923 = vmatprep.subr.bf16.mxu1 %v8299_v48 }
 0x47e   :  { %6909 = vmatpush1.bf16.msra.mxu0 %v8301_v3  ;;  %6925 = vmatpush1.bf16.msra.mxu1 %v8304_v7 }
 0x47f   :  { %6927 = vmatprep.subr.bf16.mxu0 %v8261_v34  ;;  %6943 = vmatprep.subr.bf16.mxu1 %v8263_v41 }
 0x543   :  { %v1090_v10 = vpop.f32.mrb[8].mxu0  ;;  %v1161_v11 = vpop.f32.mrb[8].mxu1 }
 0x544   :  { %v1092_v12 = vpop.f32.mrb[9].mxu0  ;;  %v1163_v14 = vpop.f32.mrb[9].mxu1 }
 0x545   :  { %v1170_v15 = vcombine.low %v1090_v10, %v1092_v12  ;;  %v1171_v16 = vcombine.low %v1161_v11, %v1163_v14 }
 0x547   :  { %v1178_v19 = vrot.slane %v1170_v15, %v8181_v56  ;;  %v1185_v20 = vrot.slane %v1171_v16, %v8181_v56 }
 0x549   :  { %v1186_v23 = vcombine.low %v1178_v19, %v1185_v20 }
 0x54b   :  { %v1188_v24 = vadd.f32 %v1186_v23, %v988_v21 }
 0x54d   :  { %v1189_v25 = vmul.f32 0.5, %v1188_v24  ;;  %v1194_v28 = vrot.slane %v1188_v24, 2  ;;  %v1200_v30 = vrot.slane %v1188_v24, 4  ;;  %v1203_v32 = vrot.slane %v1188_v24, 6 }
 0x54f   :  { %7694 = vtanh.f32 %v1189_v25  ;;  %v1196_v29 = vmul.f32 0.5, %v1194_v28  ;;  %v1205_v33 = vmul.f32 0.5, %v1203_v32 }
 0x551   :  { %7696 = vtanh.f32 %v1196_v29 }
 0x552   :  { %7698 = vtanh.f32 %v1200_v30 }
 0x553   :  { %7700 = vtanh.f32 %v1205_v33 }
 0x559   :  { %v7695_v36 = vpop.eup %7694 }
 0x55a   :  { %v1191_v37 = vmul.f32 0.5, %v7695_v36 }
 0x55b   :  { %v7697_v38 = vpop.eup %7696 }
 0x55c   :  { %v1192_v8 = vadd.f32 0.5, %v1191_v37  ;;  %v1198_v42 = vmul.f32 0.5, %v7697_v38  ;;  %v7699_v46 = vpop.eup %7698 }
 0x55d   :  { %v7701_v57 = vpop.eup %7700 }
 0x55e   :  { %v1199_v45 = vadd.f32 0.5, %v1198_v42  ;;  %v1211_v52 = vmul.f32 %v7699_v46, %v1192_v8  ;;  %v1207_v58 = vmul.f32 0.5, %v7701_v57 }
 0x560   :  { %v1210_v51 = vmul.f32 %v1209_v49, %v1199_v45  ;;  %v1208_v60 = vadd.f32 0.5, %v1207_v58 }
 0x562   :  { %v1212_v53 = vadd.f32 %v1211_v52, %v1210_v51 }
 0x564   :  { %1213 = vst.msk [vmem:[#allocation3] sm:$0x3] %vm59_vm0, %v1212_v53  ;;  %7702 = vtanh.f32 %v1212_v53 }
 0x56b   :  { %v1440_v28 = vld [vmem:[#allocation3] sm:$0x3] }
 0x56e   :  { %v7703_v61 = vpop.eup %7702 }
 0x56f   :  { %v1215_v62 = vmul.f32 %v7703_v61, %v1208_v60  ;;  %v1450_v60 = vld [vmem:[#allocation4 + $0x30] sm:$0xff] }
 0x571   :  { %1216 = vst.msk [vmem:[#allocation2] sm:$0x3] %vm59_vm0, %v1215_v62 }
 0x578   :  { %v1217_v9 = vld [vmem:[#allocation2] sm:$0x3] }
 0x579   :  { %6658 = vmatmul.mubr.msk.f32.vlgmr.msra.gmra.mrb[10].mxu0 %vm96_vm1, %v1217_v9  ;;  %6659 = vmatmul.mubr.msk.f32.vlgmr.msra.gmra.mrb[10].mxu1 %vm96_vm1, %v1217_v9 }
 0x57a   :  { %6929 = vmatpush1.bf16.msra.mxu0 %v8265_v4  ;;  %6945 = vmatpush1.bf16.msra.mxu1 %v8268_v43 }
 0x57b   :  { %6931 = vmatprep.subr.bf16.mxu0 %v8273_v50  ;;  %6947 = vmatprep.subr.bf16.mxu1 %v8275_v54 }
 0x57c   :  { %1550 = vmatprep.mubr.f32.mxu0 %v8039_v0  ;;  %1621 = vmatprep.mubr.f32.mxu1 %v8039_v0 }
 0x57e   :  { %6933 = vmatpush1.bf16.msra.mxu0 %v8277_v55  ;;  %6949 = vmatpush1.bf16.msra.mxu1 %v8280_v59 }
 0x57f   :  { %6935 = vmatprep.subr.bf16.mxu0 %v8285_v63  ;;  %6951 = vmatprep.subr.bf16.mxu1 %v8287_v18 }
 0x582   :  { %6937 = vmatpush1.bf16.msra.mxu0 %v8289_v22  ;;  %6953 = vmatpush1.bf16.msra.mxu1 %v8292_v31 }
 0x583   :  { %6939 = vmatprep.subr.bf16.mxu0 %v8297_v40  ;;  %6955 = vmatprep.subr.bf16.mxu1 %v8299_v48 }
 0x586   :  { %6941 = vmatpush1.bf16.msra.mxu0 %v8301_v3  ;;  %6957 = vmatpush1.bf16.msra.mxu1 %v8304_v7 }
 0x587   :  { %6959 = vmatprep.subr.bf16.mxu0 %v8261_v34  ;;  %6975 = vmatprep.subr.bf16.mxu1 %v8263_v41 }
 0x64c   :  { %v1321_v13 = vpop.f32.mrb[10].mxu0  ;;  %v1392_v17 = vpop.f32.mrb[10].mxu1 }
 0x64d   :  { %v1323_v26 = vpop.f32.mrb[11].mxu0  ;;  %v1394_v27 = vpop.f32.mrb[11].mxu1 }
 0x64e   :  { %v1401_v35 = vcombine.low %v1321_v13, %v1323_v26  ;;  %v1402_v39 = vcombine.low %v1392_v17, %v1394_v27 }
 0x650   :  { %v1409_v1 = vrot.slane %v1401_v35, %v8181_v56  ;;  %v1416_v2 = vrot.slane %v1402_v39, %v8181_v56 }
 0x652   :  { %v1417_v47 = vcombine.low %v1409_v1, %v1416_v2 }
 0x654   :  { %v1419_v5 = vadd.f32 %v1417_v47, %v1219_v44 }
 0x656   :  { %v1420_v6 = vmul.f32 0.5, %v1419_v5  ;;  %v1425_v10 = vrot.slane %v1419_v5, 2  ;;  %v1431_v12 = vrot.slane %v1419_v5, 4  ;;  %v1434_v14 = vrot.slane %v1419_v5, 6 }
 0x658   :  { %7704 = vtanh.f32 %v1420_v6  ;;  %v1427_v11 = vmul.f32 0.5, %v1425_v10  ;;  %v1436_v15 = vmul.f32 0.5, %v1434_v14 }
 0x65a   :  { %7706 = vtanh.f32 %v1427_v11 }
 0x65b   :  { %7708 = vtanh.f32 %v1431_v12 }
 0x65c   :  { %7710 = vtanh.f32 %v1436_v15 }
 0x662   :  { %v7705_v16 = vpop.eup %7704 }
 0x663   :  { %v1422_v19 = vmul.f32 0.5, %v7705_v16 }
 0x664   :  { %v7707_v20 = vpop.eup %7706 }
 0x665   :  { %v1423_v21 = vadd.f32 0.5, %v1422_v19  ;;  %v1429_v23 = vmul.f32 0.5, %v7707_v20  ;;  %v7709_v25 = vpop.eup %7708 }
 0x666   :  { %v7711_v33 = vpop.eup %7710 }
 0x667   :  { %v1430_v24 = vadd.f32 0.5, %v1429_v23  ;;  %v1442_v30 = vmul.f32 %v7709_v25, %v1423_v21  ;;  %v1438_v36 = vmul.f32 0.5, %v7711_v33 }
 0x669   :  { %v1441_v29 = vmul.f32 %v1440_v28, %v1430_v24  ;;  %v1439_v37 = vadd.f32 0.5, %v1438_v36 }
 0x66b   :  { %v1443_v32 = vadd.f32 %v1442_v30, %v1441_v29 }
 0x66d   :  { %1444 = vst.msk [vmem:[#allocation3] sm:$0x3] %vm59_vm0, %v1443_v32  ;;  %7712 = vtanh.f32 %v1443_v32 }
 0x674   :  { %v1671_v10 = vld [vmem:[#allocation3] sm:$0x3] }
 0x677   :  { %v7713_v38 = vpop.eup %7712 }
 0x678   :  { %v1446_v8 = vmul.f32 %v7713_v38, %v1439_v37  ;;  %v1681_v37 = vld [vmem:[#allocation4 + $0x38] sm:$0xff] }
 0x67a   :  { %1447 = vst.msk [vmem:[#allocation2] sm:$0x3] %vm59_vm0, %v1446_v8 }
 0x681   :  { %v1448_v42 = vld [vmem:[#allocation2] sm:$0x3] }
 0x682   :  { %6660 = vmatmul.mubr.msk.f32.vlgmr.msra.gmra.mrb[12].mxu0 %vm96_vm1, %v1448_v42  ;;  %6661 = vmatmul.mubr.msk.f32.vlgmr.msra.gmra.mrb[12].mxu1 %vm96_vm1, %v1448_v42 }
 0x683   :  { %6961 = vmatpush1.bf16.msra.mxu0 %v8265_v4  ;;  %6977 = vmatpush1.bf16.msra.mxu1 %v8268_v43 }
 0x684   :  { %6963 = vmatprep.subr.bf16.mxu0 %v8273_v50  ;;  %6979 = vmatprep.subr.bf16.mxu1 %v8275_v54 }
 0x685   :  { %1781 = vmatprep.mubr.f32.mxu0 %v8039_v0  ;;  %1852 = vmatprep.mubr.f32.mxu1 %v8039_v0 }
 0x687   :  { %6965 = vmatpush1.bf16.msra.mxu0 %v8277_v55  ;;  %6981 = vmatpush1.bf16.msra.mxu1 %v8280_v59 }
 0x688   :  { %6967 = vmatprep.subr.bf16.mxu0 %v8285_v63  ;;  %6983 = vmatprep.subr.bf16.mxu1 %v8287_v18 }
 0x68b   :  { %6969 = vmatpush1.bf16.msra.mxu0 %v8289_v22  ;;  %6985 = vmatpush1.bf16.msra.mxu1 %v8292_v31 }
 0x68c   :  { %6971 = vmatprep.subr.bf16.mxu0 %v8297_v40  ;;  %6987 = vmatprep.subr.bf16.mxu1 %v8299_v48 }
 0x68f   :  { %6973 = vmatpush1.bf16.msra.mxu0 %v8301_v3  ;;  %6989 = vmatpush1.bf16.msra.mxu1 %v8304_v7 }
 0x690   :  { %6991 = vmatprep.subr.bf16.mxu0 %v8261_v34  ;;  %7007 = vmatprep.subr.bf16.mxu1 %v8263_v41 }
 0x755   :  { %v1552_v45 = vpop.f32.mrb[12].mxu0  ;;  %v1623_v46 = vpop.f32.mrb[12].mxu1 }
 0x756   :  { %v1554_v49 = vpop.f32.mrb[13].mxu0  ;;  %v1625_v51 = vpop.f32.mrb[13].mxu1 }
 0x757   :  { %v1632_v52 = vcombine.low %v1552_v45, %v1554_v49  ;;  %v1633_v53 = vcombine.low %v1623_v46, %v1625_v51 }
 0x759   :  { %v1640_v57 = vrot.slane %v1632_v52, %v8181_v56  ;;  %v1647_v58 = vrot.slane %v1633_v53, %v8181_v56 }
 0x75b   :  { %v1648_v61 = vcombine.low %v1640_v57, %v1647_v58 }
 0x75d   :  { %v1650_v62 = vadd.f32 %v1648_v61, %v1450_v60 }
 0x75f   :  { %v1651_v9 = vmul.f32 0.5, %v1650_v62  ;;  %v1656_v13 = vrot.slane %v1650_v62, 2  ;;  %v1662_v26 = vrot.slane %v1650_v62, 4  ;;  %v1665_v27 = vrot.slane %v1650_v62, 6 }
 0x761   :  { %7714 = vtanh.f32 %v1651_v9  ;;  %v1658_v17 = vmul.f32 0.5, %v1656_v13  ;;  %v1667_v35 = vmul.f32 0.5, %v1665_v27 }
 0x763   :  { %7716 = vtanh.f32 %v1658_v17 }
 0x764   :  { %7718 = vtanh.f32 %v1662_v26 }
 0x765   :  { %7720 = vtanh.f32 %v1667_v35 }
 0x76b   :  { %v7715_v39 = vpop.eup %7714 }
 0x76c   :  { %v1653_v1 = vmul.f32 0.5, %v7715_v39 }
 0x76d   :  { %v7717_v2 = vpop.eup %7716 }
 0x76e   :  { %v1654_v44 = vadd.f32 0.5, %v1653_v1  ;;  %v1660_v47 = vmul.f32 0.5, %v7717_v2  ;;  %v7719_v6 = vpop.eup %7718 }
 0x76f   :  { %v7721_v15 = vpop.eup %7720 }
 0x770   :  { %v1661_v5 = vadd.f32 0.5, %v1660_v47  ;;  %v1673_v12 = vmul.f32 %v7719_v6, %v1654_v44  ;;  %v1669_v16 = vmul.f32 0.5, %v7721_v15 }
 0x772   :  { %v1672_v11 = vmul.f32 %v1671_v10, %v1661_v5  ;;  %v1670_v19 = vadd.f32 0.5, %v1669_v16 }
 0x774   :  { %v1674_v14 = vadd.f32 %v1673_v12, %v1672_v11 }
 0x776   :  { %1675 = vst.msk [vmem:[#allocation3] sm:$0x3] %vm59_vm0, %v1674_v14  ;;  %7722 = vtanh.f32 %v1674_v14 }
 0x77d   :  { %v1902_v62 = vld [vmem:[#allocation3] sm:$0x3] }
 0x780   :  { %v7723_v20 = vpop.eup %7722 }
 0x781   :  { %v1677_v21 = vmul.f32 %v7723_v20, %v1670_v19 }
 0x783   :  { %1678 = vst.msk [vmem:[#allocation2] sm:$0x3] %vm59_vm0, %v1677_v21 }
 0x78a   :  { %v1679_v23 = vld [vmem:[#allocation2] sm:$0x3] }
 0x78b   :  { %6662 = vmatmul.mubr.msk.f32.vlgmr.msra.gmra.mrb[14].mxu0 %vm96_vm1, %v1679_v23  ;;  %6663 = vmatmul.mubr.msk.f32.vlgmr.msra.gmra.mrb[14].mxu1 %vm96_vm1, %v1679_v23 }
 0x78c   :  { %6993 = vmatpush1.bf16.msra.mxu0 %v8265_v4  ;;  %7009 = vmatpush1.bf16.msra.mxu1 %v8268_v43 }
 0x78d   :  { %6995 = vmatprep.subr.bf16.mxu0 %v8273_v50  ;;  %7011 = vmatprep.subr.bf16.mxu1 %v8275_v54 }
 0x78e   :  { %2012 = vmatprep.mubr.f32.mxu0 %v8039_v0  ;;  %2083 = vmatprep.mubr.f32.mxu1 %v8039_v0 }
 0x790   :  { %6997 = vmatpush1.bf16.msra.mxu0 %v8277_v55  ;;  %7013 = vmatpush1.bf16.msra.mxu1 %v8280_v59 }
 0x791   :  { %6999 = vmatprep.subr.bf16.mxu0 %v8285_v63  ;;  %7015 = vmatprep.subr.bf16.mxu1 %v8287_v18 }
 0x794   :  { %7001 = vmatpush1.bf16.msra.mxu0 %v8289_v22  ;;  %7017 = vmatpush1.bf16.msra.mxu1 %v8292_v31 }
 0x795   :  { %7003 = vmatprep.subr.bf16.mxu0 %v8297_v40  ;;  %7019 = vmatprep.subr.bf16.mxu1 %v8299_v48 }
 0x798   :  { %7005 = vmatpush1.bf16.msra.mxu0 %v8301_v3  ;;  %7021 = vmatpush1.bf16.msra.mxu1 %v8304_v7 }
 0x799   :  { %7023 = vmatprep.subr.bf16.mxu0 %v8261_v34  ;;  %7039 = vmatprep.subr.bf16.mxu1 %v8263_v41 }
 0x85e   :  { %v1783_v24 = vpop.f32.mrb[14].mxu0  ;;  %v1854_v25 = vpop.f32.mrb[14].mxu1 }
 0x85f   :  { %v1785_v28 = vpop.f32.mrb[15].mxu0  ;;  %v1856_v29 = vpop.f32.mrb[15].mxu1 }
 0x860   :  { %v1863_v30 = vcombine.low %v1783_v24, %v1785_v28  ;;  %v1864_v32 = vcombine.low %v1854_v25, %v1856_v29 }
 0x862   :  { %v1871_v33 = vrot.slane %v1863_v30, %v8181_v56  ;;  %v1878_v36 = vrot.slane %v1864_v32, %v8181_v56 }
 0x864   :  { %v1879_v38 = vcombine.low %v1871_v33, %v1878_v36  ;;  %v2376_v33 = vld [vmem:[#allocation7 + $0x8] sm:$0xff] }
 0x865   :  { %v2380_v36 = vld [vmem:[#allocation7 + $0x28] sm:$0xff] }
 0x866   :  { %v1881_v8 = vadd.f32 %v1879_v38, %v1681_v37  ;;  %v2378_v37 = vld [vmem:[#allocation7 + $0x18] sm:$0xff]  ;;  %v8413_v38 = vpack.c.bf16 %v2380_v36, %v2376_v33 }
 0x868   :  { %v1882_v42 = vmul.f32 0.5, %v1881_v8  ;;  %v1887_v45 = vrot.slane %v1881_v8, 2  ;;  %v1893_v34 = vrot.slane %v1881_v8, 4  ;;  %v1896_v41 = vrot.slane %v1881_v8, 6  ;;  %v2382_v8 = vld [vmem:[#allocation7 + $0x38] sm:$0xff] }
 0x86a   :  { %7724 = vtanh.f32 %v1882_v42  ;;  %v1889_v46 = vmul.f32 0.5, %v1887_v45  ;;  %v1898_v49 = vmul.f32 0.5, %v1896_v41  ;;  %v2375_v42 = vld [vmem:[#allocation7] sm:$0xff]  ;;  %v2377_v41 = vld [vmem:[#allocation7 + $0x10] sm:$0xff] }
 0x86b   :  { %v2379_v45 = vld [vmem:[#allocation7 + $0x20] sm:$0xff] }
 0x86c   :  { %7726 = vtanh.f32 %v1889_v46  ;;  %v8415_v46 = vpack.c.bf16 %v2382_v8, %v2378_v37 }
 0x86d   :  { %7728 = vtanh.f32 %v1893_v34  ;;  %v8417_v34 = vpack.c.bf16 %v2379_v45, %v2375_v42 }
 0x86e   :  { %7730 = vtanh.f32 %v1898_v49  ;;  %v2381_v49 = vld [vmem:[#allocation7 + $0x30] sm:$0xff] }
 0x874   :  { %v7725_v51 = vpop.eup %7724 }
 0x875   :  { %v1884_v52 = vmul.f32 0.5, %v7725_v51  ;;  %v8420_v51 = vpack.c.bf16 %v2381_v49, %v2377_v41 }
 0x876   :  { %v7727_v53 = vpop.eup %7726 }
 0x877   :  { %v1885_v57 = vadd.f32 0.5, %v1884_v52  ;;  %v1891_v58 = vmul.f32 0.5, %v7727_v53  ;;  %v7729_v61 = vpop.eup %7728  ;;  %v2384_v52 = vld [vmem:[#allocation7 + $0x48] sm:$0xff] }
 0x878   :  { %v7731_v26 = vpop.eup %7730  ;;  %v2388_v53 = vld [vmem:[#allocation7 + $0x68] sm:$0xff] }
 0x879   :  { %v1892_v60 = vadd.f32 0.5, %v1891_v58  ;;  %v1904_v13 = vmul.f32 %v7729_v61, %v1885_v57  ;;  %v1900_v27 = vmul.f32 0.5, %v7731_v26  ;;  %v2386_v57 = vld [vmem:[#allocation7 + $0x58] sm:$0xff]  ;;  %v8425_v58 = vpack.c.bf16 %v2388_v53, %v2384_v52  ;;  %v2383_v61 = vld [vmem:[#allocation7 + $0x40] sm:$0xff]  ;;  %v2389_v26 = vld [vmem:[#allocation7 + $0x70] sm:$0xff] }
 0x87b   :  { %v1903_v9 = vmul.f32 %v1902_v62, %v1892_v60  ;;  %v1901_v35 = vadd.f32 0.5, %v1900_v27  ;;  %v2390_v60 = vld [vmem:[#allocation7 + $0x78] sm:$0xff]  ;;  %v2387_v62 = vld [vmem:[#allocation7 + $0x60] sm:$0xff] }
 0x87d   :  { %v1905_v17 = vadd.f32 %v1904_v13, %v1903_v9  ;;  %v8427_v9 = vpack.c.bf16 %v2390_v60, %v2386_v57  ;;  %v8429_v13 = vpack.c.bf16 %v2387_v62, %v2383_v61 }
 0x87f   :  { %1906 = vst.msk [vmem:[#allocation3] sm:$0x3] %vm59_vm0, %v1905_v17  ;;  %7732 = vtanh.f32 %v1905_v17  ;;  %v2385_v17 = vld [vmem:[#allocation7 + $0x50] sm:$0xff] }
 0x880   :  { %v8432_v27 = vpack.c.bf16 %v2389_v26, %v2385_v17 }
 0x886   :  { %v2133_v19 = vld [vmem:[#allocation3] sm:$0x3] }
 0x889   :  { %v7733_v39 = vpop.eup %7732 }
 0x88a   :  { %v1908_v1 = vmul.f32 %v7733_v39, %v1901_v35  ;;  %v2392_v35 = vld [vmem:[#allocation7 + $0x88] sm:$0xff] }
 0x88b   :  { %v2396_v39 = vld [vmem:[#allocation7 + $0xa8] sm:$0xff] }
 0x88c   :  { %1909 = vst.msk [vmem:[#allocation2] sm:$0x3] %vm59_vm0, %v1908_v1  ;;  %v2394_v1 = vld [vmem:[#allocation7 + $0x98] sm:$0xff] }
 0x893   :  { %v1910_v2 = vld [vmem:[#allocation2] sm:$0x3] }
 0x894   :  { %6664 = vmatmul.mubr.msk.f32.vlgmr.msra.gmra.mrb[16].mxu0 %vm96_vm1, %v1910_v2  ;;  %6665 = vmatmul.mubr.msk.f32.vlgmr.msra.gmra.mrb[16].mxu1 %vm96_vm1, %v1910_v2  ;;  %v8437_v2 = vpack.c.bf16 %v2396_v39, %v2392_v35 }
 0x895   :  { %7025 = vmatpush1.bf16.msra.mxu0 %v8265_v4  ;;  %7041 = vmatpush1.bf16.msra.mxu1 %v8268_v43 }
 0x896   :  { %7027 = vmatprep.subr.bf16.mxu0 %v8273_v50  ;;  %7043 = vmatprep.subr.bf16.mxu1 %v8275_v54 }
 0x897   :  { %2243 = vmatprep.mubr.f32.mxu0 %v8039_v0  ;;  %2314 = vmatprep.mubr.f32.mxu1 %v8039_v0 }
 0x899   :  { %7029 = vmatpush1.bf16.msra.mxu0 %v8277_v55  ;;  %7045 = vmatpush1.bf16.msra.mxu1 %v8280_v59 }
 0x89a   :  { %7031 = vmatprep.subr.bf16.mxu0 %v8285_v63  ;;  %7047 = vmatprep.subr.bf16.mxu1 %v8287_v18 }
 0x89d   :  { %7033 = vmatpush1.bf16.msra.mxu0 %v8289_v22  ;;  %7049 = vmatpush1.bf16.msra.mxu1 %v8292_v31  ;;  %v1912_v22 = vld [vmem:[#allocation4 + $0x40] sm:$0xff] }
 0x89e   :  { %7035 = vmatprep.subr.bf16.mxu0 %v8297_v40  ;;  %7051 = vmatprep.subr.bf16.mxu1 %v8299_v48 }
 0x8a1   :  { %7037 = vmatpush1.bf16.msra.mxu0 %v8301_v3  ;;  %7053 = vmatpush1.bf16.msra.mxu1 %v8304_v7 }
 0x8a2   :  { %7055 = vmatprep.subr.bf16.mxu0 %v8413_v38  ;;  %7071 = vmatprep.subr.bf16.mxu1 %v8415_v46 }
 0x967   :  { %v2014_v4 = vpop.f32.mrb[16].mxu0  ;;  %v2085_v43 = vpop.f32.mrb[16].mxu1 }
 0x968   :  { %v2016_v50 = vpop.f32.mrb[17].mxu0  ;;  %v2087_v54 = vpop.f32.mrb[17].mxu1 }
 0x969   :  { %v2094_v55 = vcombine.low %v2014_v4, %v2016_v50  ;;  %v2095_v59 = vcombine.low %v2085_v43, %v2087_v54  ;;  %v2398_v4 = vld [vmem:[#allocation7 + $0xb8] sm:$0xff]  ;;  %v2391_v43 = vld [vmem:[#allocation7 + $0x80] sm:$0xff] }
 0x96a   :  { %v2395_v50 = vld [vmem:[#allocation7 + $0xa0] sm:$0xff]  ;;  %v8439_v54 = vpack.c.bf16 %v2398_v4, %v2394_v1 }
 0x96b   :  { %v2102_v63 = vrot.slane %v2094_v55, %v8181_v56  ;;  %v2109_v18 = vrot.slane %v2095_v59, %v8181_v56  ;;  %v8441_v55 = vpack.c.bf16 %v2395_v50, %v2391_v43  ;;  %v2393_v59 = vld [vmem:[#allocation7 + $0x90] sm:$0xff] }
 0x96d   :  { %v2110_v31 = vcombine.low %v2102_v63, %v2109_v18  ;;  %v2397_v63 = vld [vmem:[#allocation7 + $0xb0] sm:$0xff]  ;;  %v2400_v18 = vld [vmem:[#allocation7 + $0xc8] sm:$0xff] }
 0x96f   :  { %v2112_v44 = vadd.f32 %v2110_v31, %v1912_v22  ;;  %v8444_v22 = vpack.c.bf16 %v2397_v63, %v2393_v59  ;;  %v2404_v31 = vld [vmem:[#allocation7 + $0xe8] sm:$0xff] }
 0x971   :  { %v2113_v40 = vmul.f32 0.5, %v2112_v44  ;;  %v2118_v47 = vrot.slane %v2112_v44, 2  ;;  %v2124_v3 = vrot.slane %v2112_v44, 4  ;;  %v2127_v7 = vrot.slane %v2112_v44, 6  ;;  %v2402_v44 = vld [vmem:[#allocation7 + $0xd8] sm:$0xff] }
 0x973   :  { %7734 = vtanh.f32 %v2113_v40  ;;  %v2120_v48 = vmul.f32 0.5, %v2118_v47  ;;  %v2129_v5 = vmul.f32 0.5, %v2127_v7  ;;  %v2406_v40 = vld [vmem:[#allocation7 + $0xf8] sm:$0xff]  ;;  %v8448_v47 = vpack.c.bf16 %v2404_v31, %v2400_v18  ;;  %v2403_v7 = vld [vmem:[#allocation7 + $0xe0] sm:$0xff] }
 0x975   :  { %7736 = vtanh.f32 %v2120_v48  ;;  %v8450_v48 = vpack.c.bf16 %v2406_v40, %v2402_v44 }
 0x976   :  { %7738 = vtanh.f32 %v2124_v3  ;;  %v2399_v3 = vld [vmem:[#allocation7 + $0xc0] sm:$0xff] }
 0x977   :  { %7740 = vtanh.f32 %v2129_v5  ;;  %v2401_v5 = vld [vmem:[#allocation7 + $0xd0] sm:$0xff] }
 0x97d   :  { %v7735_v6 = vpop.eup %7734 }
 0x97e   :  { %v2115_v10 = vmul.f32 0.5, %v7735_v6  ;;  %v8453_v6 = vpack.c.bf16 %v2403_v7, %v2399_v3  ;;  %v2374_v3 = vld [vmem:[#allocation4 + $0x50] sm:$0xff] }
 0x97f   :  { %v7737_v11 = vpop.eup %7736 }
 0x980   :  { %v2116_v12 = vadd.f32 0.5, %v2115_v10  ;;  %v2122_v14 = vmul.f32 0.5, %v7737_v11  ;;  %v7739_v16 = vpop.eup %7738  ;;  %v2405_v10 = vld [vmem:[#allocation7 + $0xf0] sm:$0xff] }
 0x981   :  { %v7741_v24 = vpop.eup %7740  ;;  %v8457_v11 = vpack.c.bf16 %v2405_v10, %v2401_v5 }
 0x982   :  { %v2123_v15 = vadd.f32 0.5, %v2122_v14  ;;  %v2135_v21 = vmul.f32 %v7739_v16, %v2116_v12  ;;  %v2131_v25 = vmul.f32 0.5, %v7741_v24  ;;  %v2143_v24 = vld [vmem:[#allocation4 + $0x48] sm:$0xff] }
 0x984   :  { %v2134_v20 = vmul.f32 %v2133_v19, %v2123_v15  ;;  %v2132_v28 = vadd.f32 0.5, %v2131_v25 }
 0x986   :  { %v2136_v23 = vadd.f32 %v2135_v21, %v2134_v20 }
 0x988   :  { %2137 = vst.msk [vmem:[#allocation3] sm:$0x3] %vm59_vm0, %v2136_v23  ;;  %7742 = vtanh.f32 %v2136_v23 }
 0x98f   :  { %v2364_v57 = vld [vmem:[#allocation3] sm:$0x3] }
 0x992   :  { %v7743_v29 = vpop.eup %7742 }
 0x993   :  { %v2139_v30 = vmul.f32 %v7743_v29, %v2132_v28 }
 0x995   :  { %2140 = vst.msk [vmem:[#allocation2] sm:$0x3] %vm59_vm0, %v2139_v30 }
 0x99c   :  { %v2141_v32 = vld [vmem:[#allocation2] sm:$0x3] }
 0x99d   :  { %6666 = vmatmul.mubr.msk.f32.vlgmr.msra.gmra.mrb[18].mxu0 %vm96_vm1, %v2141_v32  ;;  %6667 = vmatmul.mubr.msk.f32.vlgmr.msra.gmra.mrb[18].mxu1 %vm96_vm1, %v2141_v32 }
 0x99e   :  { %2474 = vmatprep.mubr.f32.mxu0 %v8039_v0  ;;  %2545 = vmatprep.mubr.f32.mxu1 %v8039_v0 }
 0x99f   :  { %7057 = vmatpush1.bf16.msra.mxu0 %v8417_v34  ;;  %7073 = vmatpush1.bf16.msra.mxu1 %v8420_v51 }
 0x9a0   :  { %7059 = vmatprep.subr.bf16.mxu0 %v8425_v58  ;;  %7075 = vmatprep.subr.bf16.mxu1 %v8427_v9 }
 0x9a3   :  { %7061 = vmatpush1.bf16.msra.mxu0 %v8429_v13  ;;  %7077 = vmatpush1.bf16.msra.mxu1 %v8432_v27 }
 0x9a4   :  { %7063 = vmatprep.subr.bf16.mxu0 %v8437_v2  ;;  %7079 = vmatprep.subr.bf16.mxu1 %v8439_v54 }
 0x9a7   :  { %7065 = vmatpush1.bf16.msra.mxu0 %v8441_v55  ;;  %7081 = vmatpush1.bf16.msra.mxu1 %v8444_v22 }
 0x9a8   :  { %7067 = vmatprep.subr.bf16.mxu0 %v8448_v47  ;;  %7083 = vmatprep.subr.bf16.mxu1 %v8450_v48 }
 0x9ab   :  { %7069 = vmatpush1.bf16.msra.mxu0 %v8453_v6  ;;  %7085 = vmatpush1.bf16.msra.mxu1 %v8457_v11 }
 0x9ac   :  { %7087 = vmatprep.subr.bf16.mxu0 %v8413_v38  ;;  %7103 = vmatprep.subr.bf16.mxu1 %v8415_v46 }
 0xa70   :  { %v2245_v12 = vpop.f32.mrb[18].mxu0  ;;  %v2316_v14 = vpop.f32.mrb[18].mxu1 }
 0xa71   :  { %v2247_v15 = vpop.f32.mrb[19].mxu0  ;;  %v2318_v16 = vpop.f32.mrb[19].mxu1 }
 0xa72   :  { %v2325_v19 = vcombine.low %v2245_v12, %v2247_v15  ;;  %v2326_v20 = vcombine.low %v2316_v14, %v2318_v16 }
 0xa74   :  { %v2333_v21 = vrot.slane %v2325_v19, %v8181_v56  ;;  %v2340_v23 = vrot.slane %v2326_v20, %v8181_v56 }
 0xa76   :  { %v2341_v25 = vcombine.low %v2333_v21, %v2340_v23 }
 0xa78   :  { %v2343_v28 = vadd.f32 %v2341_v25, %v2143_v24 }
 0xa7a   :  { %v2344_v29 = vmul.f32 0.5, %v2343_v28  ;;  %v2349_v30 = vrot.slane %v2343_v28, 2  ;;  %v2355_v33 = vrot.slane %v2343_v28, 4  ;;  %v2358_v36 = vrot.slane %v2343_v28, 6 }
 0xa7c   :  { %7744 = vtanh.f32 %v2344_v29  ;;  %v2351_v32 = vmul.f32 0.5, %v2349_v30  ;;  %v2360_v37 = vmul.f32 0.5, %v2358_v36 }
 0xa7e   :  { %7746 = vtanh.f32 %v2351_v32 }
 0xa7f   :  { %7748 = vtanh.f32 %v2355_v33 }
 0xa80   :  { %7750 = vtanh.f32 %v2360_v37 }
 0xa86   :  { %v7745_v8 = vpop.eup %7744 }
 0xa87   :  { %v2346_v42 = vmul.f32 0.5, %v7745_v8 }
 0xa88   :  { %v7747_v45 = vpop.eup %7746 }
 0xa89   :  { %v2347_v41 = vadd.f32 0.5, %v2346_v42  ;;  %v2353_v49 = vmul.f32 0.5, %v7747_v45  ;;  %v7749_v53 = vpop.eup %7748 }
 0xa8a   :  { %v7751_v17 = vpop.eup %7750 }
 0xa8b   :  { %v2354_v52 = vadd.f32 0.5, %v2353_v49  ;;  %v2366_v61 = vmul.f32 %v7749_v53, %v2347_v41  ;;  %v2362_v26 = vmul.f32 0.5, %v7751_v17 }
 0xa8d   :  { %v2365_v60 = vmul.f32 %v2364_v57, %v2354_v52  ;;  %v2363_v35 = vadd.f32 0.5, %v2362_v26 }
 0xa8f   :  { %v2367_v62 = vadd.f32 %v2366_v61, %v2365_v60 }
 0xa91   :  { %2368 = vst.msk [vmem:[#allocation3] sm:$0x3] %vm59_vm0, %v2367_v62  ;;  %7752 = vtanh.f32 %v2367_v62 }
 0xa98   :  { %v2595_v30 = vld [vmem:[#allocation3] sm:$0x3] }
 0xa9b   :  { %v7753_v39 = vpop.eup %7752 }
 0xa9c   :  { %v2370_v1 = vmul.f32 %v7753_v39, %v2363_v35  ;;  %v2605_v35 = vld [vmem:[#allocation4 + $0x58] sm:$0xff] }
 0xa9e   :  { %2371 = vst.msk [vmem:[#allocation2] sm:$0x3] %vm59_vm0, %v2370_v1 }
 0xaa5   :  { %v2372_v4 = vld [vmem:[#allocation2] sm:$0x3] }
 0xaa6   :  { %6668 = vmatmul.mubr.msk.f32.vlgmr.msra.gmra.mrb[20].mxu0 %vm96_vm1, %v2372_v4  ;;  %6669 = vmatmul.mubr.msk.f32.vlgmr.msra.gmra.mrb[20].mxu1 %vm96_vm1, %v2372_v4 }
 0xaa7   :  { %7089 = vmatpush1.bf16.msra.mxu0 %v8417_v34  ;;  %7105 = vmatpush1.bf16.msra.mxu1 %v8420_v51 }
 0xaa8   :  { %7091 = vmatprep.subr.bf16.mxu0 %v8425_v58  ;;  %7107 = vmatprep.subr.bf16.mxu1 %v8427_v9 }
 0xaa9   :  { %2705 = vmatprep.mubr.f32.mxu0 %v8039_v0  ;;  %2776 = vmatprep.mubr.f32.mxu1 %v8039_v0 }
 0xaab   :  { %7093 = vmatpush1.bf16.msra.mxu0 %v8429_v13  ;;  %7109 = vmatpush1.bf16.msra.mxu1 %v8432_v27 }
 0xaac   :  { %7095 = vmatprep.subr.bf16.mxu0 %v8437_v2  ;;  %7111 = vmatprep.subr.bf16.mxu1 %v8439_v54 }
 0xaaf   :  { %7097 = vmatpush1.bf16.msra.mxu0 %v8441_v55  ;;  %7113 = vmatpush1.bf16.msra.mxu1 %v8444_v22 }
 0xab0   :  { %7099 = vmatprep.subr.bf16.mxu0 %v8448_v47  ;;  %7115 = vmatprep.subr.bf16.mxu1 %v8450_v48 }
 0xab3   :  { %7101 = vmatpush1.bf16.msra.mxu0 %v8453_v6  ;;  %7117 = vmatpush1.bf16.msra.mxu1 %v8457_v11 }
 0xab4   :  { %7119 = vmatprep.subr.bf16.mxu0 %v8413_v38  ;;  %7135 = vmatprep.subr.bf16.mxu1 %v8415_v46 }
 0xb79   :  { %v2476_v43 = vpop.f32.mrb[20].mxu0  ;;  %v2547_v50 = vpop.f32.mrb[20].mxu1 }
 0xb7a   :  { %v2478_v59 = vpop.f32.mrb[21].mxu0  ;;  %v2549_v63 = vpop.f32.mrb[21].mxu1 }
 0xb7b   :  { %v2556_v18 = vcombine.low %v2476_v43, %v2478_v59  ;;  %v2557_v31 = vcombine.low %v2547_v50, %v2549_v63 }
 0xb7d   :  { %v2564_v44 = vrot.slane %v2556_v18, %v8181_v56  ;;  %v2571_v40 = vrot.slane %v2557_v31, %v8181_v56 }
 0xb7f   :  { %v2572_v7 = vcombine.low %v2564_v44, %v2571_v40 }
 0xb81   :  { %v2574_v5 = vadd.f32 %v2572_v7, %v2374_v3 }
 0xb83   :  { %v2575_v10 = vmul.f32 0.5, %v2574_v5  ;;  %v2580_v12 = vrot.slane %v2574_v5, 2  ;;  %v2586_v15 = vrot.slane %v2574_v5, 4  ;;  %v2589_v16 = vrot.slane %v2574_v5, 6 }
 0xb85   :  { %7754 = vtanh.f32 %v2575_v10  ;;  %v2582_v14 = vmul.f32 0.5, %v2580_v12  ;;  %v2591_v19 = vmul.f32 0.5, %v2589_v16 }
 0xb87   :  { %7756 = vtanh.f32 %v2582_v14 }
 0xb88   :  { %7758 = vtanh.f32 %v2586_v15 }
 0xb89   :  { %7760 = vtanh.f32 %v2591_v19 }
 0xb8f   :  { %v7755_v20 = vpop.eup %7754 }
 0xb90   :  { %v2577_v21 = vmul.f32 0.5, %v7755_v20 }
 0xb91   :  { %v7757_v23 = vpop.eup %7756 }
 0xb92   :  { %v2578_v24 = vadd.f32 0.5, %v2577_v21  ;;  %v2584_v25 = vmul.f32 0.5, %v7757_v23  ;;  %v7759_v29 = vpop.eup %7758 }
 0xb93   :  { %v7761_v37 = vpop.eup %7760 }
 0xb94   :  { %v2585_v28 = vadd.f32 0.5, %v2584_v25  ;;  %v2597_v33 = vmul.f32 %v7759_v29, %v2578_v24  ;;  %v2593_v8 = vmul.f32 0.5, %v7761_v37 }
 0xb96   :  { %v2596_v32 = vmul.f32 %v2595_v30, %v2585_v28  ;;  %v2594_v42 = vadd.f32 0.5, %v2593_v8 }
 0xb98   :  { %v2598_v36 = vadd.f32 %v2597_v33, %v2596_v32 }
 0xb9a   :  { %2599 = vst.msk [vmem:[#allocation3] sm:$0x3] %vm59_vm0, %v2598_v36  ;;  %7762 = vtanh.f32 %v2598_v36 }
 0xba1   :  { %v2826_v12 = vld [vmem:[#allocation3] sm:$0x3] }
 0xba4   :  { %v7763_v45 = vpop.eup %7762 }
 0xba5   :  { %v2601_v41 = vmul.f32 %v7763_v45, %v2594_v42  ;;  %v2836_v42 = vld [vmem:[#allocation4 + $0x60] sm:$0xff] }
 0xba7   :  { %2602 = vst.msk [vmem:[#allocation2] sm:$0x3] %vm59_vm0, %v2601_v41 }
 0xbae   :  { %v2603_v49 = vld [vmem:[#allocation2] sm:$0x3] }
 0xbaf   :  { %6670 = vmatmul.mubr.msk.f32.vlgmr.msra.gmra.mrb[22].mxu0 %vm96_vm1, %v2603_v49  ;;  %6671 = vmatmul.mubr.msk.f32.vlgmr.msra.gmra.mrb[22].mxu1 %vm96_vm1, %v2603_v49 }
 0xbb0   :  { %7121 = vmatpush1.bf16.msra.mxu0 %v8417_v34  ;;  %7137 = vmatpush1.bf16.msra.mxu1 %v8420_v51 }
 0xbb1   :  { %7123 = vmatprep.subr.bf16.mxu0 %v8425_v58  ;;  %7139 = vmatprep.subr.bf16.mxu1 %v8427_v9 }
 0xbb2   :  { %2936 = vmatprep.mubr.f32.mxu0 %v8039_v0  ;;  %3007 = vmatprep.mubr.f32.mxu1 %v8039_v0 }
 0xbb4   :  { %7125 = vmatpush1.bf16.msra.mxu0 %v8429_v13  ;;  %7141 = vmatpush1.bf16.msra.mxu1 %v8432_v27 }
 0xbb5   :  { %7127 = vmatprep.subr.bf16.mxu0 %v8437_v2  ;;  %7143 = vmatprep.subr.bf16.mxu1 %v8439_v54 }
 0xbb8   :  { %7129 = vmatpush1.bf16.msra.mxu0 %v8441_v55  ;;  %7145 = vmatpush1.bf16.msra.mxu1 %v8444_v22 }
 0xbb9   :  { %7131 = vmatprep.subr.bf16.mxu0 %v8448_v47  ;;  %7147 = vmatprep.subr.bf16.mxu1 %v8450_v48 }
 0xbbc   :  { %7133 = vmatpush1.bf16.msra.mxu0 %v8453_v6  ;;  %7149 = vmatpush1.bf16.msra.mxu1 %v8457_v11 }
 0xbbd   :  { %7151 = vmatprep.subr.bf16.mxu0 %v8413_v38  ;;  %7167 = vmatprep.subr.bf16.mxu1 %v8415_v46 }
 0xc82   :  { %v2707_v52 = vpop.f32.mrb[22].mxu0  ;;  %v2778_v53 = vpop.f32.mrb[22].mxu1 }
 0xc83   :  { %v2709_v57 = vpop.f32.mrb[23].mxu0  ;;  %v2780_v60 = vpop.f32.mrb[23].mxu1 }
 0xc84   :  { %v2787_v61 = vcombine.low %v2707_v52, %v2709_v57  ;;  %v2788_v62 = vcombine.low %v2778_v53, %v2780_v60 }
 0xc86   :  { %v2795_v17 = vrot.slane %v2787_v61, %v8181_v56  ;;  %v2802_v26 = vrot.slane %v2788_v62, %v8181_v56 }
 0xc88   :  { %v2803_v39 = vcombine.low %v2795_v17, %v2802_v26 }
 0xc8a   :  { %v2805_v1 = vadd.f32 %v2803_v39, %v2605_v35 }
 0xc8c   :  { %v2806_v4 = vmul.f32 0.5, %v2805_v1  ;;  %v2811_v43 = vrot.slane %v2805_v1, 2  ;;  %v2817_v59 = vrot.slane %v2805_v1, 4  ;;  %v2820_v63 = vrot.slane %v2805_v1, 6 }
 0xc8e   :  { %7764 = vtanh.f32 %v2806_v4  ;;  %v2813_v50 = vmul.f32 0.5, %v2811_v43  ;;  %v2822_v18 = vmul.f32 0.5, %v2820_v63 }
 0xc90   :  { %7766 = vtanh.f32 %v2813_v50 }
 0xc91   :  { %7768 = vtanh.f32 %v2817_v59 }
 0xc92   :  { %7770 = vtanh.f32 %v2822_v18 }
 0xc98   :  { %v7765_v31 = vpop.eup %7764 }
 0xc99   :  { %v2808_v44 = vmul.f32 0.5, %v7765_v31 }
 0xc9a   :  { %v7767_v40 = vpop.eup %7766 }
 0xc9b   :  { %v2809_v3 = vadd.f32 0.5, %v2808_v44  ;;  %v2815_v7 = vmul.f32 0.5, %v7767_v40  ;;  %v7769_v10 = vpop.eup %7768 }
 0xc9c   :  { %v7771_v19 = vpop.eup %7770 }
 0xc9d   :  { %v2816_v5 = vadd.f32 0.5, %v2815_v7  ;;  %v2828_v15 = vmul.f32 %v7769_v10, %v2809_v3  ;;  %v2824_v20 = vmul.f32 0.5, %v7771_v19 }
 0xc9f   :  { %v2827_v14 = vmul.f32 %v2826_v12, %v2816_v5  ;;  %v2825_v21 = vadd.f32 0.5, %v2824_v20 }
 0xca1   :  { %v2829_v16 = vadd.f32 %v2828_v15, %v2827_v14 }
 0xca3   :  { %2830 = vst.msk [vmem:[#allocation3] sm:$0x3] %vm59_vm0, %v2829_v16  ;;  %7772 = vtanh.f32 %v2829_v16 }
 0xcaa   :  { %v3057_v1 = vld [vmem:[#allocation3] sm:$0x3] }
 0xcad   :  { %v7773_v23 = vpop.eup %7772 }
 0xcae   :  { %v2832_v24 = vmul.f32 %v7773_v23, %v2825_v21 }
 0xcb0   :  { %2833 = vst.msk [vmem:[#allocation2] sm:$0x3] %vm59_vm0, %v2832_v24 }
 0xcb7   :  { %v2834_v25 = vld [vmem:[#allocation2] sm:$0x3] }
 0xcb8   :  { %6672 = vmatmul.mubr.msk.f32.vlgmr.msra.gmra.mrb[24].mxu0 %vm96_vm1, %v2834_v25  ;;  %6673 = vmatmul.mubr.msk.f32.vlgmr.msra.gmra.mrb[24].mxu1 %vm96_vm1, %v2834_v25 }
 0xcb9   :  { %7153 = vmatpush1.bf16.msra.mxu0 %v8417_v34  ;;  %7169 = vmatpush1.bf16.msra.mxu1 %v8420_v51 }
 0xcba   :  { %7155 = vmatprep.subr.bf16.mxu0 %v8425_v58  ;;  %7171 = vmatprep.subr.bf16.mxu1 %v8427_v9 }
 0xcbb   :  { %3167 = vmatprep.mubr.f32.mxu0 %v8039_v0  ;;  %3238 = vmatprep.mubr.f32.mxu1 %v8039_v0 }
 0xcbd   :  { %7157 = vmatpush1.bf16.msra.mxu0 %v8429_v13  ;;  %7173 = vmatpush1.bf16.msra.mxu1 %v8432_v27 }
 0xcbe   :  { %7159 = vmatprep.subr.bf16.mxu0 %v8437_v2  ;;  %7175 = vmatprep.subr.bf16.mxu1 %v8439_v54 }
 0xcc1   :  { %7161 = vmatpush1.bf16.msra.mxu0 %v8441_v55  ;;  %7177 = vmatpush1.bf16.msra.mxu1 %v8444_v22 }
 0xcc2   :  { %7163 = vmatprep.subr.bf16.mxu0 %v8448_v47  ;;  %7179 = vmatprep.subr.bf16.mxu1 %v8450_v48 }
 0xcc5   :  { %7165 = vmatpush1.bf16.msra.mxu0 %v8453_v6  ;;  %7181 = vmatpush1.bf16.msra.mxu1 %v8457_v11 }
 0xcc6   :  { %7183 = vmatprep.subr.bf16.mxu0 %v8413_v38  ;;  %7199 = vmatprep.subr.bf16.mxu1 %v8415_v46 }
 0xd8b   :  { %v2938_v28 = vpop.f32.mrb[24].mxu0  ;;  %v3009_v29 = vpop.f32.mrb[24].mxu1 }
 0xd8c   :  { %v2940_v30 = vpop.f32.mrb[25].mxu0  ;;  %v3011_v32 = vpop.f32.mrb[25].mxu1 }
 0xd8d   :  { %v3018_v33 = vcombine.low %v2938_v28, %v2940_v30  ;;  %v3019_v36 = vcombine.low %v3009_v29, %v3011_v32 }
 0xd8f   :  { %v3026_v37 = vrot.slane %v3018_v33, %v8181_v56  ;;  %v3033_v8 = vrot.slane %v3019_v36, %v8181_v56 }
 0xd91   :  { %v3034_v45 = vcombine.low %v3026_v37, %v3033_v8  ;;  %v3531_v37 = vld [vmem:[#allocation7 + $0x8] sm:$0xff] }
 0xd92   :  { %v3535_v8 = vld [vmem:[#allocation7 + $0x28] sm:$0xff] }
 0xd93   :  { %v3036_v41 = vadd.f32 %v3034_v45, %v2836_v42  ;;  %v3533_v42 = vld [vmem:[#allocation7 + $0x18] sm:$0xff]  ;;  %v8565_v45 = vpack.c.bf16 %v3535_v8, %v3531_v37 }
 0xd95   :  { %v3037_v49 = vmul.f32 0.5, %v3036_v41  ;;  %v3042_v52 = vrot.slane %v3036_v41, 2  ;;  %v3048_v38 = vrot.slane %v3036_v41, 4  ;;  %v3051_v46 = vrot.slane %v3036_v41, 6  ;;  %v3537_v41 = vld [vmem:[#allocation7 + $0x38] sm:$0xff] }
 0xd97   :  { %7774 = vtanh.f32 %v3037_v49  ;;  %v3044_v53 = vmul.f32 0.5, %v3042_v52  ;;  %v3053_v57 = vmul.f32 0.5, %v3051_v46  ;;  %v3530_v49 = vld [vmem:[#allocation7] sm:$0xff]  ;;  %v3532_v46 = vld [vmem:[#allocation7 + $0x10] sm:$0xff] }
 0xd98   :  { %v3534_v52 = vld [vmem:[#allocation7 + $0x20] sm:$0xff] }
 0xd99   :  { %7776 = vtanh.f32 %v3044_v53  ;;  %v8567_v53 = vpack.c.bf16 %v3537_v41, %v3533_v42 }
 0xd9a   :  { %7778 = vtanh.f32 %v3048_v38  ;;  %v8569_v38 = vpack.c.bf16 %v3534_v52, %v3530_v49 }
 0xd9b   :  { %7780 = vtanh.f32 %v3053_v57  ;;  %v3536_v57 = vld [vmem:[#allocation7 + $0x30] sm:$0xff] }
 0xda1   :  { %v7775_v60 = vpop.eup %7774 }
 0xda2   :  { %v3039_v61 = vmul.f32 0.5, %v7775_v60  ;;  %v8572_v60 = vpack.c.bf16 %v3536_v57, %v3532_v46 }
 0xda3   :  { %v7777_v62 = vpop.eup %7776 }
 0xda4   :  { %v3040_v17 = vadd.f32 0.5, %v3039_v61  ;;  %v3046_v26 = vmul.f32 0.5, %v7777_v62  ;;  %v7779_v39 = vpop.eup %7778  ;;  %v3539_v61 = vld [vmem:[#allocation7 + $0x48] sm:$0xff] }
 0xda5   :  { %v7781_v59 = vpop.eup %7780  ;;  %v3543_v62 = vld [vmem:[#allocation7 + $0x68] sm:$0xff] }
 0xda6   :  { %v3047_v35 = vadd.f32 0.5, %v3046_v26  ;;  %v3059_v43 = vmul.f32 %v7779_v39, %v3040_v17  ;;  %v3055_v63 = vmul.f32 0.5, %v7781_v59  ;;  %v3541_v17 = vld [vmem:[#allocation7 + $0x58] sm:$0xff]  ;;  %v8577_v26 = vpack.c.bf16 %v3543_v62, %v3539_v61  ;;  %v3538_v39 = vld [vmem:[#allocation7 + $0x40] sm:$0xff]  ;;  %v3544_v59 = vld [vmem:[#allocation7 + $0x70] sm:$0xff] }
 0xda8   :  { %v3058_v4 = vmul.f32 %v3057_v1, %v3047_v35  ;;  %v3056_v18 = vadd.f32 0.5, %v3055_v63  ;;  %v3545_v35 = vld [vmem:[#allocation7 + $0x78] sm:$0xff]  ;;  %v3542_v1 = vld [vmem:[#allocation7 + $0x60] sm:$0xff] }
 0xdaa   :  { %v3060_v50 = vadd.f32 %v3059_v43, %v3058_v4  ;;  %v8579_v4 = vpack.c.bf16 %v3545_v35, %v3541_v17  ;;  %v8581_v43 = vpack.c.bf16 %v3542_v1, %v3538_v39 }
 0xdac   :  { %3061 = vst.msk [vmem:[#allocation3] sm:$0x3] %vm59_vm0, %v3060_v50  ;;  %7782 = vtanh.f32 %v3060_v50  ;;  %v3540_v50 = vld [vmem:[#allocation7 + $0x50] sm:$0xff] }
 0xdad   :  { %v8584_v63 = vpack.c.bf16 %v3544_v59, %v3540_v50 }
 0xdb3   :  { %v3288_v21 = vld [vmem:[#allocation3] sm:$0x3] }
 0xdb6   :  { %v7783_v31 = vpop.eup %7782 }
 0xdb7   :  { %v3063_v44 = vmul.f32 %v7783_v31, %v3056_v18  ;;  %v3547_v18 = vld [vmem:[#allocation7 + $0x88] sm:$0xff] }
 0xdb8   :  { %v3551_v31 = vld [vmem:[#allocation7 + $0xa8] sm:$0xff] }
 0xdb9   :  { %3064 = vst.msk [vmem:[#allocation2] sm:$0x3] %vm59_vm0, %v3063_v44  ;;  %v3549_v44 = vld [vmem:[#allocation7 + $0x98] sm:$0xff] }
 0xdc0   :  { %v3065_v40 = vld [vmem:[#allocation2] sm:$0x3] }
 0xdc1   :  { %6674 = vmatmul.mubr.msk.f32.vlgmr.msra.gmra.mrb[26].mxu0 %vm96_vm1, %v3065_v40  ;;  %6675 = vmatmul.mubr.msk.f32.vlgmr.msra.gmra.mrb[26].mxu1 %vm96_vm1, %v3065_v40  ;;  %v8589_v40 = vpack.c.bf16 %v3551_v31, %v3547_v18 }
 0xdc2   :  { %7185 = vmatpush1.bf16.msra.mxu0 %v8417_v34  ;;  %7201 = vmatpush1.bf16.msra.mxu1 %v8420_v51 }
 0xdc3   :  { %7187 = vmatprep.subr.bf16.mxu0 %v8425_v58  ;;  %7203 = vmatprep.subr.bf16.mxu1 %v8427_v9 }
 0xdc4   :  { %3398 = vmatprep.mubr.f32.mxu0 %v8039_v0  ;;  %3469 = vmatprep.mubr.f32.mxu1 %v8039_v0 }
 0xdc6   :  { %7189 = vmatpush1.bf16.msra.mxu0 %v8429_v13  ;;  %7205 = vmatpush1.bf16.msra.mxu1 %v8432_v27 }
 0xdc7   :  { %7191 = vmatprep.subr.bf16.mxu0 %v8437_v2  ;;  %7207 = vmatprep.subr.bf16.mxu1 %v8439_v54 }
 0xdca   :  { %7193 = vmatpush1.bf16.msra.mxu0 %v8441_v55  ;;  %7209 = vmatpush1.bf16.msra.mxu1 %v8444_v22  ;;  %v3067_v55 = vld [vmem:[#allocation4 + $0x68] sm:$0xff] }
 0xdcb   :  { %7195 = vmatprep.subr.bf16.mxu0 %v8448_v47  ;;  %7211 = vmatprep.subr.bf16.mxu1 %v8450_v48 }
 0xdce   :  { %7197 = vmatpush1.bf16.msra.mxu0 %v8453_v6  ;;  %7213 = vmatpush1.bf16.msra.mxu1 %v8457_v11 }
 0xdcf   :  { %7215 = vmatprep.subr.bf16.mxu0 %v8565_v45  ;;  %7231 = vmatprep.subr.bf16.mxu1 %v8567_v53 }
 0xe94   :  { %v3169_v34 = vpop.f32.mrb[26].mxu0  ;;  %v3240_v51 = vpop.f32.mrb[26].mxu1 }
 0xe95   :  { %v3171_v58 = vpop.f32.mrb[27].mxu0  ;;  %v3242_v9 = vpop.f32.mrb[27].mxu1 }
 0xe96   :  { %v3249_v13 = vcombine.low %v3169_v34, %v3171_v58  ;;  %v3250_v27 = vcombine.low %v3240_v51, %v3242_v9  ;;  %v3553_v34 = vld [vmem:[#allocation7 + $0xb8] sm:$0xff]  ;;  %v3546_v51 = vld [vmem:[#allocation7 + $0x80] sm:$0xff] }
 0xe97   :  { %v3550_v58 = vld [vmem:[#allocation7 + $0xa0] sm:$0xff]  ;;  %v8591_v9 = vpack.c.bf16 %v3553_v34, %v3549_v44 }
 0xe98   :  { %v3257_v2 = vrot.slane %v3249_v13, %v8181_v56  ;;  %v3264_v54 = vrot.slane %v3250_v27, %v8181_v56  ;;  %v8593_v13 = vpack.c.bf16 %v3550_v58, %v3546_v51  ;;  %v3548_v27 = vld [vmem:[#allocation7 + $0x90] sm:$0xff] }
 0xe9a   :  { %v3265_v22 = vcombine.low %v3257_v2, %v3264_v54  ;;  %v3552_v2 = vld [vmem:[#allocation7 + $0xb0] sm:$0xff]  ;;  %v3555_v54 = vld [vmem:[#allocation7 + $0xc8] sm:$0xff] }
 0xe9c   :  { %v3267_v3 = vadd.f32 %v3265_v22, %v3067_v55  ;;  %v8596_v55 = vpack.c.bf16 %v3552_v2, %v3548_v27  ;;  %v3559_v22 = vld [vmem:[#allocation7 + $0xe8] sm:$0xff] }
 0xe9e   :  { %v3268_v47 = vmul.f32 0.5, %v3267_v3  ;;  %v3273_v7 = vrot.slane %v3267_v3, 2  ;;  %v3279_v6 = vrot.slane %v3267_v3, 4  ;;  %v3282_v11 = vrot.slane %v3267_v3, 6  ;;  %v3557_v3 = vld [vmem:[#allocation7 + $0xd8] sm:$0xff] }
 0xea0   :  { %7784 = vtanh.f32 %v3268_v47  ;;  %v3275_v48 = vmul.f32 0.5, %v3273_v7  ;;  %v3284_v5 = vmul.f32 0.5, %v3282_v11  ;;  %v3561_v47 = vld [vmem:[#allocation7 + $0xf8] sm:$0xff]  ;;  %v8600_v7 = vpack.c.bf16 %v3559_v22, %v3555_v54  ;;  %v3558_v11 = vld [vmem:[#allocation7 + $0xe0] sm:$0xff] }
 0xea2   :  { %7786 = vtanh.f32 %v3275_v48  ;;  %v8602_v48 = vpack.c.bf16 %v3561_v47, %v3557_v3 }
 0xea3   :  { %7788 = vtanh.f32 %v3279_v6  ;;  %v3554_v6 = vld [vmem:[#allocation7 + $0xc0] sm:$0xff] }
 0xea4   :  { %7790 = vtanh.f32 %v3284_v5  ;;  %v3556_v5 = vld [vmem:[#allocation7 + $0xd0] sm:$0xff] }
 0xeaa   :  { %v7785_v10 = vpop.eup %7784 }
 0xeab   :  { %v3270_v12 = vmul.f32 0.5, %v7785_v10  ;;  %v8605_v10 = vpack.c.bf16 %v3558_v11, %v3554_v6  ;;  %v3529_v6 = vld [vmem:[#allocation4 + $0x78] sm:$0xff] }
 0xeac   :  { %v7787_v14 = vpop.eup %7786 }
 0xead   :  { %v3271_v15 = vadd.f32 0.5, %v3270_v12  ;;  %v3277_v16 = vmul.f32 0.5, %v7787_v14  ;;  %v7789_v20 = vpop.eup %7788  ;;  %v3560_v12 = vld [vmem:[#allocation7 + $0xf0] sm:$0xff] }
 0xeae   :  { %v7791_v28 = vpop.eup %7790  ;;  %v8609_v14 = vpack.c.bf16 %v3560_v12, %v3556_v5 }
 0xeaf   :  { %v3278_v19 = vadd.f32 0.5, %v3277_v16  ;;  %v3290_v24 = vmul.f32 %v7789_v20, %v3271_v15  ;;  %v3286_v29 = vmul.f32 0.5, %v7791_v28  ;;  %v3298_v28 = vld [vmem:[#allocation4 + $0x70] sm:$0xff] }
 0xeb1   :  { %v3289_v23 = vmul.f32 %v3288_v21, %v3278_v19  ;;  %v3287_v30 = vadd.f32 0.5, %v3286_v29 }
 0xeb3   :  { %v3291_v25 = vadd.f32 %v3290_v24, %v3289_v23 }
 0xeb5   :  { %3292 = vst.msk [vmem:[#allocation3] sm:$0x3] %vm59_vm0, %v3291_v25  ;;  %7792 = vtanh.f32 %v3291_v25 }
 0xebc   :  { %v3519_v17 = vld [vmem:[#allocation3] sm:$0x3] }
 0xebf   :  { %v7793_v32 = vpop.eup %7792 }
 0xec0   :  { %v3294_v33 = vmul.f32 %v7793_v32, %v3287_v30 }
 0xec2   :  { %3295 = vst.msk [vmem:[#allocation2] sm:$0x3] %vm59_vm0, %v3294_v33 }
 0xec9   :  { %v3296_v36 = vld [vmem:[#allocation2] sm:$0x3] }
 0xeca   :  { %6676 = vmatmul.mubr.msk.f32.vlgmr.msra.gmra.mrb[28].mxu0 %vm96_vm1, %v3296_v36  ;;  %6677 = vmatmul.mubr.msk.f32.vlgmr.msra.gmra.mrb[28].mxu1 %vm96_vm1, %v3296_v36 }
 0xecb   :  { %3629 = vmatprep.mubr.f32.mxu0 %v8039_v0  ;;  %3700 = vmatprep.mubr.f32.mxu1 %v8039_v0 }
 0xecc   :  { %7217 = vmatpush1.bf16.msra.mxu0 %v8569_v38  ;;  %7233 = vmatpush1.bf16.msra.mxu1 %v8572_v60 }
 0xecd   :  { %7219 = vmatprep.subr.bf16.mxu0 %v8577_v26  ;;  %7235 = vmatprep.subr.bf16.mxu1 %v8579_v4 }
 0xed0   :  { %7221 = vmatpush1.bf16.msra.mxu0 %v8581_v43  ;;  %7237 = vmatpush1.bf16.msra.mxu1 %v8584_v63 }
 0xed1   :  { %7223 = vmatprep.subr.bf16.mxu0 %v8589_v40  ;;  %7239 = vmatprep.subr.bf16.mxu1 %v8591_v9 }
 0xed4   :  { %7225 = vmatpush1.bf16.msra.mxu0 %v8593_v13  ;;  %7241 = vmatpush1.bf16.msra.mxu1 %v8596_v55 }
 0xed5   :  { %7227 = vmatprep.subr.bf16.mxu0 %v8600_v7  ;;  %7243 = vmatprep.subr.bf16.mxu1 %v8602_v48 }
 0xed8   :  { %7229 = vmatpush1.bf16.msra.mxu0 %v8605_v10  ;;  %7245 = vmatpush1.bf16.msra.mxu1 %v8609_v14 }
 0xed9   :  { %7247 = vmatprep.subr.bf16.mxu0 %v8565_v45  ;;  %7263 = vmatprep.subr.bf16.mxu1 %v8567_v53 }
 0xf9d   :  { %v3400_v15 = vpop.f32.mrb[28].mxu0  ;;  %v3471_v16 = vpop.f32.mrb[28].mxu1 }
 0xf9e   :  { %v3402_v19 = vpop.f32.mrb[29].mxu0  ;;  %v3473_v20 = vpop.f32.mrb[29].mxu1 }
 0xf9f   :  { %v3480_v21 = vcombine.low %v3400_v15, %v3402_v19  ;;  %v3481_v23 = vcombine.low %v3471_v16, %v3473_v20 }
 0xfa1   :  { %v3488_v24 = vrot.slane %v3480_v21, %v8181_v56  ;;  %v3495_v25 = vrot.slane %v3481_v23, %v8181_v56 }
 0xfa3   :  { %v3496_v29 = vcombine.low %v3488_v24, %v3495_v25 }
 0xfa5   :  { %v3498_v30 = vadd.f32 %v3496_v29, %v3298_v28 }
 0xfa7   :  { %v3499_v32 = vmul.f32 0.5, %v3498_v30  ;;  %v3504_v33 = vrot.slane %v3498_v30, 2  ;;  %v3510_v37 = vrot.slane %v3498_v30, 4  ;;  %v3513_v8 = vrot.slane %v3498_v30, 6 }
 0xfa9   :  { %7794 = vtanh.f32 %v3499_v32  ;;  %v3506_v36 = vmul.f32 0.5, %v3504_v33  ;;  %v3515_v42 = vmul.f32 0.5, %v3513_v8 }
 0xfab   :  { %7796 = vtanh.f32 %v3506_v36 }
 0xfac   :  { %7798 = vtanh.f32 %v3510_v37 }
 0xfad   :  { %7800 = vtanh.f32 %v3515_v42 }
 0xfb3   :  { %v7795_v41 = vpop.eup %7794 }
 0xfb4   :  { %v3501_v49 = vmul.f32 0.5, %v7795_v41 }
 0xfb5   :  { %v7797_v52 = vpop.eup %7796 }
 0xfb6   :  { %v3502_v46 = vadd.f32 0.5, %v3501_v49  ;;  %v3508_v57 = vmul.f32 0.5, %v7797_v52  ;;  %v7799_v62 = vpop.eup %7798 }
 0xfb7   :  { %v7801_v50 = vpop.eup %7800 }
 0xfb8   :  { %v3509_v61 = vadd.f32 0.5, %v3508_v57  ;;  %v3521_v39 = vmul.f32 %v7799_v62, %v3502_v46  ;;  %v3517_v59 = vmul.f32 0.5, %v7801_v50 }
 0xfba   :  { %v3520_v35 = vmul.f32 %v3519_v17, %v3509_v61  ;;  %v3518_v18 = vadd.f32 0.5, %v3517_v59 }
 0xfbc   :  { %v3522_v1 = vadd.f32 %v3521_v39, %v3520_v35 }
 0xfbe   :  { %3523 = vst.msk [vmem:[#allocation3] sm:$0x3] %vm59_vm0, %v3522_v1  ;;  %7802 = vtanh.f32 %v3522_v1 }
 0xfc5   :  { %v3750_v33 = vld [vmem:[#allocation3] sm:$0x3] }
 0xfc8   :  { %v7803_v31 = vpop.eup %7802 }
 0xfc9   :  { %v3525_v44 = vmul.f32 %v7803_v31, %v3518_v18  ;;  %v3760_v18 = vld [vmem:[#allocation4 + $0x80] sm:$0xff] }
 0xfcb   :  { %3526 = vst.msk [vmem:[#allocation2] sm:$0x3] %vm59_vm0, %v3525_v44 }
 0xfd2   :  { %v3527_v34 = vld [vmem:[#allocation2] sm:$0x3] }
 0xfd3   :  { %6678 = vmatmul.mubr.msk.f32.vlgmr.msra.gmra.mrb[30].mxu0 %vm96_vm1, %v3527_v34  ;;  %6679 = vmatmul.mubr.msk.f32.vlgmr.msra.gmra.mrb[30].mxu1 %vm96_vm1, %v3527_v34 }
 0xfd4   :  { %7249 = vmatpush1.bf16.msra.mxu0 %v8569_v38  ;;  %7265 = vmatpush1.bf16.msra.mxu1 %v8572_v60 }
 0xfd5   :  { %7251 = vmatprep.subr.bf16.mxu0 %v8577_v26  ;;  %7267 = vmatprep.subr.bf16.mxu1 %v8579_v4 }
 0xfd6   :  { %3860 = vmatprep.mubr.f32.mxu0 %v8039_v0  ;;  %3931 = vmatprep.mubr.f32.mxu1 %v8039_v0 }
 0xfd8   :  { %7253 = vmatpush1.bf16.msra.mxu0 %v8581_v43  ;;  %7269 = vmatpush1.bf16.msra.mxu1 %v8584_v63 }
 0xfd9   :  { %7255 = vmatprep.subr.bf16.mxu0 %v8589_v40  ;;  %7271 = vmatprep.subr.bf16.mxu1 %v8591_v9 }
 0xfdc   :  { %7257 = vmatpush1.bf16.msra.mxu0 %v8593_v13  ;;  %7273 = vmatpush1.bf16.msra.mxu1 %v8596_v55 }
 0xfdd   :  { %7259 = vmatprep.subr.bf16.mxu0 %v8600_v7  ;;  %7275 = vmatprep.subr.bf16.mxu1 %v8602_v48 }
 0xfe0   :  { %7261 = vmatpush1.bf16.msra.mxu0 %v8605_v10  ;;  %7277 = vmatpush1.bf16.msra.mxu1 %v8609_v14 }
 0xfe1   :  { %7279 = vmatprep.subr.bf16.mxu0 %v8565_v45  ;;  %7295 = vmatprep.subr.bf16.mxu1 %v8567_v53 }
0x10a6   :  { %v3631_v51 = vpop.f32.mrb[30].mxu0  ;;  %v3702_v58 = vpop.f32.mrb[30].mxu1 }
0x10a7   :  { %v3633_v27 = vpop.f32.mrb[31].mxu0  ;;  %v3704_v2 = vpop.f32.mrb[31].mxu1 }
0x10a8   :  { %v3711_v54 = vcombine.low %v3631_v51, %v3633_v27  ;;  %v3712_v22 = vcombine.low %v3702_v58, %v3704_v2 }
0x10aa   :  { %v3719_v3 = vrot.slane %v3711_v54, %v8181_v56  ;;  %v3726_v47 = vrot.slane %v3712_v22, %v8181_v56 }
0x10ac   :  { %v3727_v11 = vcombine.low %v3719_v3, %v3726_v47 }
0x10ae   :  { %v3729_v5 = vadd.f32 %v3727_v11, %v3529_v6 }
0x10b0   :  { %v3730_v12 = vmul.f32 0.5, %v3729_v5  ;;  %v3735_v15 = vrot.slane %v3729_v5, 2  ;;  %v3741_v19 = vrot.slane %v3729_v5, 4  ;;  %v3744_v20 = vrot.slane %v3729_v5, 6 }
0x10b2   :  { %7804 = vtanh.f32 %v3730_v12  ;;  %v3737_v16 = vmul.f32 0.5, %v3735_v15  ;;  %v3746_v21 = vmul.f32 0.5, %v3744_v20 }
0x10b4   :  { %7806 = vtanh.f32 %v3737_v16 }
0x10b5   :  { %7808 = vtanh.f32 %v3741_v19 }
0x10b6   :  { %7810 = vtanh.f32 %v3746_v21 }
0x10bc   :  { %v7805_v23 = vpop.eup %7804 }
0x10bd   :  { %v3732_v24 = vmul.f32 0.5, %v7805_v23 }
0x10be   :  { %v7807_v25 = vpop.eup %7806 }
0x10bf   :  { %v3733_v28 = vadd.f32 0.5, %v3732_v24  ;;  %v3739_v29 = vmul.f32 0.5, %v7807_v25  ;;  %v7809_v32 = vpop.eup %7808 }
0x10c0   :  { %v7811_v42 = vpop.eup %7810 }
0x10c1   :  { %v3740_v30 = vadd.f32 0.5, %v3739_v29  ;;  %v3752_v37 = vmul.f32 %v7809_v32, %v3733_v28  ;;  %v3748_v41 = vmul.f32 0.5, %v7811_v42 }
0x10c3   :  { %v3751_v36 = vmul.f32 %v3750_v33, %v3740_v30  ;;  %v3749_v49 = vadd.f32 0.5, %v3748_v41 }
0x10c5   :  { %v3753_v8 = vadd.f32 %v3752_v37, %v3751_v36 }
0x10c7   :  { %3754 = vst.msk [vmem:[#allocation3] sm:$0x3] %vm59_vm0, %v3753_v8  ;;  %7812 = vtanh.f32 %v3753_v8 }
0x10ce   :  { %v3981_v15 = vld [vmem:[#allocation3] sm:$0x3] }
0x10d1   :  { %v7813_v52 = vpop.eup %7812 }
0x10d2   :  { %v3756_v46 = vmul.f32 %v7813_v52, %v3749_v49  ;;  %v3991_v49 = vld [vmem:[#allocation4 + $0x88] sm:$0xff] }
0x10d4   :  { %3757 = vst.msk [vmem:[#allocation2] sm:$0x3] %vm59_vm0, %v3756_v46 }
0x10db   :  { %v3758_v57 = vld [vmem:[#allocation2] sm:$0x3] }
0x10dc   :  { %6680 = vmatmul.mubr.msk.f32.vlgmr.msra.gmra.mrb[32].mxu0 %vm96_vm1, %v3758_v57  ;;  %6681 = vmatmul.mubr.msk.f32.vlgmr.msra.gmra.mrb[32].mxu1 %vm96_vm1, %v3758_v57 }
0x10dd   :  { %7281 = vmatpush1.bf16.msra.mxu0 %v8569_v38  ;;  %7297 = vmatpush1.bf16.msra.mxu1 %v8572_v60 }
0x10de   :  { %7283 = vmatprep.subr.bf16.mxu0 %v8577_v26  ;;  %7299 = vmatprep.subr.bf16.mxu1 %v8579_v4 }
0x10df   :  { %4091 = vmatprep.mubr.f32.mxu0 %v8039_v0  ;;  %4162 = vmatprep.mubr.f32.mxu1 %v8039_v0 }
0x10e1   :  { %7285 = vmatpush1.bf16.msra.mxu0 %v8581_v43  ;;  %7301 = vmatpush1.bf16.msra.mxu1 %v8584_v63 }
0x10e2   :  { %7287 = vmatprep.subr.bf16.mxu0 %v8589_v40  ;;  %7303 = vmatprep.subr.bf16.mxu1 %v8591_v9 }
0x10e5   :  { %7289 = vmatpush1.bf16.msra.mxu0 %v8593_v13  ;;  %7305 = vmatpush1.bf16.msra.mxu1 %v8596_v55 }
0x10e6   :  { %7291 = vmatprep.subr.bf16.mxu0 %v8600_v7  ;;  %7307 = vmatprep.subr.bf16.mxu1 %v8602_v48 }
0x10e9   :  { %7293 = vmatpush1.bf16.msra.mxu0 %v8605_v10  ;;  %7309 = vmatpush1.bf16.msra.mxu1 %v8609_v14 }
0x10ea   :  { %7311 = vmatprep.subr.bf16.mxu0 %v8565_v45  ;;  %7327 = vmatprep.subr.bf16.mxu1 %v8567_v53 }
0x11af   :  { %v3862_v61 = vpop.f32.mrb[32].mxu0  ;;  %v3933_v62 = vpop.f32.mrb[32].mxu1 }
0x11b0   :  { %v3864_v17 = vpop.f32.mrb[33].mxu0  ;;  %v3935_v35 = vpop.f32.mrb[33].mxu1 }
0x11b1   :  { %v3942_v39 = vcombine.low %v3862_v61, %v3864_v17  ;;  %v3943_v1 = vcombine.low %v3933_v62, %v3935_v35 }
0x11b3   :  { %v3950_v50 = vrot.slane %v3942_v39, %v8181_v56  ;;  %v3957_v59 = vrot.slane %v3943_v1, %v8181_v56 }
0x11b5   :  { %v3958_v31 = vcombine.low %v3950_v50, %v3957_v59 }
0x11b7   :  { %v3960_v44 = vadd.f32 %v3958_v31, %v3760_v18 }
0x11b9   :  { %v3961_v34 = vmul.f32 0.5, %v3960_v44  ;;  %v3966_v51 = vrot.slane %v3960_v44, 2  ;;  %v3972_v27 = vrot.slane %v3960_v44, 4  ;;  %v3975_v2 = vrot.slane %v3960_v44, 6 }
0x11bb   :  { %7814 = vtanh.f32 %v3961_v34  ;;  %v3968_v58 = vmul.f32 0.5, %v3966_v51  ;;  %v3977_v54 = vmul.f32 0.5, %v3975_v2 }
0x11bd   :  { %7816 = vtanh.f32 %v3968_v58 }
0x11be   :  { %7818 = vtanh.f32 %v3972_v27 }
0x11bf   :  { %7820 = vtanh.f32 %v3977_v54 }
0x11c5   :  { %v7815_v22 = vpop.eup %7814 }
0x11c6   :  { %v3963_v3 = vmul.f32 0.5, %v7815_v22 }
0x11c7   :  { %v7817_v47 = vpop.eup %7816 }
0x11c8   :  { %v3964_v6 = vadd.f32 0.5, %v3963_v3  ;;  %v3970_v11 = vmul.f32 0.5, %v7817_v47  ;;  %v7819_v12 = vpop.eup %7818 }
0x11c9   :  { %v7821_v21 = vpop.eup %7820 }
0x11ca   :  { %v3971_v5 = vadd.f32 0.5, %v3970_v11  ;;  %v3983_v19 = vmul.f32 %v7819_v12, %v3964_v6  ;;  %v3979_v23 = vmul.f32 0.5, %v7821_v21 }
0x11cc   :  { %v3982_v16 = vmul.f32 %v3981_v15, %v3971_v5  ;;  %v3980_v24 = vadd.f32 0.5, %v3979_v23 }
0x11ce   :  { %v3984_v20 = vadd.f32 %v3983_v19, %v3982_v16 }
0x11d0   :  { %7822 = vtanh.f32 %v3984_v20  ;;  %3985 = vst.msk [vmem:[#allocation3] sm:$0x3] %vm59_vm0, %v3984_v20 }
0x11d7   :  { %v4212_v44 = vld [vmem:[#allocation3] sm:$0x3] }
0x11da   :  { %v7823_v25 = vpop.eup %7822 }
0x11db   :  { %v3987_v28 = vmul.f32 %v7823_v25, %v3980_v24 }
0x11dd   :  { %3988 = vst.msk [vmem:[#allocation2] sm:$0x3] %vm59_vm0, %v3987_v28 }
0x11e4   :  { %v3989_v29 = vld [vmem:[#allocation2] sm:$0x3] }
0x11e5   :  { %6682 = vmatmul.mubr.msk.f32.vlgmr.msra.gmra.mrb[34].mxu0 %vm96_vm1, %v3989_v29  ;;  %6683 = vmatmul.mubr.msk.f32.vlgmr.msra.gmra.mrb[34].mxu1 %vm96_vm1, %v3989_v29 }
0x11e6   :  { %7313 = vmatpush1.bf16.msra.mxu0 %v8569_v38  ;;  %7329 = vmatpush1.bf16.msra.mxu1 %v8572_v60 }
0x11e7   :  { %7315 = vmatprep.subr.bf16.mxu0 %v8577_v26  ;;  %7331 = vmatprep.subr.bf16.mxu1 %v8579_v4 }
0x11e8   :  { %4322 = vmatprep.mubr.f32.mxu0 %v8039_v0  ;;  %4393 = vmatprep.mubr.f32.mxu1 %v8039_v0 }
0x11ea   :  { %7317 = vmatpush1.bf16.msra.mxu0 %v8581_v43  ;;  %7333 = vmatpush1.bf16.msra.mxu1 %v8584_v63 }
0x11eb   :  { %7319 = vmatprep.subr.bf16.mxu0 %v8589_v40  ;;  %7335 = vmatprep.subr.bf16.mxu1 %v8591_v9 }
0x11ee   :  { %7321 = vmatpush1.bf16.msra.mxu0 %v8593_v13  ;;  %7337 = vmatpush1.bf16.msra.mxu1 %v8596_v55 }
0x11ef   :  { %7323 = vmatprep.subr.bf16.mxu0 %v8600_v7  ;;  %7339 = vmatprep.subr.bf16.mxu1 %v8602_v48 }
0x11f2   :  { %7325 = vmatpush1.bf16.msra.mxu0 %v8605_v10  ;;  %7341 = vmatpush1.bf16.msra.mxu1 %v8609_v14 }
0x11f3   :  { %7343 = vmatprep.subr.bf16.mxu0 %v8565_v45  ;;  %7359 = vmatprep.subr.bf16.mxu1 %v8567_v53 }
0x12b8   :  { %v4093_v30 = vpop.f32.mrb[34].mxu0  ;;  %v4164_v32 = vpop.f32.mrb[34].mxu1 }
0x12b9   :  { %v4095_v33 = vpop.f32.mrb[35].mxu0  ;;  %v4166_v36 = vpop.f32.mrb[35].mxu1 }
0x12ba   :  { %v4173_v37 = vcombine.low %v4093_v30, %v4095_v33  ;;  %v4174_v8 = vcombine.low %v4164_v32, %v4166_v36 }
0x12bc   :  { %v4181_v42 = vrot.slane %v4173_v37, %v8181_v56  ;;  %v4188_v41 = vrot.slane %v4174_v8, %v8181_v56 }
0x12be   :  { %v4189_v52 = vcombine.low %v4181_v42, %v4188_v41  ;;  %v4686_v42 = vld [vmem:[#allocation7 + $0x8] sm:$0xff] }
0x12bf   :  { %v4690_v41 = vld [vmem:[#allocation7 + $0x28] sm:$0xff] }
0x12c0   :  { %v4191_v46 = vadd.f32 %v4189_v52, %v3991_v49  ;;  %v4688_v49 = vld [vmem:[#allocation7 + $0x18] sm:$0xff]  ;;  %v8717_v52 = vpack.c.bf16 %v4690_v41, %v4686_v42 }
0x12c2   :  { %v4192_v57 = vmul.f32 0.5, %v4191_v46  ;;  %v4197_v61 = vrot.slane %v4191_v46, 2  ;;  %v4203_v45 = vrot.slane %v4191_v46, 4  ;;  %v4206_v53 = vrot.slane %v4191_v46, 6  ;;  %v4692_v46 = vld [vmem:[#allocation7 + $0x38] sm:$0xff] }
0x12c4   :  { %7824 = vtanh.f32 %v4192_v57  ;;  %v4199_v62 = vmul.f32 0.5, %v4197_v61  ;;  %v4208_v17 = vmul.f32 0.5, %v4206_v53  ;;  %v4685_v57 = vld [vmem:[#allocation7] sm:$0xff]  ;;  %v4687_v53 = vld [vmem:[#allocation7 + $0x10] sm:$0xff] }
0x12c5   :  { %v4689_v61 = vld [vmem:[#allocation7 + $0x20] sm:$0xff] }
0x12c6   :  { %7826 = vtanh.f32 %v4199_v62  ;;  %v8719_v62 = vpack.c.bf16 %v4692_v46, %v4688_v49 }
0x12c7   :  { %7828 = vtanh.f32 %v4203_v45  ;;  %v8721_v45 = vpack.c.bf16 %v4689_v61, %v4685_v57 }
0x12c8   :  { %7830 = vtanh.f32 %v4208_v17  ;;  %v4691_v17 = vld [vmem:[#allocation7 + $0x30] sm:$0xff] }
0x12ce   :  { %v7825_v35 = vpop.eup %7824 }
0x12cf   :  { %v4194_v39 = vmul.f32 0.5, %v7825_v35  ;;  %v8724_v35 = vpack.c.bf16 %v4691_v17, %v4687_v53 }
0x12d0   :  { %v7827_v1 = vpop.eup %7826 }
0x12d1   :  { %v4195_v50 = vadd.f32 0.5, %v4194_v39  ;;  %v4201_v59 = vmul.f32 0.5, %v7827_v1  ;;  %v7829_v31 = vpop.eup %7828  ;;  %v4694_v39 = vld [vmem:[#allocation7 + $0x48] sm:$0xff] }
0x12d2   :  { %v7831_v27 = vpop.eup %7830  ;;  %v4698_v1 = vld [vmem:[#allocation7 + $0x68] sm:$0xff] }
0x12d3   :  { %v4202_v18 = vadd.f32 0.5, %v4201_v59  ;;  %v4214_v51 = vmul.f32 %v7829_v31, %v4195_v50  ;;  %v4210_v2 = vmul.f32 0.5, %v7831_v27  ;;  %v4696_v50 = vld [vmem:[#allocation7 + $0x58] sm:$0xff]  ;;  %v8729_v59 = vpack.c.bf16 %v4698_v1, %v4694_v39  ;;  %v4693_v31 = vld [vmem:[#allocation7 + $0x40] sm:$0xff]  ;;  %v4699_v27 = vld [vmem:[#allocation7 + $0x70] sm:$0xff] }
0x12d5   :  { %v4213_v34 = vmul.f32 %v4212_v44, %v4202_v18  ;;  %v4211_v54 = vadd.f32 0.5, %v4210_v2  ;;  %v4700_v18 = vld [vmem:[#allocation7 + $0x78] sm:$0xff]  ;;  %v4697_v44 = vld [vmem:[#allocation7 + $0x60] sm:$0xff] }
0x12d7   :  { %v4215_v58 = vadd.f32 %v4214_v51, %v4213_v34  ;;  %v8731_v34 = vpack.c.bf16 %v4700_v18, %v4696_v50  ;;  %v8733_v51 = vpack.c.bf16 %v4697_v44, %v4693_v31 }
0x12d9   :  { %7832 = vtanh.f32 %v4215_v58  ;;  %4216 = vst.msk [vmem:[#allocation3] sm:$0x3] %vm59_vm0, %v4215_v58  ;;  %v4695_v58 = vld [vmem:[#allocation7 + $0x50] sm:$0xff] }
0x12da   :  { %v8736_v2 = vpack.c.bf16 %v4699_v27, %v4695_v58 }
0x12e0   :  { %v4443_v24 = vld [vmem:[#allocation3] sm:$0x3] }
0x12e3   :  { %v7833_v22 = vpop.eup %7832 }
0x12e4   :  { %v4218_v3 = vmul.f32 %v7833_v22, %v4211_v54  ;;  %v4702_v54 = vld [vmem:[#allocation7 + $0x88] sm:$0xff] }
0x12e5   :  { %v4706_v22 = vld [vmem:[#allocation7 + $0xa8] sm:$0xff] }
0x12e6   :  { %4219 = vst.msk [vmem:[#allocation2] sm:$0x3] %vm59_vm0, %v4218_v3  ;;  %v4704_v3 = vld [vmem:[#allocation7 + $0x98] sm:$0xff] }
0x12ed   :  { %v4220_v47 = vld [vmem:[#allocation2] sm:$0x3] }
0x12ee   :  { %6684 = vmatmul.mubr.msk.f32.vlgmr.msra.gmra.mrb[36].mxu0 %vm96_vm1, %v4220_v47  ;;  %6685 = vmatmul.mubr.msk.f32.vlgmr.msra.gmra.mrb[36].mxu1 %vm96_vm1, %v4220_v47  ;;  %v8741_v47 = vpack.c.bf16 %v4706_v22, %v4702_v54 }
0x12ef   :  { %7345 = vmatpush1.bf16.msra.mxu0 %v8569_v38  ;;  %7361 = vmatpush1.bf16.msra.mxu1 %v8572_v60 }
0x12f0   :  { %7347 = vmatprep.subr.bf16.mxu0 %v8577_v26  ;;  %7363 = vmatprep.subr.bf16.mxu1 %v8579_v4 }
0x12f1   :  { %4553 = vmatprep.mubr.f32.mxu0 %v8039_v0  ;;  %4624 = vmatprep.mubr.f32.mxu1 %v8039_v0 }
0x12f3   :  { %7349 = vmatpush1.bf16.msra.mxu0 %v8581_v43  ;;  %7365 = vmatpush1.bf16.msra.mxu1 %v8584_v63 }
0x12f4   :  { %7351 = vmatprep.subr.bf16.mxu0 %v8589_v40  ;;  %7367 = vmatprep.subr.bf16.mxu1 %v8591_v9 }
0x12f7   :  { %7353 = vmatpush1.bf16.msra.mxu0 %v8593_v13  ;;  %7369 = vmatpush1.bf16.msra.mxu1 %v8596_v55  ;;  %v4222_v13 = vld [vmem:[#allocation4 + $0x90] sm:$0xff] }
0x12f8   :  { %7355 = vmatprep.subr.bf16.mxu0 %v8600_v7  ;;  %7371 = vmatprep.subr.bf16.mxu1 %v8602_v48 }
0x12fb   :  { %7357 = vmatpush1.bf16.msra.mxu0 %v8605_v10  ;;  %7373 = vmatpush1.bf16.msra.mxu1 %v8609_v14 }
0x12fc   :  { %7375 = vmatprep.subr.bf16.mxu0 %v8717_v52  ;;  %7391 = vmatprep.subr.bf16.mxu1 %v8719_v62 }
0x13c1   :  { %v4324_v38 = vpop.f32.mrb[36].mxu0  ;;  %v4395_v60 = vpop.f32.mrb[36].mxu1 }
0x13c2   :  { %v4326_v26 = vpop.f32.mrb[37].mxu0  ;;  %v4397_v4 = vpop.f32.mrb[37].mxu1 }
0x13c3   :  { %v4404_v43 = vcombine.low %v4324_v38, %v4326_v26  ;;  %v4405_v63 = vcombine.low %v4395_v60, %v4397_v4  ;;  %v4708_v38 = vld [vmem:[#allocation7 + $0xb8] sm:$0xff]  ;;  %v4701_v60 = vld [vmem:[#allocation7 + $0x80] sm:$0xff] }
0x13c4   :  { %v4705_v26 = vld [vmem:[#allocation7 + $0xa0] sm:$0xff]  ;;  %v8743_v4 = vpack.c.bf16 %v4708_v38, %v4704_v3 }
0x13c5   :  { %v4412_v40 = vrot.slane %v4404_v43, %v8181_v56  ;;  %v4419_v9 = vrot.slane %v4405_v63, %v8181_v56  ;;  %v8745_v43 = vpack.c.bf16 %v4705_v26, %v4701_v60  ;;  %v4703_v63 = vld [vmem:[#allocation7 + $0x90] sm:$0xff] }
0x13c7   :  { %v4420_v55 = vcombine.low %v4412_v40, %v4419_v9  ;;  %v4707_v40 = vld [vmem:[#allocation7 + $0xb0] sm:$0xff]  ;;  %v4710_v9 = vld [vmem:[#allocation7 + $0xc8] sm:$0xff] }
0x13c9   :  { %v4422_v6 = vadd.f32 %v4420_v55, %v4222_v13  ;;  %v8748_v13 = vpack.c.bf16 %v4707_v40, %v4703_v63  ;;  %v4714_v55 = vld [vmem:[#allocation7 + $0xe8] sm:$0xff] }
0x13cb   :  { %v4423_v7 = vmul.f32 0.5, %v4422_v6  ;;  %v4428_v11 = vrot.slane %v4422_v6, 2  ;;  %v4434_v10 = vrot.slane %v4422_v6, 4  ;;  %v4437_v14 = vrot.slane %v4422_v6, 6  ;;  %v4712_v6 = vld [vmem:[#allocation7 + $0xd8] sm:$0xff] }
0x13cd   :  { %7834 = vtanh.f32 %v4423_v7  ;;  %v4430_v48 = vmul.f32 0.5, %v4428_v11  ;;  %v4439_v5 = vmul.f32 0.5, %v4437_v14  ;;  %v4716_v7 = vld [vmem:[#allocation7 + $0xf8] sm:$0xff]  ;;  %v8752_v11 = vpack.c.bf16 %v4714_v55, %v4710_v9  ;;  %v4713_v14 = vld [vmem:[#allocation7 + $0xe0] sm:$0xff] }
0x13cf   :  { %7836 = vtanh.f32 %v4430_v48  ;;  %v8754_v48 = vpack.c.bf16 %v4716_v7, %v4712_v6 }
0x13d0   :  { %7838 = vtanh.f32 %v4434_v10  ;;  %v4709_v10 = vld [vmem:[#allocation7 + $0xc0] sm:$0xff] }
0x13d1   :  { %7840 = vtanh.f32 %v4439_v5  ;;  %v4711_v5 = vld [vmem:[#allocation7 + $0xd0] sm:$0xff] }
0x13d7   :  { %v7835_v12 = vpop.eup %7834 }
0x13d8   :  { %v4425_v15 = vmul.f32 0.5, %v7835_v12  ;;  %v8757_v12 = vpack.c.bf16 %v4713_v14, %v4709_v10  ;;  %v4684_v10 = vld [vmem:[#allocation4 + $0xa0] sm:$0xff] }
0x13d9   :  { %v7837_v16 = vpop.eup %7836 }
0x13da   :  { %v4426_v19 = vadd.f32 0.5, %v4425_v15  ;;  %v4432_v20 = vmul.f32 0.5, %v7837_v16  ;;  %v7839_v23 = vpop.eup %7838  ;;  %v4715_v15 = vld [vmem:[#allocation7 + $0xf0] sm:$0xff] }
0x13db   :  { %v7841_v30 = vpop.eup %7840  ;;  %v8761_v16 = vpack.c.bf16 %v4715_v15, %v4711_v5 }
0x13dc   :  { %v4433_v21 = vadd.f32 0.5, %v4432_v20  ;;  %v4445_v28 = vmul.f32 %v7839_v23, %v4426_v19  ;;  %v4441_v32 = vmul.f32 0.5, %v7841_v30  ;;  %v4453_v30 = vld [vmem:[#allocation4 + $0x98] sm:$0xff] }
0x13de   :  { %v4444_v25 = vmul.f32 %v4443_v24, %v4433_v21  ;;  %v4442_v33 = vadd.f32 0.5, %v4441_v32 }
0x13e0   :  { %v4446_v29 = vadd.f32 %v4445_v28, %v4444_v25 }
0x13e2   :  { %7842 = vtanh.f32 %v4446_v29  ;;  %4447 = vst.msk [vmem:[#allocation3] sm:$0x3] %vm59_vm0, %v4446_v29 }
0x13e9   :  { %v4674_v50 = vld [vmem:[#allocation3] sm:$0x3] }
0x13ec   :  { %v7843_v36 = vpop.eup %7842 }
0x13ed   :  { %v4449_v37 = vmul.f32 %v7843_v36, %v4442_v33 }
0x13ef   :  { %4450 = vst.msk [vmem:[#allocation2] sm:$0x3] %vm59_vm0, %v4449_v37 }
0x13f6   :  { %v4451_v8 = vld [vmem:[#allocation2] sm:$0x3] }
0x13f7   :  { %6686 = vmatmul.mubr.msk.f32.vlgmr.msra.gmra.mrb[38].mxu0 %vm96_vm1, %v4451_v8  ;;  %6687 = vmatmul.mubr.msk.f32.vlgmr.msra.gmra.mrb[38].mxu1 %vm96_vm1, %v4451_v8 }
0x13f8   :  { %4784 = vmatprep.mubr.f32.mxu0 %v8039_v0  ;;  %4855 = vmatprep.mubr.f32.mxu1 %v8039_v0 }
0x13f9   :  { %7377 = vmatpush1.bf16.msra.mxu0 %v8721_v45  ;;  %7393 = vmatpush1.bf16.msra.mxu1 %v8724_v35 }
0x13fa   :  { %7379 = vmatprep.subr.bf16.mxu0 %v8729_v59  ;;  %7395 = vmatprep.subr.bf16.mxu1 %v8731_v34 }
0x13fd   :  { %7381 = vmatpush1.bf16.msra.mxu0 %v8733_v51  ;;  %7397 = vmatpush1.bf16.msra.mxu1 %v8736_v2 }
0x13fe   :  { %7383 = vmatprep.subr.bf16.mxu0 %v8741_v47  ;;  %7399 = vmatprep.subr.bf16.mxu1 %v8743_v4 }
0x1401   :  { %7385 = vmatpush1.bf16.msra.mxu0 %v8745_v43  ;;  %7401 = vmatpush1.bf16.msra.mxu1 %v8748_v13 }
0x1402   :  { %7387 = vmatprep.subr.bf16.mxu0 %v8752_v11  ;;  %7403 = vmatprep.subr.bf16.mxu1 %v8754_v48 }
0x1405   :  { %7389 = vmatpush1.bf16.msra.mxu0 %v8757_v12  ;;  %7405 = vmatpush1.bf16.msra.mxu1 %v8761_v16 }
0x1406   :  { %7407 = vmatprep.subr.bf16.mxu0 %v8717_v52  ;;  %7423 = vmatprep.subr.bf16.mxu1 %v8719_v62 }
0x14ca   :  { %v4555_v19 = vpop.f32.mrb[38].mxu0  ;;  %v4626_v20 = vpop.f32.mrb[38].mxu1 }
0x14cb   :  { %v4557_v21 = vpop.f32.mrb[39].mxu0  ;;  %v4628_v23 = vpop.f32.mrb[39].mxu1 }
0x14cc   :  { %v4635_v24 = vcombine.low %v4555_v19, %v4557_v21  ;;  %v4636_v25 = vcombine.low %v4626_v20, %v4628_v23 }
0x14ce   :  { %v4643_v28 = vrot.slane %v4635_v24, %v8181_v56  ;;  %v4650_v29 = vrot.slane %v4636_v25, %v8181_v56 }
0x14d0   :  { %v4651_v32 = vcombine.low %v4643_v28, %v4650_v29 }
0x14d2   :  { %v4653_v33 = vadd.f32 %v4651_v32, %v4453_v30 }
0x14d4   :  { %v4654_v36 = vmul.f32 0.5, %v4653_v33  ;;  %v4659_v37 = vrot.slane %v4653_v33, 2  ;;  %v4665_v42 = vrot.slane %v4653_v33, 4  ;;  %v4668_v41 = vrot.slane %v4653_v33, 6 }
0x14d6   :  { %7844 = vtanh.f32 %v4654_v36  ;;  %v4661_v8 = vmul.f32 0.5, %v4659_v37  ;;  %v4670_v49 = vmul.f32 0.5, %v4668_v41 }
0x14d8   :  { %7846 = vtanh.f32 %v4661_v8 }
0x14d9   :  { %7848 = vtanh.f32 %v4665_v42 }
0x14da   :  { %7850 = vtanh.f32 %v4670_v49 }
0x14e0   :  { %v7845_v46 = vpop.eup %7844 }
0x14e1   :  { %v4656_v57 = vmul.f32 0.5, %v7845_v46 }
0x14e2   :  { %v7847_v61 = vpop.eup %7846 }
0x14e3   :  { %v4657_v53 = vadd.f32 0.5, %v4656_v57  ;;  %v4663_v17 = vmul.f32 0.5, %v7847_v61  ;;  %v7849_v1 = vpop.eup %7848 }
0x14e4   :  { %v7851_v58 = vpop.eup %7850 }
0x14e5   :  { %v4664_v39 = vadd.f32 0.5, %v4663_v17  ;;  %v4676_v31 = vmul.f32 %v7849_v1, %v4657_v53  ;;  %v4672_v27 = vmul.f32 0.5, %v7851_v58 }
0x14e7   :  { %v4675_v18 = vmul.f32 %v4674_v50, %v4664_v39  ;;  %v4673_v54 = vadd.f32 0.5, %v4672_v27 }
0x14e9   :  { %v4677_v44 = vadd.f32 %v4676_v31, %v4675_v18 }
0x14eb   :  { %7852 = vtanh.f32 %v4677_v44  ;;  %4678 = vst.msk [vmem:[#allocation3] sm:$0x3] %vm59_vm0, %v4677_v44 }
0x14f2   :  { %v4905_v37 = vld [vmem:[#allocation3] sm:$0x3] }
0x14f5   :  { %v7853_v22 = vpop.eup %7852 }
0x14f6   :  { %v4680_v3 = vmul.f32 %v7853_v22, %v4673_v54  ;;  %v4915_v54 = vld [vmem:[#allocation4 + $0xa8] sm:$0xff] }
0x14f8   :  { %4681 = vst.msk [vmem:[#allocation2] sm:$0x3] %vm59_vm0, %v4680_v3 }
0x14ff   :  { %v4682_v38 = vld [vmem:[#allocation2] sm:$0x3] }
0x1500   :  { %6688 = vmatmul.mubr.msk.f32.vlgmr.msra.gmra.mrb[40].mxu0 %vm96_vm1, %v4682_v38  ;;  %6689 = vmatmul.mubr.msk.f32.vlgmr.msra.gmra.mrb[40].mxu1 %vm96_vm1, %v4682_v38 }
0x1501   :  { %7409 = vmatpush1.bf16.msra.mxu0 %v8721_v45  ;;  %7425 = vmatpush1.bf16.msra.mxu1 %v8724_v35 }
0x1502   :  { %7411 = vmatprep.subr.bf16.mxu0 %v8729_v59  ;;  %7427 = vmatprep.subr.bf16.mxu1 %v8731_v34 }
0x1503   :  { %5015 = vmatprep.mubr.f32.mxu0 %v8039_v0  ;;  %5086 = vmatprep.mubr.f32.mxu1 %v8039_v0 }
0x1505   :  { %7413 = vmatpush1.bf16.msra.mxu0 %v8733_v51  ;;  %7429 = vmatpush1.bf16.msra.mxu1 %v8736_v2 }
0x1506   :  { %7415 = vmatprep.subr.bf16.mxu0 %v8741_v47  ;;  %7431 = vmatprep.subr.bf16.mxu1 %v8743_v4 }
0x1509   :  { %7417 = vmatpush1.bf16.msra.mxu0 %v8745_v43  ;;  %7433 = vmatpush1.bf16.msra.mxu1 %v8748_v13 }
0x150a   :  { %7419 = vmatprep.subr.bf16.mxu0 %v8752_v11  ;;  %7435 = vmatprep.subr.bf16.mxu1 %v8754_v48 }
0x150d   :  { %7421 = vmatpush1.bf16.msra.mxu0 %v8757_v12  ;;  %7437 = vmatpush1.bf16.msra.mxu1 %v8761_v16 }
0x150e   :  { %7439 = vmatprep.subr.bf16.mxu0 %v8717_v52  ;;  %7455 = vmatprep.subr.bf16.mxu1 %v8719_v62 }
0x15d3   :  { %v4786_v60 = vpop.f32.mrb[40].mxu0  ;;  %v4857_v26 = vpop.f32.mrb[40].mxu1 }
0x15d4   :  { %v4788_v63 = vpop.f32.mrb[41].mxu0  ;;  %v4859_v40 = vpop.f32.mrb[41].mxu1 }
0x15d5   :  { %v4866_v9 = vcombine.low %v4786_v60, %v4788_v63  ;;  %v4867_v55 = vcombine.low %v4857_v26, %v4859_v40 }
0x15d7   :  { %v4874_v6 = vrot.slane %v4866_v9, %v8181_v56  ;;  %v4881_v7 = vrot.slane %v4867_v55, %v8181_v56 }
0x15d9   :  { %v4882_v14 = vcombine.low %v4874_v6, %v4881_v7 }
0x15db   :  { %v4884_v5 = vadd.f32 %v4882_v14, %v4684_v10 }
0x15dd   :  { %v4885_v15 = vmul.f32 0.5, %v4884_v5  ;;  %v4890_v19 = vrot.slane %v4884_v5, 2  ;;  %v4896_v21 = vrot.slane %v4884_v5, 4  ;;  %v4899_v23 = vrot.slane %v4884_v5, 6 }
0x15df   :  { %7854 = vtanh.f32 %v4885_v15  ;;  %v4892_v20 = vmul.f32 0.5, %v4890_v19  ;;  %v4901_v24 = vmul.f32 0.5, %v4899_v23 }
0x15e1   :  { %7856 = vtanh.f32 %v4892_v20 }
0x15e2   :  { %7858 = vtanh.f32 %v4896_v21 }
0x15e3   :  { %7860 = vtanh.f32 %v4901_v24 }
0x15e9   :  { %v7855_v25 = vpop.eup %7854 }
0x15ea   :  { %v4887_v28 = vmul.f32 0.5, %v7855_v25 }
0x15eb   :  { %v7857_v29 = vpop.eup %7856 }
0x15ec   :  { %v4888_v30 = vadd.f32 0.5, %v4887_v28  ;;  %v4894_v32 = vmul.f32 0.5, %v7857_v29  ;;  %v7859_v36 = vpop.eup %7858 }
0x15ed   :  { %v7861_v49 = vpop.eup %7860 }
0x15ee   :  { %v4895_v33 = vadd.f32 0.5, %v4894_v32  ;;  %v4907_v42 = vmul.f32 %v7859_v36, %v4888_v30  ;;  %v4903_v46 = vmul.f32 0.5, %v7861_v49 }
0x15f0   :  { %v4906_v8 = vmul.f32 %v4905_v37, %v4895_v33  ;;  %v4904_v57 = vadd.f32 0.5, %v4903_v46 }
0x15f2   :  { %v4908_v41 = vadd.f32 %v4907_v42, %v4906_v8 }
0x15f4   :  { %7862 = vtanh.f32 %v4908_v41  ;;  %4909 = vst.msk [vmem:[#allocation3] sm:$0x3] %vm59_vm0, %v4908_v41 }
0x15fb   :  { %v5136_v19 = vld [vmem:[#allocation3] sm:$0x3] }
0x15fe   :  { %v7863_v61 = vpop.eup %7862 }
0x15ff   :  { %v4911_v53 = vmul.f32 %v7863_v61, %v4904_v57  ;;  %v5146_v57 = vld [vmem:[#allocation4 + $0xb0] sm:$0xff] }
0x1601   :  { %4912 = vst.msk [vmem:[#allocation2] sm:$0x3] %vm59_vm0, %v4911_v53 }
0x1608   :  { %v4913_v17 = vld [vmem:[#allocation2] sm:$0x3] }
0x1609   :  { %6690 = vmatmul.mubr.msk.f32.vlgmr.msra.gmra.mrb[42].mxu0 %vm96_vm1, %v4913_v17  ;;  %6691 = vmatmul.mubr.msk.f32.vlgmr.msra.gmra.mrb[42].mxu1 %vm96_vm1, %v4913_v17 }
0x160a   :  { %7441 = vmatpush1.bf16.msra.mxu0 %v8721_v45  ;;  %7457 = vmatpush1.bf16.msra.mxu1 %v8724_v35 }
0x160b   :  { %7443 = vmatprep.subr.bf16.mxu0 %v8729_v59  ;;  %7459 = vmatprep.subr.bf16.mxu1 %v8731_v34 }
0x160c   :  { %5246 = vmatprep.mubr.f32.mxu0 %v8039_v0  ;;  %5317 = vmatprep.mubr.f32.mxu1 %v8039_v0 }
0x160e   :  { %7445 = vmatpush1.bf16.msra.mxu0 %v8733_v51  ;;  %7461 = vmatpush1.bf16.msra.mxu1 %v8736_v2 }
0x160f   :  { %7447 = vmatprep.subr.bf16.mxu0 %v8741_v47  ;;  %7463 = vmatprep.subr.bf16.mxu1 %v8743_v4 }
0x1612   :  { %7449 = vmatpush1.bf16.msra.mxu0 %v8745_v43  ;;  %7465 = vmatpush1.bf16.msra.mxu1 %v8748_v13 }
0x1613   :  { %7451 = vmatprep.subr.bf16.mxu0 %v8752_v11  ;;  %7467 = vmatprep.subr.bf16.mxu1 %v8754_v48 }
0x1616   :  { %7453 = vmatpush1.bf16.msra.mxu0 %v8757_v12  ;;  %7469 = vmatpush1.bf16.msra.mxu1 %v8761_v16 }
0x1617   :  { %7471 = vmatprep.subr.bf16.mxu0 %v8717_v52  ;;  %7487 = vmatprep.subr.bf16.mxu1 %v8719_v62 }
0x16dc   :  { %v5017_v39 = vpop.f32.mrb[42].mxu0  ;;  %v5088_v1 = vpop.f32.mrb[42].mxu1 }
0x16dd   :  { %v5019_v50 = vpop.f32.mrb[43].mxu0  ;;  %v5090_v18 = vpop.f32.mrb[43].mxu1 }
0x16de   :  { %v5097_v31 = vcombine.low %v5017_v39, %v5019_v50  ;;  %v5098_v44 = vcombine.low %v5088_v1, %v5090_v18 }
0x16e0   :  { %v5105_v58 = vrot.slane %v5097_v31, %v8181_v56  ;;  %v5112_v27 = vrot.slane %v5098_v44, %v8181_v56 }
0x16e2   :  { %v5113_v22 = vcombine.low %v5105_v58, %v5112_v27 }
0x16e4   :  { %v5115_v3 = vadd.f32 %v5113_v22, %v4915_v54 }
0x16e6   :  { %v5116_v38 = vmul.f32 0.5, %v5115_v3  ;;  %v5121_v60 = vrot.slane %v5115_v3, 2  ;;  %v5127_v63 = vrot.slane %v5115_v3, 4  ;;  %v5130_v40 = vrot.slane %v5115_v3, 6 }
0x16e8   :  { %7864 = vtanh.f32 %v5116_v38  ;;  %v5123_v26 = vmul.f32 0.5, %v5121_v60  ;;  %v5132_v9 = vmul.f32 0.5, %v5130_v40 }
0x16ea   :  { %7866 = vtanh.f32 %v5123_v26 }
0x16eb   :  { %7868 = vtanh.f32 %v5127_v63 }
0x16ec   :  { %7870 = vtanh.f32 %v5132_v9 }
0x16f2   :  { %v7865_v55 = vpop.eup %7864 }
0x16f3   :  { %v5118_v6 = vmul.f32 0.5, %v7865_v55 }
0x16f4   :  { %v7867_v7 = vpop.eup %7866 }
0x16f5   :  { %v5119_v10 = vadd.f32 0.5, %v5118_v6  ;;  %v5125_v14 = vmul.f32 0.5, %v7867_v7  ;;  %v7869_v15 = vpop.eup %7868 }
0x16f6   :  { %v7871_v24 = vpop.eup %7870 }
0x16f7   :  { %v5126_v5 = vadd.f32 0.5, %v5125_v14  ;;  %v5138_v21 = vmul.f32 %v7869_v15, %v5119_v10  ;;  %v5134_v25 = vmul.f32 0.5, %v7871_v24 }
0x16f9   :  { %v5137_v20 = vmul.f32 %v5136_v19, %v5126_v5  ;;  %v5135_v28 = vadd.f32 0.5, %v5134_v25 }
0x16fb   :  { %v5139_v23 = vadd.f32 %v5138_v21, %v5137_v20 }
0x16fd   :  { %7872 = vtanh.f32 %v5139_v23  ;;  %5140 = vst.msk [vmem:[#allocation3] sm:$0x3] %vm59_vm0, %v5139_v23 }
0x1704   :  { %v5367_v3 = vld [vmem:[#allocation3] sm:$0x3] }
0x1707   :  { %v7873_v29 = vpop.eup %7872 }
0x1708   :  { %v5142_v30 = vmul.f32 %v7873_v29, %v5135_v28 }
0x170a   :  { %5143 = vst.msk [vmem:[#allocation2] sm:$0x3] %vm59_vm0, %v5142_v30 }
0x1711   :  { %v5144_v32 = vld [vmem:[#allocation2] sm:$0x3] }
0x1712   :  { %6692 = vmatmul.mubr.msk.f32.vlgmr.msra.gmra.mrb[44].mxu0 %vm96_vm1, %v5144_v32  ;;  %6693 = vmatmul.mubr.msk.f32.vlgmr.msra.gmra.mrb[44].mxu1 %vm96_vm1, %v5144_v32 }
0x1713   :  { %7473 = vmatpush1.bf16.msra.mxu0 %v8721_v45  ;;  %7489 = vmatpush1.bf16.msra.mxu1 %v8724_v35 }
0x1714   :  { %7475 = vmatprep.subr.bf16.mxu0 %v8729_v59  ;;  %7491 = vmatprep.subr.bf16.mxu1 %v8731_v34 }
0x1715   :  { %5477 = vmatprep.mubr.f32.mxu0 %v8039_v0  ;;  %5548 = vmatprep.mubr.f32.mxu1 %v8039_v0 }
0x1717   :  { %7477 = vmatpush1.bf16.msra.mxu0 %v8733_v51  ;;  %7493 = vmatpush1.bf16.msra.mxu1 %v8736_v2 }
0x1718   :  { %7479 = vmatprep.subr.bf16.mxu0 %v8741_v47  ;;  %7495 = vmatprep.subr.bf16.mxu1 %v8743_v4 }
0x171b   :  { %7481 = vmatpush1.bf16.msra.mxu0 %v8745_v43  ;;  %7497 = vmatpush1.bf16.msra.mxu1 %v8748_v13 }
0x171c   :  { %7483 = vmatprep.subr.bf16.mxu0 %v8752_v11  ;;  %7499 = vmatprep.subr.bf16.mxu1 %v8754_v48 }
0x171f   :  { %7485 = vmatpush1.bf16.msra.mxu0 %v8757_v12  ;;  %7501 = vmatpush1.bf16.msra.mxu1 %v8761_v16 }
0x1720   :  { %7503 = vmatprep.subr.bf16.mxu0 %v8717_v52  ;;  %7519 = vmatprep.subr.bf16.mxu1 %v8719_v62 }
0x17e5   :  { %v5248_v33 = vpop.f32.mrb[44].mxu0  ;;  %v5319_v36 = vpop.f32.mrb[44].mxu1 }
0x17e6   :  { %v5250_v37 = vpop.f32.mrb[45].mxu0  ;;  %v5321_v8 = vpop.f32.mrb[45].mxu1 }
0x17e7   :  { %v5328_v42 = vcombine.low %v5248_v33, %v5250_v37  ;;  %v5329_v41 = vcombine.low %v5319_v36, %v5321_v8 }
0x17e9   :  { %v5336_v49 = vrot.slane %v5328_v42, %v8181_v56  ;;  %v5343_v46 = vrot.slane %v5329_v41, %v8181_v56 }
0x17eb   :  { %v5344_v61 = vcombine.low %v5336_v49, %v5343_v46  ;;  %v5841_v49 = vld [vmem:[#allocation7 + $0x8] sm:$0xff] }
0x17ec   :  { %v5845_v46 = vld [vmem:[#allocation7 + $0x28] sm:$0xff] }
0x17ed   :  { %v5346_v53 = vadd.f32 %v5344_v61, %v5146_v57  ;;  %v5843_v57 = vld [vmem:[#allocation7 + $0x18] sm:$0xff]  ;;  %v8869_v61 = vpack.c.bf16 %v5845_v46, %v5841_v49 }
0x17ef   :  { %v5347_v17 = vmul.f32 0.5, %v5346_v53  ;;  %v5352_v39 = vrot.slane %v5346_v53, 2  ;;  %v5358_v52 = vrot.slane %v5346_v53, 4  ;;  %v5361_v62 = vrot.slane %v5346_v53, 6  ;;  %v5847_v53 = vld [vmem:[#allocation7 + $0x38] sm:$0xff] }
0x17f1   :  { %7874 = vtanh.f32 %v5347_v17  ;;  %v5354_v1 = vmul.f32 0.5, %v5352_v39  ;;  %v5363_v50 = vmul.f32 0.5, %v5361_v62  ;;  %v5840_v17 = vld [vmem:[#allocation7] sm:$0xff]  ;;  %v5842_v62 = vld [vmem:[#allocation7 + $0x10] sm:$0xff] }
0x17f2   :  { %v5844_v39 = vld [vmem:[#allocation7 + $0x20] sm:$0xff] }
0x17f3   :  { %7876 = vtanh.f32 %v5354_v1  ;;  %v8871_v1 = vpack.c.bf16 %v5847_v53, %v5843_v57 }
0x17f4   :  { %7878 = vtanh.f32 %v5358_v52  ;;  %v8873_v52 = vpack.c.bf16 %v5844_v39, %v5840_v17 }
0x17f5   :  { %7880 = vtanh.f32 %v5363_v50  ;;  %v5846_v50 = vld [vmem:[#allocation7 + $0x30] sm:$0xff] }
0x17fb   :  { %v7875_v18 = vpop.eup %7874 }
0x17fc   :  { %v5349_v31 = vmul.f32 0.5, %v7875_v18  ;;  %v8876_v18 = vpack.c.bf16 %v5846_v50, %v5842_v62 }
0x17fd   :  { %v7877_v44 = vpop.eup %7876 }
0x17fe   :  { %v5350_v58 = vadd.f32 0.5, %v5349_v31  ;;  %v5356_v27 = vmul.f32 0.5, %v7877_v44  ;;  %v7879_v22 = vpop.eup %7878  ;;  %v5849_v31 = vld [vmem:[#allocation7 + $0x48] sm:$0xff] }
0x17ff   :  { %v7881_v63 = vpop.eup %7880  ;;  %v5853_v44 = vld [vmem:[#allocation7 + $0x68] sm:$0xff] }
0x1800   :  { %v5357_v54 = vadd.f32 0.5, %v5356_v27  ;;  %v5369_v60 = vmul.f32 %v7879_v22, %v5350_v58  ;;  %v5365_v40 = vmul.f32 0.5, %v7881_v63  ;;  %v5851_v58 = vld [vmem:[#allocation7 + $0x58] sm:$0xff]  ;;  %v8881_v27 = vpack.c.bf16 %v5853_v44, %v5849_v31  ;;  %v5848_v22 = vld [vmem:[#allocation7 + $0x40] sm:$0xff]  ;;  %v5854_v63 = vld [vmem:[#allocation7 + $0x70] sm:$0xff] }
0x1802   :  { %v5368_v38 = vmul.f32 %v5367_v3, %v5357_v54  ;;  %v5366_v9 = vadd.f32 0.5, %v5365_v40  ;;  %v5855_v54 = vld [vmem:[#allocation7 + $0x78] sm:$0xff]  ;;  %v5852_v3 = vld [vmem:[#allocation7 + $0x60] sm:$0xff] }
0x1804   :  { %v5370_v26 = vadd.f32 %v5369_v60, %v5368_v38  ;;  %v8883_v38 = vpack.c.bf16 %v5855_v54, %v5851_v58  ;;  %v8885_v60 = vpack.c.bf16 %v5852_v3, %v5848_v22 }
0x1806   :  { %7882 = vtanh.f32 %v5370_v26  ;;  %5371 = vst.msk [vmem:[#allocation3] sm:$0x3] %vm59_vm0, %v5370_v26  ;;  %v5850_v26 = vld [vmem:[#allocation7 + $0x50] sm:$0xff] }
0x1807   :  { %v8888_v40 = vpack.c.bf16 %v5854_v63, %v5850_v26 }
0x180d   :  { %v5598_v28 = vld [vmem:[#allocation3] sm:$0x3] }
0x1810   :  { %v7883_v55 = vpop.eup %7882 }
0x1811   :  { %v5373_v6 = vmul.f32 %v7883_v55, %v5366_v9  ;;  %v5857_v9 = vld [vmem:[#allocation7 + $0x88] sm:$0xff] }
0x1812   :  { %v5861_v55 = vld [vmem:[#allocation7 + $0xa8] sm:$0xff] }
0x1813   :  { %5374 = vst.msk [vmem:[#allocation2] sm:$0x3] %vm59_vm0, %v5373_v6  ;;  %v5859_v6 = vld [vmem:[#allocation7 + $0x98] sm:$0xff] }
0x181a   :  { %v5375_v7 = vld [vmem:[#allocation2] sm:$0x3] }
0x181b   :  { %6694 = vmatmul.mubr.msk.f32.vlgmr.msra.gmra.mrb[46].mxu0 %vm96_vm1, %v5375_v7  ;;  %6695 = vmatmul.mubr.msk.f32.vlgmr.msra.gmra.mrb[46].mxu1 %vm96_vm1, %v5375_v7  ;;  %v8893_v7 = vpack.c.bf16 %v5861_v55, %v5857_v9 }
0x181c   :  { %7505 = vmatpush1.bf16.msra.mxu0 %v8721_v45  ;;  %7521 = vmatpush1.bf16.msra.mxu1 %v8724_v35 }
0x181d   :  { %7507 = vmatprep.subr.bf16.mxu0 %v8729_v59  ;;  %7523 = vmatprep.subr.bf16.mxu1 %v8731_v34 }
0x181e   :  { %5708 = vmatprep.mubr.f32.mxu0 %v8039_v0  ;;  %5779 = vmatprep.mubr.f32.mxu1 %v8039_v0 }
0x1820   :  { %7509 = vmatpush1.bf16.msra.mxu0 %v8733_v51  ;;  %7525 = vmatpush1.bf16.msra.mxu1 %v8736_v2 }
0x1821   :  { %7511 = vmatprep.subr.bf16.mxu0 %v8741_v47  ;;  %7527 = vmatprep.subr.bf16.mxu1 %v8743_v4 }
0x1824   :  { %7513 = vmatpush1.bf16.msra.mxu0 %v8745_v43  ;;  %7529 = vmatpush1.bf16.msra.mxu1 %v8748_v13  ;;  %v5377_v43 = vld [vmem:[#allocation4 + $0xb8] sm:$0xff] }
0x1825   :  { %7515 = vmatprep.subr.bf16.mxu0 %v8752_v11  ;;  %7531 = vmatprep.subr.bf16.mxu1 %v8754_v48 }
0x1828   :  { %7517 = vmatpush1.bf16.msra.mxu0 %v8757_v12  ;;  %7533 = vmatpush1.bf16.msra.mxu1 %v8761_v16 }
0x1829   :  { %7535 = vmatprep.subr.bf16.mxu0 %v8869_v61  ;;  %7551 = vmatprep.subr.bf16.mxu1 %v8871_v1 }
0x18ee   :  { %v5479_v45 = vpop.f32.mrb[46].mxu0  ;;  %v5550_v35 = vpop.f32.mrb[46].mxu1 }
0x18ef   :  { %v5481_v59 = vpop.f32.mrb[47].mxu0  ;;  %v5552_v34 = vpop.f32.mrb[47].mxu1 }
0x18f0   :  { %v5559_v51 = vcombine.low %v5479_v45, %v5481_v59  ;;  %v5560_v2 = vcombine.low %v5550_v35, %v5552_v34  ;;  %v5863_v45 = vld [vmem:[#allocation7 + $0xb8] sm:$0xff]  ;;  %v5856_v35 = vld [vmem:[#allocation7 + $0x80] sm:$0xff] }
0x18f1   :  { %v5860_v59 = vld [vmem:[#allocation7 + $0xa0] sm:$0xff]  ;;  %v8895_v34 = vpack.c.bf16 %v5863_v45, %v5859_v6 }
0x18f2   :  { %v5567_v47 = vrot.slane %v5559_v51, %v8181_v56  ;;  %v5574_v4 = vrot.slane %v5560_v2, %v8181_v56  ;;  %v8897_v51 = vpack.c.bf16 %v5860_v59, %v5856_v35  ;;  %v5858_v2 = vld [vmem:[#allocation7 + $0x90] sm:$0xff] }
0x18f4   :  { %v5575_v13 = vcombine.low %v5567_v47, %v5574_v4  ;;  %v5862_v47 = vld [vmem:[#allocation7 + $0xb0] sm:$0xff]  ;;  %v5865_v4 = vld [vmem:[#allocation7 + $0xc8] sm:$0xff] }
0x18f6   :  { %v5577_v10 = vadd.f32 %v5575_v13, %v5377_v43  ;;  %v8900_v43 = vpack.c.bf16 %v5862_v47, %v5858_v2  ;;  %v5869_v13 = vld [vmem:[#allocation7 + $0xe8] sm:$0xff] }
0x18f8   :  { %v5578_v11 = vmul.f32 0.5, %v5577_v10  ;;  %v5583_v14 = vrot.slane %v5577_v10, 2  ;;  %v5589_v12 = vrot.slane %v5577_v10, 4  ;;  %v5592_v16 = vrot.slane %v5577_v10, 6  ;;  %v5867_v10 = vld [vmem:[#allocation7 + $0xd8] sm:$0xff] }
0x18fa   :  { %7884 = vtanh.f32 %v5578_v11  ;;  %v5585_v48 = vmul.f32 0.5, %v5583_v14  ;;  %v5594_v5 = vmul.f32 0.5, %v5592_v16  ;;  %v5871_v11 = vld [vmem:[#allocation7 + $0xf8] sm:$0xff]  ;;  %v8904_v14 = vpack.c.bf16 %v5869_v13, %v5865_v4  ;;  %v5868_v16 = vld [vmem:[#allocation7 + $0xe0] sm:$0xff] }
0x18fc   :  { %7886 = vtanh.f32 %v5585_v48  ;;  %v8906_v48 = vpack.c.bf16 %v5871_v11, %v5867_v10 }
0x18fd   :  { %7888 = vtanh.f32 %v5589_v12  ;;  %v5864_v12 = vld [vmem:[#allocation7 + $0xc0] sm:$0xff] }
0x18fe   :  { %7890 = vtanh.f32 %v5594_v5  ;;  %v5866_v5 = vld [vmem:[#allocation7 + $0xd0] sm:$0xff] }
0x1904   :  { %v7885_v15 = vpop.eup %7884 }
0x1905   :  { %v5580_v19 = vmul.f32 0.5, %v7885_v15  ;;  %v8909_v15 = vpack.c.bf16 %v5868_v16, %v5864_v12  ;;  %v5839_v12 = vld [vmem:[#allocation4 + $0xc8] sm:$0xff] }
0x1906   :  { %v7887_v20 = vpop.eup %7886 }
0x1907   :  { %v5581_v21 = vadd.f32 0.5, %v5580_v19  ;;  %v5587_v23 = vmul.f32 0.5, %v7887_v20  ;;  %v7889_v25 = vpop.eup %7888  ;;  %v5870_v19 = vld [vmem:[#allocation7 + $0xf0] sm:$0xff] }
0x1908   :  { %v7891_v33 = vpop.eup %7890  ;;  %v8913_v20 = vpack.c.bf16 %v5870_v19, %v5866_v5 }
0x1909   :  { %v5588_v24 = vadd.f32 0.5, %v5587_v23  ;;  %v5600_v30 = vmul.f32 %v7889_v25, %v5581_v21  ;;  %v5596_v36 = vmul.f32 0.5, %v7891_v33  ;;  %v5608_v33 = vld [vmem:[#allocation4 + $0xc0] sm:$0xff] }
0x190b   :  { %v5599_v29 = vmul.f32 %v5598_v28, %v5588_v24  ;;  %v5597_v37 = vadd.f32 0.5, %v5596_v36 }
0x190d   :  { %v5601_v32 = vadd.f32 %v5600_v30, %v5599_v29 }
0x190f   :  { %7892 = vtanh.f32 %v5601_v32  ;;  %5602 = vst.msk [vmem:[#allocation3] sm:$0x3] %vm59_vm0, %v5601_v32 }
0x1916   :  { %v5829_v58 = vld [vmem:[#allocation3] sm:$0x3] }
0x1919   :  { %v7893_v8 = vpop.eup %7892 }
0x191a   :  { %v5604_v42 = vmul.f32 %v7893_v8, %v5597_v37 }
0x191c   :  { %5605 = vst.msk [vmem:[#allocation2] sm:$0x3] %vm59_vm0, %v5604_v42 }
0x1923   :  { %v5606_v41 = vld [vmem:[#allocation2] sm:$0x3] }
0x1924   :  { %6696 = vmatmul.mubr.msk.f32.vlgmr.msra.gmra.mrb[48].mxu0 %vm96_vm1, %v5606_v41  ;;  %6697 = vmatmul.mubr.msk.f32.vlgmr.msra.gmra.mrb[48].mxu1 %vm96_vm1, %v5606_v41 }
0x1925   :  { %5939 = vmatprep.mubr.f32.mxu0 %v8039_v0  ;;  %6010 = vmatprep.mubr.f32.mxu1 %v8039_v0 }
0x1926   :  { %7537 = vmatpush1.bf16.msra.mxu0 %v8873_v52  ;;  %7553 = vmatpush1.bf16.msra.mxu1 %v8876_v18 }
0x1927   :  { %7539 = vmatprep.subr.bf16.mxu0 %v8881_v27  ;;  %7555 = vmatprep.subr.bf16.mxu1 %v8883_v38 }
0x192a   :  { %7541 = vmatpush1.bf16.msra.mxu0 %v8885_v60  ;;  %7557 = vmatpush1.bf16.msra.mxu1 %v8888_v40 }
0x192b   :  { %7543 = vmatprep.subr.bf16.mxu0 %v8893_v7  ;;  %7559 = vmatprep.subr.bf16.mxu1 %v8895_v34 }
0x192e   :  { %7545 = vmatpush1.bf16.msra.mxu0 %v8897_v51  ;;  %7561 = vmatpush1.bf16.msra.mxu1 %v8900_v43 }
0x192f   :  { %7547 = vmatprep.subr.bf16.mxu0 %v8904_v14  ;;  %7563 = vmatprep.subr.bf16.mxu1 %v8906_v48 }
0x1932   :  { %7549 = vmatpush1.bf16.msra.mxu0 %v8909_v15  ;;  %7565 = vmatpush1.bf16.msra.mxu1 %v8913_v20 }
0x1933   :  { %7567 = vmatprep.subr.bf16.mxu0 %v8869_v61  ;;  %7583 = vmatprep.subr.bf16.mxu1 %v8871_v1 }
0x19f7   :  { %v5710_v21 = vpop.f32.mrb[48].mxu0  ;;  %v5781_v23 = vpop.f32.mrb[48].mxu1 }
0x19f8   :  { %v5712_v24 = vpop.f32.mrb[49].mxu0  ;;  %v5783_v25 = vpop.f32.mrb[49].mxu1 }
0x19f9   :  { %v5790_v28 = vcombine.low %v5710_v21, %v5712_v24  ;;  %v5791_v29 = vcombine.low %v5781_v23, %v5783_v25 }
0x19fb   :  { %v5798_v30 = vrot.slane %v5790_v28, %v8181_v56  ;;  %v5805_v32 = vrot.slane %v5791_v29, %v8181_v56 }
0x19fd   :  { %v5806_v36 = vcombine.low %v5798_v30, %v5805_v32 }
0x19ff   :  { %v5808_v37 = vadd.f32 %v5806_v36, %v5608_v33 }
0x1a01   :  { %v5809_v8 = vmul.f32 0.5, %v5808_v37  ;;  %v5814_v42 = vrot.slane %v5808_v37, 2  ;;  %v5820_v49 = vrot.slane %v5808_v37, 4  ;;  %v5823_v46 = vrot.slane %v5808_v37, 6 }
0x1a03   :  { %7894 = vtanh.f32 %v5809_v8  ;;  %v5816_v41 = vmul.f32 0.5, %v5814_v42  ;;  %v5825_v57 = vmul.f32 0.5, %v5823_v46 }
0x1a05   :  { %7896 = vtanh.f32 %v5816_v41 }
0x1a06   :  { %7898 = vtanh.f32 %v5820_v49 }
0x1a07   :  { %7900 = vtanh.f32 %v5825_v57 }
0x1a0d   :  { %v7895_v53 = vpop.eup %7894 }
0x1a0e   :  { %v5811_v17 = vmul.f32 0.5, %v7895_v53 }
0x1a0f   :  { %v7897_v39 = vpop.eup %7896 }
0x1a10   :  { %v5812_v62 = vadd.f32 0.5, %v5811_v17  ;;  %v5818_v50 = vmul.f32 0.5, %v7897_v39  ;;  %v7899_v44 = vpop.eup %7898 }
0x1a11   :  { %v7901_v26 = vpop.eup %7900 }
0x1a12   :  { %v5819_v31 = vadd.f32 0.5, %v5818_v50  ;;  %v5831_v22 = vmul.f32 %v7899_v44, %v5812_v62  ;;  %v5827_v63 = vmul.f32 0.5, %v7901_v26 }
0x1a14   :  { %v5830_v54 = vmul.f32 %v5829_v58, %v5819_v31  ;;  %v5828_v9 = vadd.f32 0.5, %v5827_v63 }
0x1a16   :  { %v5832_v3 = vadd.f32 %v5831_v22, %v5830_v54 }
0x1a18   :  { %7902 = vtanh.f32 %v5832_v3  ;;  %5833 = vst.msk [vmem:[#allocation3] sm:$0x3] %vm59_vm0, %v5832_v3 }
0x1a1f   :  { %v6060_v37 = vld [vmem:[#allocation3] sm:$0x3] }
0x1a22   :  { %v7903_v55 = vpop.eup %7902 }
0x1a23   :  { %v5835_v6 = vmul.f32 %v7903_v55, %v5828_v9 }
0x1a25   :  { %5836 = vst.msk [vmem:[#allocation2] sm:$0x3] %vm59_vm0, %v5835_v6 }
0x1a2c   :  { %v5837_v45 = vld [vmem:[#allocation2] sm:$0x3] }
0x1a2d   :  { %6698 = vmatmul.mubr.msk.f32.vlgmr.msra.gmra.mrb[50].mxu0 %vm96_vm1, %v5837_v45  ;;  %6699 = vmatmul.mubr.msk.f32.vlgmr.msra.gmra.mrb[50].mxu1 %vm96_vm1, %v5837_v45 }
0x1a2e   :  { %7569 = vmatpush1.bf16.msra.mxu0 %v8873_v52  ;;  %7585 = vmatpush1.bf16.msra.mxu1 %v8876_v18 }
0x1a2f   :  { %7571 = vmatprep.subr.bf16.mxu0 %v8881_v27  ;;  %7587 = vmatprep.subr.bf16.mxu1 %v8883_v38 }
0x1a30   :  { %6170 = vmatprep.mubr.f32.mxu0 %v8039_v0  ;;  %6241 = vmatprep.mubr.f32.mxu1 %v8039_v0 }
0x1a32   :  { %7573 = vmatpush1.bf16.msra.mxu0 %v8885_v60  ;;  %7589 = vmatpush1.bf16.msra.mxu1 %v8888_v40 }
0x1a33   :  { %7575 = vmatprep.subr.bf16.mxu0 %v8893_v7  ;;  %7591 = vmatprep.subr.bf16.mxu1 %v8895_v34 }
0x1a36   :  { %7577 = vmatpush1.bf16.msra.mxu0 %v8897_v51  ;;  %7593 = vmatpush1.bf16.msra.mxu1 %v8900_v43 }
0x1a37   :  { %7579 = vmatprep.subr.bf16.mxu0 %v8904_v14  ;;  %7595 = vmatprep.subr.bf16.mxu1 %v8906_v48 }
0x1a3a   :  { %7581 = vmatpush1.bf16.msra.mxu0 %v8909_v15  ;;  %7597 = vmatpush1.bf16.msra.mxu1 %v8913_v20 }
0x1a3b   :  { %7599 = vmatprep.subr.bf16.mxu0 %v8869_v61  ;;  %7615 = vmatprep.subr.bf16.mxu1 %v8871_v1 }
0x1b00   :  { %v5941_v35 = vpop.f32.mrb[50].mxu0  ;;  %v6012_v59 = vpop.f32.mrb[50].mxu1 }
0x1b01   :  { %v5943_v2 = vpop.f32.mrb[51].mxu0  ;;  %v6014_v47 = vpop.f32.mrb[51].mxu1 }
0x1b02   :  { %v6021_v4 = vcombine.low %v5941_v35, %v5943_v2  ;;  %v6022_v13 = vcombine.low %v6012_v59, %v6014_v47 }
0x1b04   :  { %v6029_v10 = vrot.slane %v6021_v4, %v8181_v56  ;;  %v6036_v11 = vrot.slane %v6022_v13, %v8181_v56 }
0x1b06   :  { %v6037_v16 = vcombine.low %v6029_v10, %v6036_v11  ;;  %v6531_v10 = vld [vmem:[#allocation9] sm:$0xff]  ;;  %v6532_v11 = vld [vmem:[#allocation9 + $0x8] sm:$0xff] }
0x1b08   :  { %v6039_v5 = vadd.f32 %v6037_v16, %v5839_v12  ;;  %v7631_v12 = vpack.c.bf16 %v6532_v11, %v6531_v10  ;;  %v8041_v16 = vmov 0.0|0.0  }
0x1b0a   :  { %v6040_v19 = vmul.f32 0.5, %v6039_v5  ;;  %v6045_v21 = vrot.slane %v6039_v5, 2  ;;  %v6051_v61 = vrot.slane %v6039_v5, 4  ;;  %v6054_v1 = vrot.slane %v6039_v5, 6  ;;  %v6533_v5 = vld [vmem:[#allocation9 + $0x10] sm:$0xff] }
0x1b0c   :  { %7904 = vtanh.f32 %v6040_v19  ;;  %v6047_v23 = vmul.f32 0.5, %v6045_v21  ;;  %v6056_v24 = vmul.f32 0.5, %v6054_v1  ;;  %v6534_v19 = vld [vmem:[#allocation9 + $0x18] sm:$0xff] }
0x1b0d   :  { %v7634_v21 = vpack.c.bf16 %v6534_v19, %v6533_v5 }
0x1b0e   :  { %7906 = vtanh.f32 %v6047_v23  ;;  %v6535_v23 = vld [vmem:[#allocation9 + $0x20] sm:$0xff] }
0x1b0f   :  { %7908 = vtanh.f32 %v6051_v61  ;;  %v6536_v61 = vld [vmem:[#allocation9 + $0x28] sm:$0xff] }
0x1b10   :  { %7910 = vtanh.f32 %v6056_v24  ;;  %v7637_v1 = vpack.c.bf16 %v6536_v61, %v6535_v23  ;;  %v6537_v24 = vld [vmem:[#allocation9 + $0x30] sm:$0xff] }
0x1b16   :  { %v7905_v25 = vpop.eup %7904 }
0x1b17   :  { %v6042_v28 = vmul.f32 0.5, %v7905_v25  ;;  %v6538_v25 = vld [vmem:[#allocation9 + $0x38] sm:$0xff] }
0x1b18   :  { %v7907_v29 = vpop.eup %7906 }
0x1b19   :  { %v6043_v30 = vadd.f32 0.5, %v6042_v28  ;;  %v6049_v32 = vmul.f32 0.5, %v7907_v29  ;;  %v7909_v36 = vpop.eup %7908  ;;  %v7640_v28 = vpack.c.bf16 %v6538_v25, %v6537_v24 }
0x1b1a   :  { %v7911_v49 = vpop.eup %7910 }
0x1b1b   :  { %v6050_v33 = vadd.f32 0.5, %v6049_v32  ;;  %v6062_v42 = vmul.f32 %v7909_v36, %v6043_v30  ;;  %v6058_v46 = vmul.f32 0.5, %v7911_v49 }
0x1b1d   :  { %v6061_v8 = vmul.f32 %v6060_v37, %v6050_v33  ;;  %v6059_v57 = vadd.f32 0.5, %v6058_v46 }
0x1b1f   :  { %v6063_v41 = vadd.f32 %v6062_v42, %v6061_v8 }
0x1b21   :  { %7912 = vtanh.f32 %v6063_v41  ;;  %6064 = vst.msk [vmem:[#allocation3] sm:$0x3] %vm59_vm0, %v6063_v41  ;;  %v6301_v41 = vld [vmem:[#allocation4 + $0xd8] sm:$0xff] }
0x1b28   :  { %v6291_v9 = vld [vmem:[#allocation3] sm:$0x3] }
0x1b2b   :  { %v7913_v53 = vpop.eup %7912 }
0x1b2c   :  { %v6066_v17 = vmul.f32 %v7913_v53, %v6059_v57 }
0x1b2e   :  { %6067 = vst.msk [vmem:[#allocation2] sm:$0x3] %vm59_vm0, %v6066_v17 }
0x1b35   :  { %v6068_v39 = vld [vmem:[#allocation2] sm:$0x3] }
0x1b36   :  { %6700 = vmatmul.mubr.msk.f32.vlgmr.msra.gmra.mrb[52].mxu0 %vm96_vm1, %v6068_v39  ;;  %6701 = vmatmul.mubr.msk.f32.vlgmr.msra.gmra.mrb[52].mxu1 %vm96_vm1, %v6068_v39 }
0x1b37   :  { %7601 = vmatpush1.bf16.msra.mxu0 %v8873_v52  ;;  %7617 = vmatpush1.bf16.msra.mxu1 %v8876_v18 }
0x1b38   :  { %7603 = vmatprep.subr.bf16.mxu0 %v8881_v27  ;;  %7619 = vmatprep.subr.bf16.mxu1 %v8883_v38 }
0x1b39   :  { %6401 = vmatprep.mubr.f32.mxu0 %v8039_v0  ;;  %6472 = vmatprep.mubr.f32.mxu1 %v8039_v0 }
0x1b3b   :  { %7605 = vmatpush1.bf16.msra.mxu0 %v8885_v60  ;;  %7621 = vmatpush1.bf16.msra.mxu1 %v8888_v40 }
0x1b3c   :  { %7607 = vmatprep.subr.bf16.mxu0 %v8893_v7  ;;  %7623 = vmatprep.subr.bf16.mxu1 %v8895_v34 }
0x1b3f   :  { %7609 = vmatpush1.bf16.msra.mxu0 %v8897_v51  ;;  %7625 = vmatpush1.bf16.msra.mxu1 %v8900_v43  ;;  %v6070_v51 = vld [vmem:[#allocation4 + $0xd0] sm:$0xff] }
0x1b40   :  { %7611 = vmatprep.subr.bf16.mxu0 %v8904_v14  ;;  %7627 = vmatprep.subr.bf16.mxu1 %v8906_v48 }
0x1b43   :  { %7613 = vmatpush1.bf16.msra.mxu0 %v8909_v15  ;;  %7629 = vmatpush1.bf16.msra.mxu1 %v8913_v20 }
0x1b44   :  { %7630 = vmatprep.subr.bf16.mxu0 %v8041_v16 }
0x1c09   :  { %v6172_v52 = vpop.f32.mrb[52].mxu0  ;;  %v6243_v18 = vpop.f32.mrb[52].mxu1 }
0x1c0a   :  { %v6174_v27 = vpop.f32.mrb[53].mxu0  ;;  %v6245_v38 = vpop.f32.mrb[53].mxu1 }
0x1c0b   :  { %v6252_v60 = vcombine.low %v6172_v52, %v6174_v27  ;;  %v6253_v40 = vcombine.low %v6243_v18, %v6245_v38 }
0x1c0d   :  { %v6260_v7 = vrot.slane %v6252_v60, %v8181_v56  ;;  %v6267_v34 = vrot.slane %v6253_v40, %v8181_v56 }
0x1c0f   :  { %v6268_v43 = vcombine.low %v6260_v7, %v6267_v34 }
0x1c11   :  { %v6270_v62 = vadd.f32 %v6268_v43, %v6070_v51 }
0x1c13   :  { %v6271_v14 = vmul.f32 0.5, %v6270_v62  ;;  %v6276_v50 = vrot.slane %v6270_v62, 2  ;;  %v6282_v15 = vrot.slane %v6270_v62, 4  ;;  %v6285_v20 = vrot.slane %v6270_v62, 6 }
0x1c15   :  { %7914 = vtanh.f32 %v6271_v14  ;;  %v6278_v48 = vmul.f32 0.5, %v6276_v50  ;;  %v6287_v31 = vmul.f32 0.5, %v6285_v20 }
0x1c17   :  { %7916 = vtanh.f32 %v6278_v48 }
0x1c18   :  { %7918 = vtanh.f32 %v6282_v15 }
0x1c19   :  { %7920 = vtanh.f32 %v6287_v31 }
0x1c1f   :  { %v7915_v44 = vpop.eup %7914 }
0x1c20   :  { %v6273_v58 = vmul.f32 0.5, %v7915_v44  ;;  %v6704_v44 = vld [vmem:[%s8995_s3] ss:$0 sm:$0xff]  ;;  %s8004_s3 = scalar_lea.vmem %s6639_s29, 32 }
0x1c21   :  { %v7917_v54 = vpop.eup %7916  ;;  %p8005_p10 = scmp.ne.s32.totalorder %s6639_s29, %s8004_s3  ;;  %p8010_p12 = scmp.lt.s32.totalorder %s8004_s3, %s8004_s3 }
0x1c22   :  { %v6274_v22 = vadd.f32 0.5, %v6273_v58  ;;  %v6280_v3 = vmul.f32 0.5, %v7917_v54  ;;  %v7919_v63 = vpop.eup %7918 }
0x1c23   :  { %v7921_v35 = vpop.eup %7920  ;;  %p8011_p13 = por %p8010_p12, %p8009_p11 }
0x1c24   :  { %v6281_v26 = vadd.f32 0.5, %v6280_v3  ;;  %v6293_v6 = vmul.f32 %v7919_v63, %v6274_v22  ;;  %v6289_v59 = vmul.f32 0.5, %v7921_v35 }
0x1c25   :  { %p8012_p0 = pnand %p8011_p13, %p8005_p10 }
0x1c26   :  { %v6292_v55 = vmul.f32 %v6291_v9, %v6281_v26  ;;  %v6290_v2 = vadd.f32 0.5, %v6289_v59 }
0x1c28   :  { %v6294_v45 = vadd.f32 %v6293_v6, %v6292_v55 }
0x1c2a   :  { %7922 = vtanh.f32 %v6294_v45  ;;  %6295 = vst.msk [vmem:[#allocation3] sm:$0x3] %vm59_vm0, %v6294_v45 }
0x1c31   :  { %v6522_v34 = vld [vmem:[#allocation3] sm:$0x3] }
0x1c34   :  { %v7923_v47 = vpop.eup %7922 }
0x1c35   :  { %v6297_v4 = vmul.f32 %v7923_v47, %v6290_v2 }
0x1c37   :  { %6298 = vst.msk [vmem:[#allocation2] sm:$0x3] %vm59_vm0, %v6297_v4 }
0x1c3e   :  { %v6299_v13 = vld [vmem:[#allocation2] sm:$0x3] }
0x1c3f   :  { %6702 = vmatmul.mubr.msk.f32.vlgmr.msra.gmra.mrb[54].mxu0 %vm96_vm1, %v6299_v13  ;;  %6703 = vmatmul.mubr.msk.f32.vlgmr.msra.gmra.mrb[54].mxu1 %vm96_vm1, %v6299_v13 }
0x1c40   :  { %7632 = vmatpush3.bf16.msra.mxu0 %v7631_v12  ;;  %6731 = vmatprep.mubr.msk.f32.mxu0 %vm8042_vm2, %v8039_v0 }
0x1c41   :  { %7633 = vmatprep.subr.bf16.mxu0 %v8041_v16 }
0x1c44   :  { %7635 = vmatpush3.bf16.msra.mxu0 %v7634_v21 }
0x1c45   :  { %7636 = vmatprep.subr.bf16.mxu0 %v8041_v16 }
0x1c48   :  { %7638 = vmatpush3.bf16.msra.mxu0 %v7637_v1 }
0x1c49   :  { %7639 = vmatprep.subr.bf16.mxu0 %v8041_v16 }
0x1c4c   :  { %7641 = vmatpush3.bf16.msra.mxu0 %v7640_v28 }
0x1d12   :  { %v6403_v29 = vpop.f32.mrb[54].mxu0  ;;  %v6474_v30 = vpop.f32.mrb[54].mxu1 }
0x1d13   :  { %v6405_v32 = vpop.f32.mrb[55].mxu0  ;;  %v6476_v33 = vpop.f32.mrb[55].mxu1 }
0x1d14   :  { %v6483_v36 = vcombine.low %v6403_v29, %v6405_v32  ;;  %v6484_v37 = vcombine.low %v6474_v30, %v6476_v33 }
0x1d16   :  { %v6491_v8 = vrot.slane %v6483_v36, %v8181_v56  ;;  %v6498_v42 = vrot.slane %v6484_v37, %v8181_v56 }
0x1d18   :  { %v6499_v49 = vcombine.low %v6491_v8, %v6498_v42 }
0x1d1a   :  { %v6501_v46 = vadd.f32 %v6499_v49, %v6301_v41 }
0x1d1c   :  { %v6502_v57 = vmul.f32 0.5, %v6501_v46  ;;  %v6507_v53 = vrot.slane %v6501_v46, 2  ;;  %v6513_v17 = vrot.slane %v6501_v46, 4  ;;  %v6516_v39 = vrot.slane %v6501_v46, 6 }
0x1d1e   :  { %7924 = vtanh.f32 %v6502_v57  ;;  %v6509_v0 = vmul.f32 0.5, %v6507_v53  ;;  %v6518_v52 = vmul.f32 0.5, %v6516_v39 }
0x1d20   :  { %7926 = vtanh.f32 %v6509_v0 }
0x1d21   :  { %7928 = vtanh.f32 %v6513_v17 }
0x1d22   :  { %7930 = vtanh.f32 %v6518_v52 }
0x1d28   :  { %v7925_v18 = vpop.eup %7924 }
0x1d29   :  { %v6504_v27 = vmul.f32 0.5, %v7925_v18 }
0x1d2a   :  { %v7927_v38 = vpop.eup %7926 }
0x1d2b   :  { %v6505_v60 = vadd.f32 0.5, %v6504_v27  ;;  %v6511_v40 = vmul.f32 0.5, %v7927_v38  ;;  %v7929_v56 = vpop.eup %7928 }
0x1d2c   :  { %v7931_v14 = vpop.eup %7930 }
0x1d2d   :  { %v6512_v7 = vadd.f32 0.5, %v6511_v40  ;;  %v6524_v43 = vmul.f32 %v7929_v56, %v6505_v60  ;;  %v6520_v50 = vmul.f32 0.5, %v7931_v14 }
0x1d2f   :  { %v6523_v51 = vmul.f32 %v6522_v34, %v6512_v7  ;;  %v6521_v48 = vadd.f32 0.5, %v6520_v50 }
0x1d31   :  { %v6525_v62 = vadd.f32 %v6524_v43, %v6523_v51 }
0x1d33   :  { %6526 = vst.msk [vmem:[#allocation3] sm:$0x3] %vm59_vm0, %v6525_v62  ;;  %7932 = vtanh.f32 %v6525_v62 }
0x1d3d   :  { %v7933_v15 = vpop.eup %7932 }
0x1d3e   :  { %v6528_v20 = vmul.f32 %v7933_v15, %v6521_v48 }
0x1d40   :  { %6529 = vst.msk [vmem:[#allocation2] sm:$0x3] %vm59_vm0, %v6528_v20 }
0x1d47   :  { %v6530_v31 = vld [vmem:[#allocation2] sm:$0x3] }
0x1d48   :  { %6732 = vmatmul.mubr.msk.f32.vlgmr.msra.gmra.mrb[56].mxu0 %vm96_vm1, %v6530_v31 }
0x1e1b   :  { %v6615_v58 = vpop.f32.mrb[56].mxu0 }
0x1e1c   :  { %v6616_v54 = vadd.f32 %v6704_v44, %v6615_v58  ;;  %v6733_v22 = vpop.f32.mrb[57].mxu0 }
0x1e1e   :  { %v6620_v3 = vsel %vm6619_vm3, %v6616_v54, -inf }
0x1e1f   :  { %6621 = vmax.xlane.f32.xlu0 %v6620_v3 }
0x1eac   :  { %v6622_v26 = vpop.xlane.xlu0 %6621 }
0x1ead   :  { %v6623_v63 = vsub.f32 %v6616_v54, %v6622_v26 }
0x1eaf   :  { %v6624_v9 = vmul.f32 1.442695, %v6623_v63 }
0x1eb1   :  { %7934 = vpow2.f32 %v6624_v9 }
0x1ebb   :  { %v7935_v55 = vpop.eup %7934 }
0x1ebc   :  { %v6626_v6 = vsel %vm6619_vm3, %v7935_v55, 0.0 }
0x1ebd   :  { %6627 = vadd.xlane.f32.xlu0 %v6626_v6 }
0x1f4a   :  { %v6628_v45 = vpop.xlane.xlu0 %6627 }
0x1f4b   :  { %7936 = vrcp.f32 %v6628_v45 }
0x1f55   :  { %v7937_v35 = vpop.eup %7936 }
0x1f56   :  { %v6630_v59 = vmul.f32 %v7937_v35, %v7935_v55 }
0x1f58   :  { %6631 = vst [vmem:[#allocation10] sm:$0x3] %v6630_v59 }
0x1f59   :  { %8015 = shalt.err (!%p8012_p0)
}
0x1f5a   :  { %s8016_s6 = scalar_lea.hbm %s8996_s4, 32 }
0x1f5b   :  { %p8017_p1 = scmp.ne.s32.totalorder %s8996_s4, %s8016_s6  ;;  %p8020_p2 = scmp.lt.u32.totalorder %s8016_s6, %s8996_s4 }
0x1f5d   :  { %p8022_p3 = pnand %p8020_p2, %p8017_p1 }
0x1f5f   :  { %8025 = shalt.err (!%p8022_p3)
}
0x1f60   :  { %6641 = dma.vmem_to_hbm [thread:$0]  %s6639_s29, 32, %s8996_s4, [#allocation6]  }
0x1f61   :  { %8030 = dma.done.wait [#allocation6], 32  }
0x1f62   :  { %8031 = vsyncadd [#allocation6], 4294967264 }
0x1f63   :  { %6645 = vsyncpa [#allocation5], 1 }
0x1f64   :  { %6646 = vsyncpa [#allocation8], 1 }
0x1f65   :  { %6647 = vsyncpa [#allocation6], 1 }

</bundles_post_ra>
